<compile_context>
chip_gen: v7x
topology: tpu7x:2x2x1
jax: 0.10.0
libtpu: 0.0.40
codegen_flags: <defaults>
</compile_context>

<pallas_src>
import jax
import jax.numpy as jnp
from jax.experimental import pallas as pl
from jax.experimental.pallas import tpu as pltpu


# ----------------------------- fused Pallas kernel ------------------------------

def make_fused_kernel(h, w, sp, width, cin, cin1_pad, num_classes):
    """All 4 conv+ReLU layers plus the FC head for ONE image, activations VMEM-resident.

    Canvas layout per image: channel-major (C, SP) with column p = y*w + x and
    SP >= h*w + w + 1 (rounded up to 128 lanes).  Because the canvas keeps a constant row
    width, every 2x2 tap (dy, dx) is a uniform flat shift s = dy*w + dx, so the in-kernel
    im2col is just 4 static lane-offset slices stacked along sublanes.
    """
    s_valid = h * w
    shifts = (0, 1, w, w + 1)            # taps (dy, dx) = (0,0), (0,1), (1,0), (1,1)

    def conv_layer(src_ref, w_ref, b_ref, dst_ref):
        # Stack the 4 shifted views along K (sublanes): (4*Cin_pad, H*W), tap-major, to
        # match the K-concatenated weight (Cout, 4*Cin_pad) built at init.
        taps = [src_ref[:, sh:sh + s_valid] for sh in shifts]
        a = jnp.concatenate(taps, axis=0).astype(jnp.bfloat16)
        out = jnp.dot(w_ref[...], a, preferred_element_type=jnp.float32)   # (Cout, H*W) f32
        out = jnp.maximum(out + b_ref[...], 0.0)                           # bias + ReLU in f32
        dst_ref[:, 0:s_valid] = out.astype(dst_ref.dtype)

    def kernel(x_ref, w1, b1, w2, b2, w3, b3, w4, b4, fcw_ref, fcb_ref, o_ref,
               buf_in, buf_a, buf_b):
        # Layer-1 canvas: zero it (channel-pad rows + spatial tail are read by shifted taps
        # and must be finite / zero), then paste the image into the top-left region.
        buf_in[...] = jnp.zeros_like(buf_in)
        buf_in[0:cin, 0:s_valid] = x_ref[...]

        # Zero only the 128-lane pad tail of the activation buffers; the valid region is
        # fully overwritten by every layer.  Done every grid step because with a "parallel"
        # grid each TensorCore has its own scratch and sees only a subset of steps.
        buf_a[:, s_valid:] = jnp.zeros((width, sp - s_valid), jnp.bfloat16)
        buf_b[:, s_valid:] = jnp.zeros((width, sp - s_valid), jnp.bfloat16)

        conv_layer(buf_in, w1, b1, buf_a)          # conv1 + ReLU
        conv_layer(buf_a, w2, b2, buf_b)           # conv2 + ReLU
        conv_layer(buf_b, w3, b3, buf_a)           # conv3 + ReLU
        conv_layer(buf_a, w4, b4, buf_b)           # conv4 + ReLU

        # Fused FC head: logits[k] = sum_{c,p} fc_w[k,c,p] * act[c,p] + fc_b[k].
        # ~368K MACs/image -> a few hundred VPU cycles.  fc_w is zero outside the valid
        # 28x28 crop and the spatial tail, so the (finite) garbage-creep region contributes 0.
        act = buf_b[...].astype(jnp.float32)                          # (C, SP) f32
        rows = []
        for k in range(num_classes):                                  # static unroll (10)
            wk = fcw_ref[k].astype(jnp.float32)                       # (C, SP)
            rows.append(jnp.sum(wk * act, axis=0, keepdims=True))     # (1, SP)
        r = jnp.concatenate(rows, axis=0)                             # (CLS, SP)
        logits = jnp.sum(r, axis=1, keepdims=True) + fcb_ref[...]     # (CLS, 1) f32
        o_ref[...] = logits

    return kernel


# ----------------------------- forward (jitted) ------------------------------

def _forward_logits_impl(params, x_nchw):
    n, cin, h, w = x_nchw.shape
    conv_params = params["conv"]
    fc_w, fc_b = params["fc_w"], params["fc_b"]
    num_classes, width, sp = fc_w.shape
    s = h * w
    cin1_pad = conv_params[0][0].shape[1] // 4

    # Free row-major collapse only; canvas padding + bf16 cast happen inside the kernel.
    xc = x_nchw.reshape(n, cin, s).astype(jnp.float32)

    kernel = make_fused_kernel(h, w, sp, width, cin, cin1_pad, num_classes)

    in_specs = [pl.BlockSpec((None, cin, s), lambda i: (i, 0, 0))]
    conv_args = []
    for w_cat, b in conv_params:
        kcols = w_cat.shape[1]
        in_specs.append(pl.BlockSpec((width, kcols), lambda i: (0, 0)))
        in_specs.append(pl.BlockSpec((width, 1), lambda i: (0, 0)))
        conv_args += [w_cat, b]
    in_specs.append(pl.BlockSpec((num_classes, width, sp), lambda i: (0, 0, 0)))
    in_specs.append(pl.BlockSpec((num_classes, 1), lambda i: (0, 0)))

    out = pl.pallas_call(
        kernel,
        out_shape=jax.ShapeDtypeStruct((n, num_classes, 1), jnp.float32),
        grid_spec=pltpu.PrefetchScalarGridSpec(
            num_scalar_prefetch=0,
            grid=(n,),                                          # one image per step
            in_specs=in_specs,
            out_specs=pl.BlockSpec((None, num_classes, 1), lambda i: (i, 0, 0)),
            scratch_shapes=[pltpu.VMEM((cin1_pad, sp), jnp.float32),   # layer-1 canvas
                            pltpu.VMEM((width, sp), jnp.bfloat16),     # ping
                            pltpu.VMEM((width, sp), jnp.bfloat16)]),   # pong
        compiler_params=pltpu.CompilerParams(
            dimension_semantics=("parallel",)),                 # v7x: one image per TC
    )(xc, *conv_args, fc_w, fc_b)
    return out.reshape(n, num_classes)


_forward_logits = jax.jit(_forward_logits_impl)


def convnet_wn_4_forward(params, x_nchw):
    """Matches ConvNet_WN_4.forward: returns (logits, shapes), shapes in NCHW convention."""
    n, cin, h, w = x_nchw.shape
    width = params["fc_w"].shape[1]
    shapes = [(n, cin, h, w)] + [(n, width, h - i, w - i) for i in range(1, 5)]
    return _forward_logits(params, x_nchw), shapes


# ----------------------------- parameter setup -------------------------------

def weight_norm_apply(v, g):
    """PyTorch weight_norm with dim=None: w = g * v / ||v||_F (g scalar)."""
    return g * v / jnp.sqrt(jnp.sum(v * v))


def init_params(key, num_input_channels=3, width=32, num_output_classes=10, H=32, W=32):
    s = H * W
    # padded flat-spatial extent: room for the largest tap shift (W+1), rounded to lanes
    sp = ((s + W + 1 + 127) // 128) * 128
    cin1_pad = max(8, ((num_input_channels + 7) // 8) * 8)
    keys = jax.random.split(key, 10)

    conv_kernel_params, conv_ref_params = [], []
    cins = [num_input_channels, width, width, width]
    cpads = [cin1_pad, width, width, width]
    for i, (cin, cpad) in enumerate(zip(cins, cpads)):
        # PyTorch conv weight layout OIHW: (Cout, Cin, 2, 2); weight_norm dim=None.
        v = jax.random.normal(keys[2 * i], (width, cin, 2, 2), jnp.float32) * 0.1
        g = jnp.asarray(1.0 + 0.01 * i, jnp.float32)
        w_oihw = weight_norm_apply(v, g)
        b = jax.random.normal(keys[2 * i + 1], (width,), jnp.float32) * 0.05
        conv_ref_params.append((w_oihw, b))
        # K-concatenated weight: column index = tap*Cin_pad + cin, tap t = dy*2 + dx,
        # matching the in-kernel sublane stacking order of the shifted activation views.
        w_taps = jnp.transpose(w_oihw, (2, 3, 0, 1)).reshape(4, width, cin)   # (tap, O, I)
        w_taps = jnp.pad(w_taps, ((0, 0), (0, 0), (0, cpad - cin)))
        w_cat = jnp.transpose(w_taps, (1, 0, 2)).reshape(width, 4 * cpad)
        conv_kernel_params.append((w_cat.astype(jnp.bfloat16), b.reshape(width, 1)))

    ho, wo = H - 4, W - 4
    d_torch = width * ho * wo
    fw = jax.random.normal(keys[8], (num_output_classes, d_torch), jnp.float32) * 0.01
    fb = jax.random.normal(keys[9], (num_output_classes,), jnp.float32) * 0.05
    # Fold PyTorch's NCHW x.view(N,-1) flatten + valid-region crop into the FC weight:
    # zero-scatter it onto the padded channel-major canvas layout used by the fused kernel.
    fw_canvas = jnp.zeros((num_output_classes, width, H, W), jnp.float32)
    fw_canvas = fw_canvas.at[:, :, :ho, :wo].set(
        fw.reshape(num_output_classes, width, ho, wo))
    fw_canvas = jnp.pad(fw_canvas.reshape(num_output_classes, width, s),
                        ((0, 0), (0, 0), (0, sp - s)))

    params = {"conv": conv_kernel_params,
              "fc_w": fw_canvas.astype(jnp.bfloat16),           # (CLS, width, SP)
              "fc_b": fb.reshape(num_output_classes, 1)}        # (CLS, 1)
    ref_params = {"conv": conv_ref_params, "fc_w": fw, "fc_b": fb}
    return params, ref_params


# ----------------------------- pure-JAX reference -----------------------------

def reference_forward(ref_params, x_nchw):
    act = x_nchw
    for w_oihw, b in ref_params["conv"]:
        act = jax.lax.conv_general_dilated(
            act, w_oihw, window_strides=(1, 1), padding="VALID",
            dimension_numbers=("NCHW", "OIHW", "NCHW"))
        act = jax.nn.relu(act + b.reshape(1, -1, 1, 1))
    flat = act.reshape(act.shape[0], -1)
    return flat @ ref_params["fc_w"].T + ref_params["fc_b"]


# ----------------------------- main -------------------------------------------

if __name__ == "__main__":
    key = jax.random.PRNGKey(0)
    k_param, k_x = jax.random.split(key)

    # fc expects width*28*28 features => spatial must be 32x32 with four 2x2 valid convs.
    batch, cin, width, num_classes = 2, 3, 32, 10
    params, ref_params = init_params(k_param, num_input_channels=cin, width=width,
                                     num_output_classes=num_classes, H=32, W=32)
    x = jax.random.normal(k_x, (batch, cin, 32, 32), jnp.float32)

    logits, shapes = convnet_wn_4_forward(params, x)
    logits = jax.block_until_ready(logits)

    assert logits.shape == (batch, num_classes)
    assert shapes == [(2, 3, 32, 32), (2, 32, 31, 31), (2, 32, 30, 30),
                      (2, 32, 29, 29), (2, 32, 28, 28)]
    assert bool(jnp.all(jnp.isfinite(logits)))

    # numerics vs. pure-JAX f32 reference (kernel uses bf16 MXU operands -> small drift)
    ref = reference_forward(ref_params, x)
    err = float(jnp.max(jnp.abs(logits - ref)))
    scale = float(jnp.max(jnp.abs(ref)))
    assert err <= 1e-2 + 0.1 * scale, f"logits mismatch: err={err:.4g}, scale={scale:.4g}"

    print("KERNEL_OK")
</pallas_src>

<mosaic_0001>
module attributes {stable_mosaic.version = 11 : i64} {
  func.func @kernel(%arg0: i32, %arg1: memref<1x3x1024xf32, #tpu.memory_space<vmem>>, %arg2: memref<32x32xbf16, #tpu.memory_space<vmem>>, %arg3: memref<32x1xf32, #tpu.memory_space<vmem>>, %arg4: memref<32x128xbf16, #tpu.memory_space<vmem>>, %arg5: memref<32x1xf32, #tpu.memory_space<vmem>>, %arg6: memref<32x128xbf16, #tpu.memory_space<vmem>>, %arg7: memref<32x1xf32, #tpu.memory_space<vmem>>, %arg8: memref<32x128xbf16, #tpu.memory_space<vmem>>, %arg9: memref<32x1xf32, #tpu.memory_space<vmem>>, %arg10: memref<10x32x1152xbf16, #tpu.memory_space<vmem>>, %arg11: memref<10x1xf32, #tpu.memory_space<vmem>>, %arg12: memref<1x10x1xf32, #tpu.memory_space<vmem>>, %arg13: memref<8x1152xf32, #tpu.memory_space<vmem>>, %arg14: memref<32x1152xbf16, #tpu.memory_space<vmem>>, %arg15: memref<32x1152xbf16, #tpu.memory_space<vmem>>) attributes {dimension_semantics = [#tpu.dimension_semantics<parallel>], iteration_bounds = array<i64: 2>, scalar_prefetch = 0 : i64, scratch_operands = 3 : i64, tpu.core_type = #tpu.core_type<tc>, window_params = [{transform_indices = @transform_0, window_bounds = array<i64: 1, 3, 1024>}, {pipeline_mode = #tpu.pipeline_mode<synchronous>, transform_indices = @transform_1, window_bounds = array<i64: 32, 32>}, {pipeline_mode = #tpu.pipeline_mode<synchronous>, transform_indices = @transform_2, window_bounds = array<i64: 32, 1>}, {pipeline_mode = #tpu.pipeline_mode<synchronous>, transform_indices = @transform_3, window_bounds = array<i64: 32, 128>}, {pipeline_mode = #tpu.pipeline_mode<synchronous>, transform_indices = @transform_4, window_bounds = array<i64: 32, 1>}, {pipeline_mode = #tpu.pipeline_mode<synchronous>, transform_indices = @transform_5, window_bounds = array<i64: 32, 128>}, {pipeline_mode = #tpu.pipeline_mode<synchronous>, transform_indices = @transform_6, window_bounds = array<i64: 32, 1>}, {pipeline_mode = #tpu.pipeline_mode<synchronous>, transform_indices = @transform_7, window_bounds = array<i64: 32, 128>}, {pipeline_mode = #tpu.pipeline_mode<synchronous>, transform_indices = @transform_8, window_bounds = array<i64: 32, 1>}, {pipeline_mode = #tpu.pipeline_mode<synchronous>, transform_indices = @transform_9, window_bounds = array<i64: 10, 32, 1152>}, {pipeline_mode = #tpu.pipeline_mode<synchronous>, transform_indices = @transform_10, window_bounds = array<i64: 10, 1>}, {transform_indices = @transform_11, window_bounds = array<i64: 1, 10, 1>}]} {
    %cst = arith.constant 0.000000e+00 : f32
    %0 = vector.broadcast %cst : f32 to vector<8x1152xf32>
    %c0 = arith.constant 0 : index
    %c0_0 = arith.constant 0 : index
    %1 = vector.load %arg13[%c0, %c0_0] : memref<8x1152xf32, #tpu.memory_space<vmem>>, vector<8x1152xf32>
    tpu.vector_store %arg13[%c0, %c0_0], %0 {strides = array<i32>} : memref<8x1152xf32, #tpu.memory_space<vmem>>, vector<8x1152xf32>,
    %c0_1 = arith.constant 0 : index
    %c0_2 = arith.constant 0 : index
    %c0_3 = arith.constant 0 : index
    %2 = vector.load %arg1[%c0_1, %c0_2, %c0_3] : memref<1x3x1024xf32, #tpu.memory_space<vmem>>, vector<1x3x1024xf32>
    %3 = vector.shape_cast %2 : vector<1x3x1024xf32> to vector<3x1024xf32>
    %c0_4 = arith.constant 0 : index
    %c0_5 = arith.constant 0 : index
    %4 = vector.load %arg13[%c0_4, %c0_5] : memref<8x1152xf32, #tpu.memory_space<vmem>>, vector<3x1024xf32>
    tpu.vector_store %arg13[%c0_4, %c0_5], %3 {strides = array<i32>} : memref<8x1152xf32, #tpu.memory_space<vmem>>, vector<3x1024xf32>,
    %cst_6 = arith.constant 0.000000e+00 : bf16
    %5 = vector.broadcast %cst_6 : bf16 to vector<32x128xbf16>
    %c0_7 = arith.constant 0 : index
    %c1024 = arith.constant 1024 : index
    %6 = vector.load %arg14[%c0_7, %c1024] : memref<32x1152xbf16, #tpu.memory_space<vmem>>, vector<32x128xbf16>
    tpu.vector_store %arg14[%c0_7, %c1024], %5 {strides = array<i32>} : memref<32x1152xbf16, #tpu.memory_space<vmem>>, vector<32x128xbf16>,
    %cst_8 = arith.constant 0.000000e+00 : bf16
    %7 = vector.broadcast %cst_8 : bf16 to vector<32x128xbf16>
    %c0_9 = arith.constant 0 : index
    %c1024_10 = arith.constant 1024 : index
    %8 = vector.load %arg15[%c0_9, %c1024_10] : memref<32x1152xbf16, #tpu.memory_space<vmem>>, vector<32x128xbf16>
    tpu.vector_store %arg15[%c0_9, %c1024_10], %7 {strides = array<i32>} : memref<32x1152xbf16, #tpu.memory_space<vmem>>, vector<32x128xbf16>,
    %c0_11 = arith.constant 0 : index
    %c0_12 = arith.constant 0 : index
    %9 = vector.load %arg13[%c0_11, %c0_12] : memref<8x1152xf32, #tpu.memory_space<vmem>>, vector<8x1024xf32>
    %c0_13 = arith.constant 0 : index
    %c1 = arith.constant 1 : index
    %10 = vector.load %arg13[%c0_13, %c1] : memref<8x1152xf32, #tpu.memory_space<vmem>>, vector<8x1024xf32>
    %c0_14 = arith.constant 0 : index
    %c32 = arith.constant 32 : index
    %11 = vector.load %arg13[%c0_14, %c32] : memref<8x1152xf32, #tpu.memory_space<vmem>>, vector<8x1024xf32>
    %c0_15 = arith.constant 0 : index
    %c33 = arith.constant 33 : index
    %12 = vector.load %arg13[%c0_15, %c33] : memref<8x1152xf32, #tpu.memory_space<vmem>>, vector<8x1024xf32>
    %13 = tpu.concatenate %9, %10, %11, %12 in 0 : vector<8x1024xf32>, vector<8x1024xf32>, vector<8x1024xf32>, vector<8x1024xf32> -> vector<32x1024xf32>
    %14 = arith.truncf %13 : vector<32x1024xf32> to vector<32x1024xbf16>
    %c0_16 = arith.constant 0 : index
    %c0_17 = arith.constant 0 : index
    %15 = vector.load %arg2[%c0_16, %c0_17] : memref<32x32xbf16, #tpu.memory_space<vmem>>, vector<32x32xbf16>
    %cst_18 = arith.constant dense<0.000000e+00> : vector<32x1024xf32>
    %16 = tpu.matmul %15, %14, %cst_18 {dimension_numbers = #tpu.dot_dimension_numbers<[1], [0], [0], [1], [0, 0, 1, 1], [], []>} : vector<32x32xbf16>, vector<32x1024xbf16>, vector<32x1024xf32> -> vector<32x1024xf32>
    %c0_19 = arith.constant 0 : index
    %c0_20 = arith.constant 0 : index
    %17 = vector.load %arg3[%c0_19, %c0_20] : memref<32x1xf32, #tpu.memory_space<vmem>>, vector<32x1xf32>
    %18 = vector.broadcast %17 : vector<32x1xf32> to vector<32x1024xf32>
    %19 = arith.addf %16, %18 : vector<32x1024xf32>
    %cst_21 = arith.constant 0.000000e+00 : f32
    %20 = vector.broadcast %cst_21 : f32 to vector<32x1024xf32>
    %21 = arith.maximumf %19, %20 : vector<32x1024xf32>
    %22 = arith.truncf %21 : vector<32x1024xf32> to vector<32x1024xbf16>
    %c0_22 = arith.constant 0 : index
    %c0_23 = arith.constant 0 : index
    %23 = vector.load %arg14[%c0_22, %c0_23] : memref<32x1152xbf16, #tpu.memory_space<vmem>>, vector<32x1024xbf16>
    tpu.vector_store %arg14[%c0_22, %c0_23], %22 {strides = array<i32>} : memref<32x1152xbf16, #tpu.memory_space<vmem>>, vector<32x1024xbf16>,
    %c0_24 = arith.constant 0 : index
    %c0_25 = arith.constant 0 : index
    %24 = vector.load %arg14[%c0_24, %c0_25] : memref<32x1152xbf16, #tpu.memory_space<vmem>>, vector<32x1024xbf16>
    %c0_26 = arith.constant 0 : index
    %c1_27 = arith.constant 1 : index
    %25 = vector.load %arg14[%c0_26, %c1_27] : memref<32x1152xbf16, #tpu.memory_space<vmem>>, vector<32x1024xbf16>
    %c0_28 = arith.constant 0 : index
    %c32_29 = arith.constant 32 : index
    %26 = vector.load %arg14[%c0_28, %c32_29] : memref<32x1152xbf16, #tpu.memory_space<vmem>>, vector<32x1024xbf16>
    %c0_30 = arith.constant 0 : index
    %c33_31 = arith.constant 33 : index
    %27 = vector.load %arg14[%c0_30, %c33_31] : memref<32x1152xbf16, #tpu.memory_space<vmem>>, vector<32x1024xbf16>
    %28 = tpu.concatenate %24, %25, %26, %27 in 0 : vector<32x1024xbf16>, vector<32x1024xbf16>, vector<32x1024xbf16>, vector<32x1024xbf16> -> vector<128x1024xbf16>
    %c0_32 = arith.constant 0 : index
    %c0_33 = arith.constant 0 : index
    %29 = vector.load %arg4[%c0_32, %c0_33] : memref<32x128xbf16, #tpu.memory_space<vmem>>, vector<32x128xbf16>
    %cst_34 = arith.constant dense<0.000000e+00> : vector<32x1024xf32>
    %30 = tpu.matmul %29, %28, %cst_34 {dimension_numbers = #tpu.dot_dimension_numbers<[1], [0], [0], [1], [0, 0, 1, 1], [], []>} : vector<32x128xbf16>, vector<128x1024xbf16>, vector<32x1024xf32> -> vector<32x1024xf32>
    %c0_35 = arith.constant 0 : index
    %c0_36 = arith.constant 0 : index
    %31 = vector.load %arg5[%c0_35, %c0_36] : memref<32x1xf32, #tpu.memory_space<vmem>>, vector<32x1xf32>
    %32 = vector.broadcast %31 : vector<32x1xf32> to vector<32x1024xf32>
    %33 = arith.addf %30, %32 : vector<32x1024xf32>
    %cst_37 = arith.constant 0.000000e+00 : f32
    %34 = vector.broadcast %cst_37 : f32 to vector<32x1024xf32>
    %35 = arith.maximumf %33, %34 : vector<32x1024xf32>
    %36 = arith.truncf %35 : vector<32x1024xf32> to vector<32x1024xbf16>
    %c0_38 = arith.constant 0 : index
    %c0_39 = arith.constant 0 : index
    %37 = vector.load %arg15[%c0_38, %c0_39] : memref<32x1152xbf16, #tpu.memory_space<vmem>>, vector<32x1024xbf16>
    tpu.vector_store %arg15[%c0_38, %c0_39], %36 {strides = array<i32>} : memref<32x1152xbf16, #tpu.memory_space<vmem>>, vector<32x1024xbf16>,
    %c0_40 = arith.constant 0 : index
    %c0_41 = arith.constant 0 : index
    %38 = vector.load %arg15[%c0_40, %c0_41] : memref<32x1152xbf16, #tpu.memory_space<vmem>>, vector<32x1024xbf16>
    %c0_42 = arith.constant 0 : index
    %c1_43 = arith.constant 1 : index
    %39 = vector.load %arg15[%c0_42, %c1_43] : memref<32x1152xbf16, #tpu.memory_space<vmem>>, vector<32x1024xbf16>
    %c0_44 = arith.constant 0 : index
    %c32_45 = arith.constant 32 : index
    %40 = vector.load %arg15[%c0_44, %c32_45] : memref<32x1152xbf16, #tpu.memory_space<vmem>>, vector<32x1024xbf16>
    %c0_46 = arith.constant 0 : index
    %c33_47 = arith.constant 33 : index
    %41 = vector.load %arg15[%c0_46, %c33_47] : memref<32x1152xbf16, #tpu.memory_space<vmem>>, vector<32x1024xbf16>
    %42 = tpu.concatenate %38, %39, %40, %41 in 0 : vector<32x1024xbf16>, vector<32x1024xbf16>, vector<32x1024xbf16>, vector<32x1024xbf16> -> vector<128x1024xbf16>
    %c0_48 = arith.constant 0 : index
    %c0_49 = arith.constant 0 : index
    %43 = vector.load %arg6[%c0_48, %c0_49] : memref<32x128xbf16, #tpu.memory_space<vmem>>, vector<32x128xbf16>
    %cst_50 = arith.constant dense<0.000000e+00> : vector<32x1024xf32>
    %44 = tpu.matmul %43, %42, %cst_50 {dimension_numbers = #tpu.dot_dimension_numbers<[1], [0], [0], [1], [0, 0, 1, 1], [], []>} : vector<32x128xbf16>, vector<128x1024xbf16>, vector<32x1024xf32> -> vector<32x1024xf32>
    %c0_51 = arith.constant 0 : index
    %c0_52 = arith.constant 0 : index
    %45 = vector.load %arg7[%c0_51, %c0_52] : memref<32x1xf32, #tpu.memory_space<vmem>>, vector<32x1xf32>
    %46 = vector.broadcast %45 : vector<32x1xf32> to vector<32x1024xf32>
    %47 = arith.addf %44, %46 : vector<32x1024xf32>
    %cst_53 = arith.constant 0.000000e+00 : f32
    %48 = vector.broadcast %cst_53 : f32 to vector<32x1024xf32>
    %49 = arith.maximumf %47, %48 : vector<32x1024xf32>
    %50 = arith.truncf %49 : vector<32x1024xf32> to vector<32x1024xbf16>
    %c0_54 = arith.constant 0 : index
    %c0_55 = arith.constant 0 : index
    %51 = vector.load %arg14[%c0_54, %c0_55] : memref<32x1152xbf16, #tpu.memory_space<vmem>>, vector<32x1024xbf16>
    tpu.vector_store %arg14[%c0_54, %c0_55], %50 {strides = array<i32>} : memref<32x1152xbf16, #tpu.memory_space<vmem>>, vector<32x1024xbf16>,
    %c0_56 = arith.constant 0 : index
    %c0_57 = arith.constant 0 : index
    %52 = vector.load %arg14[%c0_56, %c0_57] : memref<32x1152xbf16, #tpu.memory_space<vmem>>, vector<32x1024xbf16>
    %c0_58 = arith.constant 0 : index
    %c1_59 = arith.constant 1 : index
    %53 = vector.load %arg14[%c0_58, %c1_59] : memref<32x1152xbf16, #tpu.memory_space<vmem>>, vector<32x1024xbf16>
    %c0_60 = arith.constant 0 : index
    %c32_61 = arith.constant 32 : index
    %54 = vector.load %arg14[%c0_60, %c32_61] : memref<32x1152xbf16, #tpu.memory_space<vmem>>, vector<32x1024xbf16>
    %c0_62 = arith.constant 0 : index
    %c33_63 = arith.constant 33 : index
    %55 = vector.load %arg14[%c0_62, %c33_63] : memref<32x1152xbf16, #tpu.memory_space<vmem>>, vector<32x1024xbf16>
    %56 = tpu.concatenate %52, %53, %54, %55 in 0 : vector<32x1024xbf16>, vector<32x1024xbf16>, vector<32x1024xbf16>, vector<32x1024xbf16> -> vector<128x1024xbf16>
    %c0_64 = arith.constant 0 : index
    %c0_65 = arith.constant 0 : index
    %57 = vector.load %arg8[%c0_64, %c0_65] : memref<32x128xbf16, #tpu.memory_space<vmem>>, vector<32x128xbf16>
    %cst_66 = arith.constant dense<0.000000e+00> : vector<32x1024xf32>
    %58 = tpu.matmul %57, %56, %cst_66 {dimension_numbers = #tpu.dot_dimension_numbers<[1], [0], [0], [1], [0, 0, 1, 1], [], []>} : vector<32x128xbf16>, vector<128x1024xbf16>, vector<32x1024xf32> -> vector<32x1024xf32>
    %c0_67 = arith.constant 0 : index
    %c0_68 = arith.constant 0 : index
    %59 = vector.load %arg9[%c0_67, %c0_68] : memref<32x1xf32, #tpu.memory_space<vmem>>, vector<32x1xf32>
    %60 = vector.broadcast %59 : vector<32x1xf32> to vector<32x1024xf32>
    %61 = arith.addf %58, %60 : vector<32x1024xf32>
    %cst_69 = arith.constant 0.000000e+00 : f32
    %62 = vector.broadcast %cst_69 : f32 to vector<32x1024xf32>
    %63 = arith.maximumf %61, %62 : vector<32x1024xf32>
    %64 = arith.truncf %63 : vector<32x1024xf32> to vector<32x1024xbf16>
    %c0_70 = arith.constant 0 : index
    %c0_71 = arith.constant 0 : index
    %65 = vector.load %arg15[%c0_70, %c0_71] : memref<32x1152xbf16, #tpu.memory_space<vmem>>, vector<32x1024xbf16>
    tpu.vector_store %arg15[%c0_70, %c0_71], %64 {strides = array<i32>} : memref<32x1152xbf16, #tpu.memory_space<vmem>>, vector<32x1024xbf16>,
    %c0_72 = arith.constant 0 : index
    %c0_73 = arith.constant 0 : index
    %66 = vector.load %arg15[%c0_72, %c0_73] : memref<32x1152xbf16, #tpu.memory_space<vmem>>, vector<32x1152xbf16>
    %67 = arith.extf %66 : vector<32x1152xbf16> to vector<32x1152xf32>
    %c0_74 = arith.constant 0 : index
    %c0_75 = arith.constant 0 : index
    %c0_76 = arith.constant 0 : index
    %68 = vector.load %arg10[%c0_74, %c0_75, %c0_76] : memref<10x32x1152xbf16, #tpu.memory_space<vmem>>, vector<1x32x1152xbf16>
    %69 = vector.shape_cast %68 : vector<1x32x1152xbf16> to vector<32x1152xbf16>
    %70 = arith.extf %69 : vector<32x1152xbf16> to vector<32x1152xf32>
    %71 = arith.mulf %70, %67 : vector<32x1152xf32>
    %cst_77 = arith.constant dense<0.000000e+00> : vector<1152xf32>
    %72 = vector.multi_reduction <add>, %71, %cst_77 [0] : vector<32x1152xf32> to vector<1152xf32>
    %73 = vector.shape_cast %72 : vector<1152xf32> to vector<1x1152xf32>
    %c1_78 = arith.constant 1 : index
    %c0_79 = arith.constant 0 : index
    %c0_80 = arith.constant 0 : index
    %74 = vector.load %arg10[%c1_78, %c0_79, %c0_80] : memref<10x32x1152xbf16, #tpu.memory_space<vmem>>, vector<1x32x1152xbf16>
    %75 = vector.shape_cast %74 : vector<1x32x1152xbf16> to vector<32x1152xbf16>
    %76 = arith.extf %75 : vector<32x1152xbf16> to vector<32x1152xf32>
    %77 = arith.mulf %76, %67 : vector<32x1152xf32>
    %cst_81 = arith.constant dense<0.000000e+00> : vector<1152xf32>
    %78 = vector.multi_reduction <add>, %77, %cst_81 [0] : vector<32x1152xf32> to vector<1152xf32>
    %79 = vector.shape_cast %78 : vector<1152xf32> to vector<1x1152xf32>
    %c2 = arith.constant 2 : index
    %c0_82 = arith.constant 0 : index
    %c0_83 = arith.constant 0 : index
    %80 = vector.load %arg10[%c2, %c0_82, %c0_83] : memref<10x32x1152xbf16, #tpu.memory_space<vmem>>, vector<1x32x1152xbf16>
    %81 = vector.shape_cast %80 : vector<1x32x1152xbf16> to vector<32x1152xbf16>
    %82 = arith.extf %81 : vector<32x1152xbf16> to vector<32x1152xf32>
    %83 = arith.mulf %82, %67 : vector<32x1152xf32>
    %cst_84 = arith.constant dense<0.000000e+00> : vector<1152xf32>
    %84 = vector.multi_reduction <add>, %83, %cst_84 [0] : vector<32x1152xf32> to vector<1152xf32>
    %85 = vector.shape_cast %84 : vector<1152xf32> to vector<1x1152xf32>
    %c3 = arith.constant 3 : index
    %c0_85 = arith.constant 0 : index
    %c0_86 = arith.constant 0 : index
    %86 = vector.load %arg10[%c3, %c0_85, %c0_86] : memref<10x32x1152xbf16, #tpu.memory_space<vmem>>, vector<1x32x1152xbf16>
    %87 = vector.shape_cast %86 : vector<1x32x1152xbf16> to vector<32x1152xbf16>
    %88 = arith.extf %87 : vector<32x1152xbf16> to vector<32x1152xf32>
    %89 = arith.mulf %88, %67 : vector<32x1152xf32>
    %cst_87 = arith.constant dense<0.000000e+00> : vector<1152xf32>
    %90 = vector.multi_reduction <add>, %89, %cst_87 [0] : vector<32x1152xf32> to vector<1152xf32>
    %91 = vector.shape_cast %90 : vector<1152xf32> to vector<1x1152xf32>
    %c4 = arith.constant 4 : index
    %c0_88 = arith.constant 0 : index
    %c0_89 = arith.constant 0 : index
    %92 = vector.load %arg10[%c4, %c0_88, %c0_89] : memref<10x32x1152xbf16, #tpu.memory_space<vmem>>, vector<1x32x1152xbf16>
    %93 = vector.shape_cast %92 : vector<1x32x1152xbf16> to vector<32x1152xbf16>
    %94 = arith.extf %93 : vector<32x1152xbf16> to vector<32x1152xf32>
    %95 = arith.mulf %94, %67 : vector<32x1152xf32>
    %cst_90 = arith.constant dense<0.000000e+00> : vector<1152xf32>
    %96 = vector.multi_reduction <add>, %95, %cst_90 [0] : vector<32x1152xf32> to vector<1152xf32>
    %97 = vector.shape_cast %96 : vector<1152xf32> to vector<1x1152xf32>
    %c5 = arith.constant 5 : index
    %c0_91 = arith.constant 0 : index
    %c0_92 = arith.constant 0 : index
    %98 = vector.load %arg10[%c5, %c0_91, %c0_92] : memref<10x32x1152xbf16, #tpu.memory_space<vmem>>, vector<1x32x1152xbf16>
    %99 = vector.shape_cast %98 : vector<1x32x1152xbf16> to vector<32x1152xbf16>
    %100 = arith.extf %99 : vector<32x1152xbf16> to vector<32x1152xf32>
    %101 = arith.mulf %100, %67 : vector<32x1152xf32>
    %cst_93 = arith.constant dense<0.000000e+00> : vector<1152xf32>
    %102 = vector.multi_reduction <add>, %101, %cst_93 [0] : vector<32x1152xf32> to vector<1152xf32>
    %103 = vector.shape_cast %102 : vector<1152xf32> to vector<1x1152xf32>
    %c6 = arith.constant 6 : index
    %c0_94 = arith.constant 0 : index
    %c0_95 = arith.constant 0 : index
    %104 = vector.load %arg10[%c6, %c0_94, %c0_95] : memref<10x32x1152xbf16, #tpu.memory_space<vmem>>, vector<1x32x1152xbf16>
    %105 = vector.shape_cast %104 : vector<1x32x1152xbf16> to vector<32x1152xbf16>
    %106 = arith.extf %105 : vector<32x1152xbf16> to vector<32x1152xf32>
    %107 = arith.mulf %106, %67 : vector<32x1152xf32>
    %cst_96 = arith.constant dense<0.000000e+00> : vector<1152xf32>
    %108 = vector.multi_reduction <add>, %107, %cst_96 [0] : vector<32x1152xf32> to vector<1152xf32>
    %109 = vector.shape_cast %108 : vector<1152xf32> to vector<1x1152xf32>
    %c7 = arith.constant 7 : index
    %c0_97 = arith.constant 0 : index
    %c0_98 = arith.constant 0 : index
    %110 = vector.load %arg10[%c7, %c0_97, %c0_98] : memref<10x32x1152xbf16, #tpu.memory_space<vmem>>, vector<1x32x1152xbf16>
    %111 = vector.shape_cast %110 : vector<1x32x1152xbf16> to vector<32x1152xbf16>
    %112 = arith.extf %111 : vector<32x1152xbf16> to vector<32x1152xf32>
    %113 = arith.mulf %112, %67 : vector<32x1152xf32>
    %cst_99 = arith.constant dense<0.000000e+00> : vector<1152xf32>
    %114 = vector.multi_reduction <add>, %113, %cst_99 [0] : vector<32x1152xf32> to vector<1152xf32>
    %115 = vector.shape_cast %114 : vector<1152xf32> to vector<1x1152xf32>
    %c8 = arith.constant 8 : index
    %c0_100 = arith.constant 0 : index
    %c0_101 = arith.constant 0 : index
    %116 = vector.load %arg10[%c8, %c0_100, %c0_101] : memref<10x32x1152xbf16, #tpu.memory_space<vmem>>, vector<1x32x1152xbf16>
    %117 = vector.shape_cast %116 : vector<1x32x1152xbf16> to vector<32x1152xbf16>
    %118 = arith.extf %117 : vector<32x1152xbf16> to vector<32x1152xf32>
    %119 = arith.mulf %118, %67 : vector<32x1152xf32>
    %cst_102 = arith.constant dense<0.000000e+00> : vector<1152xf32>
    %120 = vector.multi_reduction <add>, %119, %cst_102 [0] : vector<32x1152xf32> to vector<1152xf32>
    %121 = vector.shape_cast %120 : vector<1152xf32> to vector<1x1152xf32>
    %c9 = arith.constant 9 : index
    %c0_103 = arith.constant 0 : index
    %c0_104 = arith.constant 0 : index
    %122 = vector.load %arg10[%c9, %c0_103, %c0_104] : memref<10x32x1152xbf16, #tpu.memory_space<vmem>>, vector<1x32x1152xbf16>
    %123 = vector.shape_cast %122 : vector<1x32x1152xbf16> to vector<32x1152xbf16>
    %124 = arith.extf %123 : vector<32x1152xbf16> to vector<32x1152xf32>
    %125 = arith.mulf %124, %67 : vector<32x1152xf32>
    %cst_105 = arith.constant dense<0.000000e+00> : vector<1152xf32>
    %126 = vector.multi_reduction <add>, %125, %cst_105 [0] : vector<32x1152xf32> to vector<1152xf32>
    %127 = vector.shape_cast %126 : vector<1152xf32> to vector<1x1152xf32>
    %128 = tpu.concatenate %73, %79, %85, %91, %97, %103, %109, %115, %121, %127 in 0 : vector<1x1152xf32>, vector<1x1152xf32>, vector<1x1152xf32>, vector<1x1152xf32>, vector<1x1152xf32>, vector<1x1152xf32>, vector<1x1152xf32>, vector<1x1152xf32>, vector<1x1152xf32>, vector<1x1152xf32> -> vector<10x1152xf32>
    %cst_106 = arith.constant dense<0.000000e+00> : vector<10xf32>
    %129 = vector.multi_reduction <add>, %128, %cst_106 [1] : vector<10x1152xf32> to vector<10xf32>
    %130 = vector.shape_cast %129 : vector<10xf32> to vector<10x1xf32>
    %c0_107 = arith.constant 0 : index
    %c0_108 = arith.constant 0 : index
    %131 = vector.load %arg11[%c0_107, %c0_108] : memref<10x1xf32, #tpu.memory_space<vmem>>, vector<10x1xf32>
    %132 = arith.addf %130, %131 : vector<10x1xf32>
    %c0_109 = arith.constant 0 : index
    %c0_110 = arith.constant 0 : index
    %c0_111 = arith.constant 0 : index
    %133 = vector.load %arg12[%c0_109, %c0_110, %c0_111] : memref<1x10x1xf32, #tpu.memory_space<vmem>>, vector<1x10x1xf32>
    %134 = vector.shape_cast %133 : vector<1x10x1xf32> to vector<10x1xf32>
    %135 = vector.shape_cast %132 : vector<10x1xf32> to vector<1x10x1xf32>
    tpu.vector_store %arg12[%c0_109, %c0_110, %c0_111], %135 {strides = array<i32>} : memref<1x10x1xf32, #tpu.memory_space<vmem>>, vector<1x10x1xf32>,
    return
  }
  func.func @transform_0(%arg0: i32) -> (i32, i32, i32) {
    %c0_i32 = arith.constant 0 : i32
    %c0_i32_0 = arith.constant 0 : i32
    %c0_i32_1 = arith.constant 0 : i32
    return %arg0, %c0_i32, %c0_i32_0 : i32, i32, i32
  }
  func.func @transform_1(%arg0: i32) -> (i32, i32) {
    %c0_i32 = arith.constant 0 : i32
    %c0_i32_0 = arith.constant 0 : i32
    %c0_i32_1 = arith.constant 0 : i32
    return %c0_i32, %c0_i32_0 : i32, i32
  }
  func.func @transform_2(%arg0: i32) -> (i32, i32) {
    %c0_i32 = arith.constant 0 : i32
    %c0_i32_0 = arith.constant 0 : i32
    %c0_i32_1 = arith.constant 0 : i32
    return %c0_i32, %c0_i32_0 : i32, i32
  }
  func.func @transform_3(%arg0: i32) -> (i32, i32) {
    %c0_i32 = arith.constant 0 : i32
    %c0_i32_0 = arith.constant 0 : i32
    %c0_i32_1 = arith.constant 0 : i32
    return %c0_i32, %c0_i32_0 : i32, i32
  }
  func.func @transform_4(%arg0: i32) -> (i32, i32) {
    %c0_i32 = arith.constant 0 : i32
    %c0_i32_0 = arith.constant 0 : i32
    %c0_i32_1 = arith.constant 0 : i32
    return %c0_i32, %c0_i32_0 : i32, i32
  }
  func.func @transform_5(%arg0: i32) -> (i32, i32) {
    %c0_i32 = arith.constant 0 : i32
    %c0_i32_0 = arith.constant 0 : i32
    %c0_i32_1 = arith.constant 0 : i32
    return %c0_i32, %c0_i32_0 : i32, i32
  }
  func.func @transform_6(%arg0: i32) -> (i32, i32) {
    %c0_i32 = arith.constant 0 : i32
    %c0_i32_0 = arith.constant 0 : i32
    %c0_i32_1 = arith.constant 0 : i32
    return %c0_i32, %c0_i32_0 : i32, i32
  }
  func.func @transform_7(%arg0: i32) -> (i32, i32) {
    %c0_i32 = arith.constant 0 : i32
    %c0_i32_0 = arith.constant 0 : i32
    %c0_i32_1 = arith.constant 0 : i32
    return %c0_i32, %c0_i32_0 : i32, i32
  }
  func.func @transform_8(%arg0: i32) -> (i32, i32) {
    %c0_i32 = arith.constant 0 : i32
    %c0_i32_0 = arith.constant 0 : i32
    %c0_i32_1 = arith.constant 0 : i32
    return %c0_i32, %c0_i32_0 : i32, i32
  }
  func.func @transform_9(%arg0: i32) -> (i32, i32, i32) {
    %c0_i32 = arith.constant 0 : i32
    %c0_i32_0 = arith.constant 0 : i32
    %c0_i32_1 = arith.constant 0 : i32
    %c0_i32_2 = arith.constant 0 : i32
    return %c0_i32, %c0_i32_0, %c0_i32_1 : i32, i32, i32
  }
  func.func @transform_10(%arg0: i32) -> (i32, i32) {
    %c0_i32 = arith.constant 0 : i32
    %c0_i32_0 = arith.constant 0 : i32
    %c0_i32_1 = arith.constant 0 : i32
    return %c0_i32, %c0_i32_0 : i32, i32
  }
  func.func @transform_11(%arg0: i32) -> (i32, i32, i32) {
    %c0_i32 = arith.constant 0 : i32
    %c0_i32_0 = arith.constant 0 : i32
    %c0_i32_1 = arith.constant 0 : i32
    return %arg0, %c0_i32, %c0_i32_0 : i32, i32, i32
  }
}

</mosaic_0001>

<bundles_post_ra>
// kernel: _forward_logits_impl.1
= control target key start
LH: loop header
LB: loop body
LE: loop exit
PB: predicated region body
PF: predicated region fallthrough
CT: control target
= control target key end

     0   :  { %16 = vsyncpa [#allocation6], 0  ;;  %s4862_s17 = smov 0   ;;  %s7618_s0 = inlined_call_operand.vmem [shape: f32[2,3,1024], index: 0, kind: input, shape index: {}]   ;;  %s7619_s1 = inlined_call_operand.vmem [shape: bf16[32,32], index: 1, kind: input, shape index: {}]   ;;  %s7620_s2 = inlined_call_operand.vmem [shape: f32[32,1], index: 2, kind: input, shape index: {}]   ;;  %s7621_s3 = inlined_call_operand.vmem [shape: bf16[32,128], index: 3, kind: input, shape index: {}]   ;;  %s7622_s4 = inlined_call_operand.vmem [shape: f32[32,1], index: 4, kind: input, shape index: {}]   ;;  %s7623_s5 = inlined_call_operand.vmem [shape: bf16[32,128], index: 5, kind: input, shape index: {}]   ;;  %s7624_s6 = inlined_call_operand.vmem [shape: f32[32,1], index: 6, kind: input, shape index: {}]   ;;  %s7625_s7 = inlined_call_operand.vmem [shape: bf16[32,128], index: 7, kind: input, shape index: {}]   ;;  %s7626_s8 = inlined_call_operand.vmem [shape: f32[32,1], index: 8, kind: input, shape index: {}]   ;;  %s7627_s9 = inlined_call_operand.hbm [shape: bf16[10,32,1152], index: 9, kind: input, shape index: {}]   ;;  %s7628_s10 = inlined_call_operand.vmem [shape: f32[10,1], index: 10, kind: input, shape index: {}]   ;;  %s7629_s11 = inlined_call_operand.vmem [shape: f32[2,10,1], index: 11, kind: output, shape index: {}]  }
   0x1 LB: > { %s4868_s18 = sadd.s32 4294967295, %s4792_s17   ;;  %p4605_p0 = scmp.ge.s32.totalorder %s4792_s17, 1  ;;  %s4792_s17 = sphi %s4862_s17, %s22_s17  }
   0x2   : > { %p289_p1 = scmp.lt.s32.totalorder %s4792_s17, 3  ;;  %s4794_s19 = smov [#allocation5]  }
   0x3   : > { %s325_s20 = sshll.u32 %s4794_s19, 4  ;;  %p7630_p3 = scmp.eq.s32.totalorder %s4868_s18, 0  ;;  %s326_s20 = int_to_ptr.vmem [resolvable:$true] %s325_s20 }
   0x4   : > { %p4872_p2 = pnand %p4605_p0, %p289_p1  ;;  %s4754_s25 = scalar_lea.hbm %s7627_s9, 23040 }
   0x5   : > { %p4755_p6 = scmp.ne.s32.totalorder %s7627_s9, %s4754_s25  ;;  %p4761_p10 = scmp.lt.u32.totalorder %s4754_s25, %s7627_s9 }
   0x6   : > { %s7803_s21 = scalar_select %p4872_p2, 1, 0 }
   0x7   : > { %p4638_p4 = pneg %p4872_p2 }
   0x9   : > { %p4881_p5 = pnand %p7630_p3, %p4638_p4 }
   0xb   : > { %p4756_p7 = pneg %p4881_p5 }
   0xd   : > { %p4757_p8 = pnand %p4756_p7, %p4755_p6 }
   0xf   : > { %p4758_p9 = pneg %p4757_p8 }
  0x11   : > { %p4763_p11 = pnand %p4761_p10, %p4758_p9 }
  0x13   : > { %4766 = shalt.err (!%p4763_p11)
}
  0x14   : > { %s4767_s30 = scalar_lea.vmem %s326_s20, 23040  ;;  %p4775_p1 = scmp.lt.s32.totalorder %s326_s20, %s326_s20 }
  0x15   : > { %p4768_p12 = scmp.ne.s32.totalorder %s326_s20, %s4767_s30  ;;  %p4776_p4 = scmp.lt.s32.totalorder %s4767_s30, %s4767_s30 }
  0x17   : > { %p4770_p13 = pnand %p4768_p12, %p4756_p7  ;;  %p4777_p3 = por %p4776_p4, %p4775_p1 }
  0x19   : > { %p4771_p0 = pneg %p4770_p13 }
  0x1b   : > { %p4778_p2 = pnand %p4777_p3, %p4771_p0 }
  0x1d   : > { %4781 = shalt.err (!%p4778_p2)
}
  0x1e   : > { %s4795_s12 = smov 576   ;;  %s4796_s13 = smov 36  }
  0x1f   : > { %4641 = dma.hbm_to_vmem [thread:$0]  (!%p4881_p5), %s7627_s9, 23040, %s326_s20, [#allocation6], %s4795_s12, %s4795_s12, %s4796_s13  }
  0x20   : > { %p7805_p6 = scmp.ne.s32.totalorder %s7803_s21, 0 }
  0x22   : > { %352 = sbr.rel (%p7805_p6) target bundleno = 2174 (0x87e), region = 64 }
  0x29   : > { %p7806_p8 = scmp.eq.s32.totalorder %s4868_s18, 0 }
  0x2b   : > { %4787 = dma.done.wait (%p7806_p8), [#allocation6], 23040   ;;  %p7807_p7 = pmov %p7806_p8 }
  0x2c   : > { %p392_p2 = scmp.lt.s32.totalorder %s4868_s18, 1  ;;  %v4797_v0 = vmov 0.0   ;;  %s4798_s22 = smov 96   ;;  %v4800_v15 = vmov 0   ;;  %v591_v24 = vld [vmem:[%s7620_s2] sm:$0xff]  ;;  %v592_v25 = vld [vmem:[%s7620_s2 + $0x8] sm:$0xff] }
  0x2d   : > { %4789 = vsyncadd (%p7807_p7), [#allocation6], 4294944256  ;;  %404 = vst [vmem:[#allocation2 + $0x8] sm:$0xff] %v4797_v0  ;;  %s4799_s23 = smov 127   ;;  %664 = vmatprep.mubr.bf16.mxu0 %v4800_v15  ;;  %717 = vmatprep.mubr.bf16.mxu1 %v4800_v15  ;;  %s4801_s24 = smov 95   ;;  %v593_v26 = vld [vmem:[%s7620_s2 + $0x10] sm:$0xff] }
  0x2e   : > { %405 = vst [vmem:[#allocation2 + $0x10] sm:$0xff] %v4797_v0  ;;  %403 = vst [vmem:[#allocation2] sm:$0xff] %v4797_v0  ;;  %s8431_s18 = smov (!%p392_p2, %s4868_s18), 1  ;;  %4721 = vset.pattern.permute.xlu0 %v4800_v15  ;;  %4720 = vset.pattern.permute.xlu1 %v4800_v15  ;;  %v594_v27 = vld [vmem:[%s7620_s2 + $0x18] sm:$0xff]  ;;  %vm484_vm0 = vcmask 1039360   ;;  %vm554_vm1 = vcmask 777216  }
  0x2f   : > { %406 = vst [vmem:[#allocation2 + $0x18] sm:$0xff] %v4797_v0  ;;  %407 = vst [vmem:[#allocation2 + $0x20] sm:$0xff] %v4797_v0  ;;  %s4632_s16 = sshll.u32 %s8431_s18, 5  ;;  %vm519_vm2 = vcmask 785408   ;;  %v4987_v57 = vld [vmem:[%s7619_s1] sm:$0xff]   ;;  %vm625_vm3 = vcmask 261120  }
  0x30   : > { %408 = vst [vmem:[#allocation2 + $0x28] sm:$0xff] %v4797_v0  ;;  %409 = vst [vmem:[#allocation2 + $0x30] sm:$0xff] %v4797_v0  ;;  %s396_s21 = scalar_lea.vmem %s7618_s0, %s4632_s16  ;;  %vm4420_vm4 = vcmask 1040384   ;;  %vm4430_vm5 = vcmask 1041408   ;;  %vm4440_vm6 = vcmask 1042432   ;;  %vm4450_vm7 = vcmask 1043456  }
  0x31   : > { %410 = vst [vmem:[#allocation2 + $0x38] sm:$0xff] %v4797_v0  ;;  %v412_v1 = vld [vmem:[%s396_s21] sm:$0x77]  ;;  %v413_v2 = vld [vmem:[%s396_s21 + $0x8] sm:$0x77]  ;;  %vm4460_vm8 = vcmask 1044480  }
  0x32   : > { %v415_v3 = vld [vmem:[%s396_s21 + $0x18] sm:$0x77]  ;;  %v420_v4 = vcombine.high %v412_v1, %v412_v1  ;;  %v421_v5 = vcombine.high %v413_v2, %v413_v2  ;;  %430 = vst [vmem:[#allocation2 + $0x10] sm:$0x7] %v413_v2  ;;  %428 = vst [vmem:[#allocation2] sm:$0x7] %v412_v1 }
  0x33   : > { %v423_v6 = vcombine.high %v415_v3, %v415_v3  ;;  %434 = vst [vmem:[#allocation2 + $0x30] sm:$0x7] %v415_v3  ;;  %v414_v7 = vld [vmem:[%s396_s21 + $0x10] sm:$0x77]  ;;  %vm4470_vm9 = vcmask 1045504   ;;  %vm4480_vm10 = vcmask 1046528  }
  0x34   : > { %v422_v8 = vcombine.high %v414_v7, %v414_v7  ;;  %432 = vst [vmem:[#allocation2 + $0x20] sm:$0x7] %v414_v7  ;;  %429 = vst [vmem:[#allocation2 + $0x8] sm:$0x7] %v420_v4  ;;  %s4633_s28 = sshll.u32 %s8431_s18, 4  ;;  %vm4534_vm11 = vcmask 1024  }
  0x35   : > { %431 = vst [vmem:[#allocation2 + $0x18] sm:$0x7] %v421_v5  ;;  %435 = vst [vmem:[#allocation2 + $0x38] sm:$0x7] %v423_v6  ;;  %s7575_s13 = scalar_lea.vmem %s7629_s11, %s4633_s28  ;;  %vm4532_vm12 = vcmask 7168  }
  0x36   : > { %433 = vst [vmem:[#allocation2 + $0x28] sm:$0x7] %v422_v8 }
  0x39   : > { %v4915_v9 = vld [vmem:[#allocation2 + $0x10] sm:$0xff]  ;;  %v4917_v11 = vld [vmem:[#allocation2] sm:$0xff] }
  0x3a   : > { %v4941_v19 = vld [vmem:[#allocation2 + $0x30] sm:$0xff] }
  0x3b   : > { %v449_v10 = vld [vmem:[#allocation2 + $0x8] sm:$0xff]  ;;  %v4932_v16 = vld [vmem:[#allocation2 + $0x20] sm:$0xff] }
  0x3c   : > { %v4919_v12 = vld [vmem:[#allocation2 + $0x18] sm:$0xff]  ;;  %v4670_v13 = vpack.i.bf16 %v4915_v9, %v449_v10 }
  0x3d   : > { %v4665_v14 = vpack.i.bf16 %v4919_v12, %v4917_v11  ;;  %v4934_v17 = vld [vmem:[#allocation2 + $0x28] sm:$0xff]  ;;  %v4695_v20 = vpack.i.bf16 %v4932_v16, %v4919_v12  ;;  %v4952_v22 = vld [vmem:[#allocation2 + $0x38] sm:$0xff] }
  0x3e   : > { %4671 = vrot.lane.b32.xlu1 %v4670_v13, %s4798_s22  ;;  %4661 = vrot.lane.b32.xlu0 %v4670_v13, %s4799_s23  ;;  %v4685_v18 = vpack.i.bf16 %v4934_v17, %v4932_v16  ;;  %v4700_v21 = vpack.i.bf16 %v4941_v19, %v4934_v17  ;;  %v4705_v23 = vpack.i.bf16 %v4797_v0, %v4952_v22 }
  0x42   : > { %4676 = vrot.lane.b32.xlu1 %v4670_v13, %s4801_s24  ;;  %4666 = vrot.lane.b32.xlu0 %v4665_v14, %s4799_s23 }
  0x46   : > { %536 = vrot.lane.b32.xlu1 %v4917_v11, %s4801_s24  ;;  %4681 = vrot.lane.b32.xlu0 %v4665_v14, %s4798_s22 }
  0x4a   : > { %478 = vrot.lane.b32.xlu1 %v4941_v19, %s4799_s23  ;;  %4686 = vrot.lane.b32.xlu0 %v4685_v18, %s4799_s23 }
  0x4e   : > { %4696 = vrot.lane.b32.xlu1 %v4695_v20, %s4801_s24  ;;  %4691 = vrot.lane.b32.xlu0 %v4685_v18, %s4798_s22 }
  0x52   : > { %4701 = vrot.lane.b32.xlu1 %v4700_v21, %s4801_s24  ;;  %513 = vrot.lane.b32.xlu0 %v4941_v19, %s4798_s22  ;;  %v4747_v21 = vld [vmem:[%s7619_s1 + $0x8] sm:$0xff]  }
  0x56   : > { %4706 = vrot.lane.b32.xlu0 %v4705_v23, %s4799_s23  ;;  %4711 = vrot.lane.b32.xlu1 %v4705_v23, %s4798_s22 }
  0x5a   : > { %4716 = vrot.lane.b32.xlu0 %v4705_v23, %s4801_s24  ;;  %597 = vperm.xlu1 %4720, %v591_v24  }
  0x5e   : > { %602 = vperm.xlu0 %4721, %v592_v25   ;;  %607 = vperm.xlu1 %4720, %v593_v26  }
  0x62   : > { %612 = vperm.xlu1 %4720, %v594_v27  }
  0xb0   : > { %v4973_v28 = vpop.permute.xlu1 %4671  ;;  %v4662_v29 = vpop.permute.xlu0 %4661 }
  0xb1   : > { %v4664_v30 = vunpack.i.h.bf16 %v4662_v29  ;;  %v4663_v31 = vunpack.i.l.bf16 %v4662_v29  ;;  %v4674_v32 = vunpack.i.h.bf16 %v4973_v28  ;;  %v4673_v33 = vunpack.i.l.bf16 %v4973_v28 }
  0xb3   : > { %v486_v34 = vsel %vm484_vm0, %v4663_v31, %v4664_v30  ;;  %v521_v42 = vsel %vm519_vm2, %v4673_v33, %v4674_v32 }
  0xb4   : > { %v4677_v35 = vpop.permute.xlu1 %4676  ;;  %v4667_v36 = vpop.permute.xlu0 %4666  ;;  %v572_v37 = vpack.c.bf16 %v486_v34, %v449_v10 }
  0xb5   : > { %v4679_v38 = vunpack.i.h.bf16 %v4677_v35  ;;  %v4678_v39 = vunpack.i.l.bf16 %v4677_v35  ;;  %v4668_v40 = vunpack.i.l.bf16 %v4667_v36  ;;  %v4669_v49 = vunpack.i.h.bf16 %v4667_v36 }
  0xb6   : > { %632 = vmatprep.subr.bf16.mxu0 %v572_v37 }
  0xb7   : > { %v485_v41 = vsel %vm484_vm0, %v4668_v40, %v4663_v31  ;;  %v556_v43 = vsel %vm554_vm1, %v4678_v39, %v4679_v38  ;;  %v487_v58 = vsel %vm484_vm0, %v4664_v30, %v4669_v49 }
  0xb8   : > { %v537_v44 = vpop.permute.xlu1 %536  ;;  %v4682_v45 = vpop.permute.xlu0 %4681  ;;  %v571_v46 = vpack.c.bf16 %v485_v41, %v4917_v11  ;;  %v580_v47 = vpack.c.bf16 %v556_v43, %v521_v42  ;;  %v573_v7 = vpack.c.bf16 %v487_v58, %v4915_v9 }
  0xb9   : > { %v4683_v48 = vunpack.i.l.bf16 %v4682_v45  ;;  %v555_v50 = vsel %vm554_vm1, %v537_v44, %v4678_v39  ;;  %v4684_v62 = vunpack.i.h.bf16 %v4682_v45 }
  0xba   : > { %633 = vmatpush1.bf16.msra.mxu0 %v571_v46 }
  0xbb   : > { %634 = vmatprep.subr.bf16.mxu0 %v580_v47  ;;  %v520_v51 = vsel %vm519_vm2, %v4683_v48, %v4673_v33 }
  0xbc   : > { %v479_v52 = vpop.permute.xlu1 %478  ;;  %v4687_v53 = vpop.permute.xlu0 %4686  ;;  %v579_v54 = vpack.c.bf16 %v555_v50, %v520_v51 }
  0xbd   : > { %v4689_v55 = vunpack.i.h.bf16 %v4687_v53  ;;  %v4688_v56 = vunpack.i.l.bf16 %v4687_v53 }
  0xbe   : > { %635 = vmatpush1.bf16.msra.mxu0 %v579_v54 }
  0xbf   : > { %v489_v59 = vsel %vm484_vm0, %v4688_v56, %v4689_v55  ;;  %v488_v60 = vsel %vm484_vm0, %v4669_v49, %v4688_v56  ;;  %v490_v61 = vsel %vm484_vm0, %v4689_v55, %v479_v52 }
  0xc0   : > { %v4697_v63 = vpop.permute.xlu1 %4696  ;;  %v4692_v0 = vpop.permute.xlu0 %4691  ;;  %v574_v1 = vpack.c.bf16 %v488_v60, %v4919_v12  ;;  %v576_v2 = vpack.c.bf16 %v490_v61, %v4934_v17  ;;  %v575_v3 = vpack.c.bf16 %v489_v59, %v4932_v16  ;;  %v522_v16 = vsel %vm519_vm2, %v4674_v32, %v4684_v62 }
  0xc1   : > { %v4699_v4 = vunpack.i.h.bf16 %v4697_v63  ;;  %v4698_v5 = vunpack.i.l.bf16 %v4697_v63  ;;  %v4693_v6 = vunpack.i.l.bf16 %v4692_v0  ;;  %4616 = vmatmul.mubr.msk.bf16.vlgmr.msra.gmra.mrb[0].mxu0 %vm625_vm3, %v4987_v57  ;;  %v4694_v8 = vunpack.i.h.bf16 %v4692_v0 }
  0xc2   : > { %685 = vmatprep.subr.bf16.mxu1 %v574_v1  ;;  %738 = vmatprep.subr.bf16.mxu0 %v576_v2 }
  0xc3   : > { %686 = vmatpush1.bf16.msra.mxu1 %v573_v7  ;;  %739 = vmatpush1.bf16.msra.mxu0 %v575_v3  ;;  %v523_v10 = vsel %vm519_vm2, %v4684_v62, %v4693_v6  ;;  %v558_v11 = vsel %vm554_vm1, %v4698_v5, %v4699_v4  ;;  %v557_v17 = vsel %vm554_vm1, %v4679_v38, %v4698_v5 }
  0xc4   : > { %v4702_v12 = vpop.permute.xlu1 %4701  ;;  %v514_v13 = vpop.permute.xlu0 %513  ;;  %v582_v14 = vpack.c.bf16 %v558_v11, %v523_v10  ;;  %674 = vmatprep.mubr.bf16.mxu0 %v4800_v15  ;;  %v581_v20 = vpack.c.bf16 %v557_v17, %v522_v16  ;;  %v524_v23 = vsel %vm519_vm2, %v4693_v6, %v4694_v8 }
  0xc5   : > { %v4704_v18 = vunpack.i.h.bf16 %v4702_v12  ;;  %v4703_v9 = vunpack.i.l.bf16 %v4702_v12  ;;  %v525_v25 = vsel %vm519_vm2, %v4694_v8, %v514_v13 }
  0xc6   : > { %687 = vmatprep.subr.bf16.mxu1 %v582_v14 }
  0xc7   : > { %v559_v24 = vsel %vm554_vm1, %v4699_v4, %v4703_v9  ;;  %688 = vmatpush1.bf16.msra.mxu1 %v581_v20  ;;  %v560_v26 = vsel %vm554_vm1, %v4703_v9, %v4704_v18 }
  0xc8   : > { %v4707_v27 = vpop.permute.xlu0 %4706  ;;  %v584_v28 = vpack.c.bf16 %v560_v26, %v525_v25  ;;  %v583_v29 = vpack.c.bf16 %v559_v24, %v524_v23  ;;  %v4712_v30 = vpop.permute.xlu1 %4711 }
  0xc9   : > { %v4709_v31 = vunpack.i.h.bf16 %v4707_v27  ;;  %v4708_v32 = vunpack.i.l.bf16 %v4707_v27  ;;  %4617 = vmatmul.mubr.msk.bf16.gmra.mrb[4].mxu0 %vm625_vm3, %v4747_v21  ;;  %v4714_v33 = vunpack.i.h.bf16 %v4712_v30  ;;  %v4713_v34 = vunpack.i.l.bf16 %v4712_v30 }
  0xca   : > { %4618 = vmatmul.mubr.msk.bf16.vlgmr.msra.gmra.mrb[0].mxu1 %vm625_vm3, %v4987_v57  ;;  %740 = vmatprep.subr.bf16.mxu0 %v584_v28 }
  0xcb   : > { %v491_v35 = vsel %vm484_vm0, %v479_v52, %v4708_v32  ;;  %741 = vmatpush1.bf16.msra.mxu0 %v583_v29  ;;  %v492_v36 = vsel %vm484_vm0, %v4708_v32, %v4709_v31  ;;  %770 = vmatprep.mubr.bf16.mxu0 %v4800_v15  ;;  %v526_v40 = vsel %vm519_vm2, %v514_v13, %v4713_v34 }
  0xcc   : > { %v578_v37 = vpack.c.bf16 %v492_v36, %v4952_v22  ;;  %v577_v38 = vpack.c.bf16 %v491_v35, %v4941_v19  ;;  %v4717_v39 = vpop.permute.xlu0 %4716  ;;  %727 = vmatprep.mubr.bf16.mxu1 %v4800_v15  ;;  %v527_v43 = vsel %vm519_vm2, %v4713_v34, %v4714_v33 }
  0xcd   : > { %v4719_v41 = vunpack.i.h.bf16 %v4717_v39  ;;  %v4718_v42 = vunpack.i.l.bf16 %v4717_v39 }
  0xce   : > { %791 = vmatprep.subr.bf16.mxu1 %v578_v37 }
  0xcf   : > { %792 = vmatpush1.bf16.msra.mxu1 %v577_v38  ;;  %v561_v44 = vsel %vm554_vm1, %v4704_v18, %v4718_v42  ;;  %v562_v45 = vsel %vm554_vm1, %v4718_v42, %v4719_v41 }
  0xd0   : > { %v586_v46 = vpack.c.bf16 %v562_v45, %v527_v43  ;;  %v585_v47 = vpack.c.bf16 %v561_v44, %v526_v40 }
  0xd1   : > { %4620 = vmatmul.mubr.msk.bf16.vlgmr.msra.gmra.mrb[8].mxu0 %vm625_vm3, %v4987_v57 }
  0xd2   : > { %4619 = vmatmul.mubr.msk.bf16.gmra.mrb[4].mxu1 %vm625_vm3, %v4747_v21  ;;  %793 = vmatprep.subr.bf16.mxu1 %v586_v46 }
  0xd3   : > { %794 = vmatpush1.bf16.msra.mxu1 %v585_v47  ;;  %780 = vmatprep.mubr.bf16.mxu0 %v4800_v15 }
  0xd4   : > { %823 = vmatprep.mubr.bf16.mxu1 %v4800_v15 }
  0xd9   : > { %4621 = vmatmul.mubr.msk.bf16.gmra.mrb[12].mxu0 %vm625_vm3, %v4747_v21  ;;  %v5036_v19 = vpop.permute.xlu1 %597 }
  0xda   : > { %4622 = vmatmul.mubr.msk.bf16.vlgmr.msra.gmra.mrb[8].mxu1 %vm625_vm3, %v4987_v57  ;;  %1239 = vmatprep.mubr.bf16.mxu0 %v4800_v15 }
  0xdb   : > { %833 = vmatprep.mubr.bf16.mxu1 %v4800_v15 }
  0xdd   : > { %v5038_v48 = vpop.permute.xlu0 %602  ;;  %v5041_v52 = vpop.permute.xlu1 %607 }
  0xe1   : > { %v5048_v0 = vpop.permute.xlu1 %612 }
  0xe2   : > { %4623 = vmatmul.mubr.msk.bf16.gmra.mrb[12].mxu1 %vm625_vm3, %v4747_v21 }
  0xe3   : > { %1292 = vmatprep.mubr.bf16.mxu1 %v4800_v15 }
 0x194   : > { %v666_v22 = vpop.f32.mrb[0].mxu0 }
 0x195   : > { %v668_v49 = vpop.f32.mrb[1].mxu0  ;;  %v667_v50 = vadd.f32 %v666_v22, %v5036_v19 }
 0x196   : > { %v670_v51 = vpop.f32.mrb[2].mxu0  ;;  %v669_v53 = vadd.f32 %v668_v49, %v5036_v19 }
 0x197   : > { %v671_v54 = vadd.f32 %v670_v51, %v5038_v48  ;;  %v844_v55 = vmax.f32 %v667_v50, 0.0  ;;  %v672_v56 = vpop.f32.mrb[3].mxu0 }
 0x198   : > { %v673_v57 = vadd.f32 %v672_v56, %v5038_v48  ;;  %v845_v58 = vmax.f32 %v669_v53, 0.0 }
 0x199   : > { %v852_v59 = vmax.f32 %v671_v54, 0.0 }
 0x19a   : > { %v853_v60 = vmax.f32 %v673_v57, 0.0 }
 0x19b   : > { %v876_v61 = vpack.c.bf16 %v852_v59, %v844_v55 }
 0x19c   : > { %v5046_v62 = vpack.c.bf16 %v853_v60, %v845_v58  ;;  %v676_v63 = vpop.f32.mrb[4].mxu0 }
 0x19d   : > { %v677_v1 = vadd.f32 %v676_v63, %v5041_v52  ;;  %v678_v2 = vpop.f32.mrb[5].mxu0  ;;  %v719_v3 = vpop.f32.mrb[0].mxu1  ;;  %960 = vrot.lane.b32.xlu0 %v876_v61, %s4799_s23 }
 0x19e   : > { %v679_v4 = vadd.f32 %v678_v2, %v5041_v52  ;;  %v720_v5 = vadd.f32 %v719_v3, %v5036_v19  ;;  %v680_v6 = vpop.f32.mrb[6].mxu0  ;;  %v721_v7 = vpop.f32.mrb[1].mxu1  ;;  %1207 = vmatprep.subr.bf16.mxu0 %v5046_v62 }
 0x19f   : > { %v860_v8 = vmax.f32 %v677_v1, 0.0  ;;  %v722_v10 = vadd.f32 %v721_v7, %v5036_v19  ;;  %v682_v11 = vpop.f32.mrb[7].mxu0  ;;  %v723_v12 = vpop.f32.mrb[2].mxu1  ;;  %1208 = vmatpush1.bf16.msra.mxu0 %v876_v61  ;;  %v681_v13 = vadd.f32 %v680_v6, %v5048_v0 }
 0x1a0   : > { %v861_v14 = vmax.f32 %v679_v4, 0.0  ;;  %v683_v16 = vadd.f32 %v682_v11, %v5048_v0  ;;  %v724_v17 = vadd.f32 %v723_v12, %v5038_v48  ;;  %v725_v18 = vpop.f32.mrb[3].mxu1  ;;  %v846_v21 = vmax.f32 %v720_v5, 0.0 }
 0x1a1   : > { %v726_v9 = vadd.f32 %v725_v18, %v5038_v48  ;;  %1029 = vrot.lane.b32.xlu0 %v876_v61, %s4798_s22  ;;  %v868_v20 = vmax.f32 %v681_v13, 0.0  ;;  %v847_v25 = vmax.f32 %v722_v10, 0.0 }
 0x1a2   : > { %v869_v23 = vmax.f32 %v683_v16, 0.0  ;;  %v854_v24 = vmax.f32 %v724_v17, 0.0 }
 0x1a3   : > { %v855_v26 = vmax.f32 %v726_v9, 0.0  ;;  %v5061_v27 = vpack.c.bf16 %v868_v20, %v860_v8 }
 0x1a4   : > { %v5063_v28 = vpack.c.bf16 %v869_v23, %v861_v14  ;;  %v878_v29 = vpack.c.bf16 %v854_v24, %v846_v21  ;;  %v772_v30 = vpop.f32.mrb[8].mxu0 }
 0x1a5   : > { %v5065_v31 = vpack.c.bf16 %v855_v26, %v847_v25  ;;  %v773_v32 = vadd.f32 %v772_v30, %v5036_v19  ;;  %v729_v33 = vpop.f32.mrb[4].mxu1  ;;  %v774_v34 = vpop.f32.mrb[9].mxu0  ;;  %1098 = vrot.lane.b32.xlu0 %v876_v61, %s4801_s24 }
 0x1a6   : > { %v730_v35 = vadd.f32 %v729_v33, %v5041_v52  ;;  %v775_v36 = vadd.f32 %v774_v34, %v5036_v19  ;;  %v731_v37 = vpop.f32.mrb[5].mxu1  ;;  %964 = vrot.lane.b32.xlu1 %v878_v29, %s4799_s23  ;;  %v776_v38 = vpop.f32.mrb[10].mxu0  ;;  %1209 = vmatprep.subr.bf16.mxu0 %v5063_v28 }
 0x1a7   : > { %v732_v39 = vadd.f32 %v731_v37, %v5041_v52  ;;  %v777_v40 = vadd.f32 %v776_v38, %v5038_v48  ;;  %v733_v41 = vpop.f32.mrb[6].mxu1  ;;  %v778_v42 = vpop.f32.mrb[11].mxu0  ;;  %1210 = vmatpush1.bf16.msra.mxu0 %v5061_v27  ;;  %1260 = vmatprep.subr.bf16.mxu1 %v5065_v31  ;;  %v848_v46 = vmax.f32 %v773_v32, 0.0 }
 0x1a8   : > { %v734_v43 = vadd.f32 %v733_v41, %v5048_v0  ;;  %v779_v44 = vadd.f32 %v778_v42, %v5038_v48  ;;  %v735_v45 = vpop.f32.mrb[7].mxu1  ;;  %1261 = vmatpush1.bf16.msra.mxu1 %v878_v29  ;;  %v862_v49 = vmax.f32 %v730_v35, 0.0  ;;  %v849_v50 = vmax.f32 %v775_v36, 0.0 }
 0x1a9   : > { %v856_v47 = vmax.f32 %v777_v40, 0.0  ;;  %v736_v22 = vadd.f32 %v735_v45, %v5048_v0  ;;  %962 = vrot.lane.b32.xlu0 %v5046_v62, %s4799_s23  ;;  %v863_v54 = vmax.f32 %v732_v39, 0.0 }
 0x1aa   : > { %v870_v51 = vmax.f32 %v734_v43, 0.0  ;;  %v857_v53 = vmax.f32 %v779_v44, 0.0  ;;  %1033 = vrot.lane.b32.xlu1 %v878_v29, %s4798_s22 }
 0x1ab   : > { %v5083_v55 = vpack.c.bf16 %v856_v47, %v848_v46  ;;  %v871_v56 = vmax.f32 %v736_v22, 0.0 }
 0x1ac   : > { %v886_v57 = vpack.c.bf16 %v870_v51, %v862_v49  ;;  %v5085_v58 = vpack.c.bf16 %v857_v53, %v849_v50  ;;  %v782_v59 = vpop.f32.mrb[12].mxu0 }
 0x1ad   : > { %v887_v60 = vpack.c.bf16 %v871_v56, %v863_v54  ;;  %v783_v61 = vadd.f32 %v782_v59, %v5041_v52  ;;  %v784_v63 = vpop.f32.mrb[13].mxu0  ;;  %v825_v1 = vpop.f32.mrb[8].mxu1  ;;  %1031 = vrot.lane.b32.xlu0 %v5046_v62, %s4798_s22 }
 0x1ae   : > { %v785_v2 = vadd.f32 %v784_v63, %v5041_v52  ;;  %v826_v3 = vadd.f32 %v825_v1, %v5036_v19  ;;  %v827_v4 = vpop.f32.mrb[9].mxu1  ;;  %1102 = vrot.lane.b32.xlu1 %v878_v29, %s4801_s24  ;;  %v786_v5 = vpop.f32.mrb[14].mxu0 }
 0x1af   : > { %v828_v6 = vadd.f32 %v827_v4, %v5036_v19  ;;  %v787_v7 = vadd.f32 %v786_v5, %v5048_v0  ;;  %v788_v8 = vpop.f32.mrb[15].mxu0  ;;  %v829_v10 = vpop.f32.mrb[10].mxu1  ;;  %1262 = vmatprep.subr.bf16.mxu1 %v887_v60  ;;  %v864_v14 = vmax.f32 %v783_v61, 0.0 }
 0x1b0   : > { %v789_v11 = vadd.f32 %v788_v8, %v5048_v0  ;;  %v830_v12 = vadd.f32 %v829_v10, %v5038_v48  ;;  %v831_v13 = vpop.f32.mrb[11].mxu1  ;;  %1263 = vmatpush1.bf16.msra.mxu1 %v886_v57  ;;  %v865_v18 = vmax.f32 %v785_v2, 0.0  ;;  %v850_v19 = vmax.f32 %v826_v3, 0.0 }
 0x1b1   : > { %v872_v16 = vmax.f32 %v787_v7, 0.0  ;;  %v832_v17 = vadd.f32 %v831_v13, %v5038_v48  ;;  %1100 = vrot.lane.b32.xlu0 %v5046_v62, %s4801_s24  ;;  %v851_v21 = vmax.f32 %v828_v6, 0.0 }
 0x1b2   : > { %v873_v9 = vmax.f32 %v789_v11, 0.0  ;;  %v858_v20 = vmax.f32 %v830_v12, 0.0  ;;  %966 = vrot.lane.b32.xlu1 %v5065_v31, %s4799_s23 }
 0x1b3   : > { %v5102_v23 = vpack.c.bf16 %v872_v16, %v864_v14  ;;  %v859_v24 = vmax.f32 %v832_v17, 0.0 }
 0x1b4   : > { %v5104_v25 = vpack.c.bf16 %v873_v9, %v865_v18  ;;  %v5106_v26 = vpack.c.bf16 %v858_v20, %v850_v19 }
 0x1b5   : > { %v5108_v29 = vpack.c.bf16 %v859_v24, %v851_v21  ;;  %v835_v48 = vpop.f32.mrb[12].mxu1  ;;  %982 = vrot.lane.b32.xlu0 %v886_v57, %s4799_s23 }
 0x1b6   : > { %v836_v62 = vadd.f32 %v835_v48, %v5041_v52  ;;  %v837_v30 = vpop.f32.mrb[13].mxu1  ;;  %1035 = vrot.lane.b32.xlu1 %v5065_v31, %s4798_s22 }
 0x1b7   : > { %v838_v32 = vadd.f32 %v837_v30, %v5041_v52  ;;  %v839_v33 = vpop.f32.mrb[14].mxu1  ;;  %v1171_v52 = vld [vmem:[%s7622_s4] sm:$0xff] }
 0x1b8   : > { %v840_v34 = vadd.f32 %v839_v33, %v5048_v0  ;;  %v841_v35 = vpop.f32.mrb[15].mxu1  ;;  %v866_v37 = vmax.f32 %v836_v62, 0.0 }
 0x1b9   : > { %v842_v36 = vadd.f32 %v841_v35, %v5048_v0  ;;  %1051 = vrot.lane.b32.xlu0 %v886_v57, %s4798_s22  ;;  %v867_v39 = vmax.f32 %v838_v32, 0.0  ;;  %v1173_v0 = vld [vmem:[%s7622_s4 + $0x10] sm:$0xff] }
 0x1ba   : > { %v874_v38 = vmax.f32 %v840_v34, 0.0  ;;  %1104 = vrot.lane.b32.xlu1 %v5065_v31, %s4801_s24  ;;  %v1174_v31 = vld [vmem:[%s7622_s4 + $0x18] sm:$0xff] }
 0x1bb   : > { %v875_v40 = vmax.f32 %v842_v36, 0.0  ;;  %v5249_v36 = vld [vmem:[%s7621_s3] sm:$0xff]  }
 0x1bc   : > { %v5120_v41 = vpack.c.bf16 %v874_v38, %v866_v37 }
 0x1bd   : > { %v5122_v42 = vpack.c.bf16 %v875_v40, %v867_v39  ;;  %1120 = vrot.lane.b32.xlu0 %v886_v57, %s4801_s24 }
 0x1be   : > { %978 = vrot.lane.b32.xlu1 %v5061_v27, %s4799_s23 }
 0x1c1   : > { %984 = vrot.lane.b32.xlu0 %v887_v60, %s4799_s23 }
 0x1c2   : > { %1047 = vrot.lane.b32.xlu1 %v5061_v27, %s4798_s22 }
 0x1c5   : > { %1053 = vrot.lane.b32.xlu0 %v887_v60, %s4798_s22 }
 0x1c6   : > { %1116 = vrot.lane.b32.xlu1 %v5061_v27, %s4801_s24  ;;  %v1172_v27 = vld [vmem:[%s7622_s4 + $0x8] sm:$0xff] }
 0x1c9   : > { %1122 = vrot.lane.b32.xlu0 %v887_v60, %s4801_s24 }
 0x1ca   : > { %980 = vrot.lane.b32.xlu1 %v5063_v28, %s4799_s23 }
 0x1cd   : > { %968 = vrot.lane.b32.xlu0 %v5083_v55, %s4799_s23 }
 0x1ce   : > { %1049 = vrot.lane.b32.xlu1 %v5063_v28, %s4798_s22 }
 0x1d1   : > { %1037 = vrot.lane.b32.xlu0 %v5083_v55, %s4798_s22 }
 0x1d2   : > { %1118 = vrot.lane.b32.xlu1 %v5063_v28, %s4801_s24 }
 0x1d5   : > { %1106 = vrot.lane.b32.xlu0 %v5083_v55, %s4801_s24 }
 0x1d6   : > { %972 = vrot.lane.b32.xlu1 %v5106_v26, %s4799_s23 }
 0x1d9   : > { %970 = vrot.lane.b32.xlu0 %v5085_v58, %s4799_s23 }
 0x1da   : > { %986 = vrot.lane.b32.xlu1 %v5102_v23, %s4799_s23 }
 0x1dd   : > { %974 = vrot.lane.b32.xlu0 %v5108_v29, %s4799_s23 }
 0x1de   : > { %4723 = vrot.lane.b32.xlu1 %v4800_v15, %s4799_s23 }
 0x1e1   : > { %1041 = vrot.lane.b32.xlu0 %v5106_v26, %s4798_s22 }
 0x1e2   : > { %1055 = vrot.lane.b32.xlu1 %v5102_v23, %s4798_s22 }
 0x1e5   : > { %4728 = vrot.lane.b32.xlu0 %v4800_v15, %s4798_s22 }
 0x1e6   : > { %1039 = vrot.lane.b32.xlu1 %v5085_v58, %s4798_s22 }
 0x1e9   : > { %1059 = vrot.lane.b32.xlu0 %v5120_v41, %s4798_s22 }
 0x1ea   : > { %1124 = vrot.lane.b32.xlu1 %v5102_v23, %s4801_s24 }
 0x1ed   : > { %988 = vrot.lane.b32.xlu0 %v5104_v25, %s4799_s23 }
 0x1ee   : > { %1043 = vrot.lane.b32.xlu1 %v5108_v29, %s4798_s22 }
 0x1f1   : > { %992 = vrot.lane.b32.xlu0 %v5122_v42, %s4799_s23 }
 0x1f2   : > { %990 = vrot.lane.b32.xlu1 %v5120_v41, %s4799_s23 }
 0x1f5   : > { %1108 = vrot.lane.b32.xlu0 %v5085_v58, %s4801_s24 }
 0x1f6   : > { %1110 = vrot.lane.b32.xlu1 %v5106_v26, %s4801_s24 }
 0x1f9   : > { %1112 = vrot.lane.b32.xlu0 %v5108_v29, %s4801_s24 }
 0x1fa   : > { %1114 = vrot.lane.b32.xlu1 %v4800_v15, %s4801_s24 }
 0x1fd   : > { %1126 = vrot.lane.b32.xlu0 %v5104_v25, %s4801_s24 }
 0x1fe   : > { %1057 = vrot.lane.b32.xlu1 %v5104_v25, %s4798_s22 }
 0x201   : > { %1130 = vrot.lane.b32.xlu0 %v5122_v42, %s4801_s24 }
 0x202   : > { %1061 = vrot.lane.b32.xlu1 %v5122_v42, %s4798_s22 }
 0x205   : > { %1177 = vperm.xlu0 %4721, %v1171_v52  }
 0x206   : > { %1128 = vrot.lane.b32.xlu1 %v5120_v41, %s4801_s24 }
 0x209   : > { %1187 = vperm.xlu0 %4721, %v1173_v0  }
 0x20a   : > { %1132 = vrot.lane.b32.xlu1 %v4800_v15, %s4801_s24 }
 0x20e   : > { %1182 = vperm.xlu1 %4720, %v1172_v27  }
 0x20f   : > { %v961_v28 = vpop.permute.xlu0 %960 }
 0x212   : > { %1192 = vperm.xlu1 %4720, %v1174_v31  }
 0x213   : > { %v1030_v43 = vpop.permute.xlu0 %1029 }
 0x217   : > { %v1099_v44 = vpop.permute.xlu0 %1098 }
 0x218   : > { %v965_v45 = vpop.permute.xlu1 %964 }
 0x21b   : > { %v963_v46 = vpop.permute.xlu0 %962 }
 0x21c   : > { %v5208_v47 = vpop.permute.xlu1 %1033  ;;  %v998_v22 = vsel %vm484_vm0, %v963_v46, %v965_v45  ;;  %v997_v49 = vsel %vm484_vm0, %v961_v28, %v963_v46  ;;  %v5273_v28 = vld [vmem:[%s7621_s3 + $0x8] sm:$0xff]  }
 0x21d   : > { %1211 = vmatprep.subr.bf16.mxu0 %v998_v22 }
 0x21e   : > { %1212 = vmatpush1.bf16.msra.mxu0 %v997_v49 }
 0x21f   : > { %v1032_v50 = vpop.permute.xlu0 %1031 }
 0x220   : > { %v5212_v51 = vpop.permute.xlu1 %1102  ;;  %v1067_v11 = vsel %vm519_vm2, %v1032_v50, %v5208_v47  ;;  %v1066_v16 = vsel %vm519_vm2, %v1030_v43, %v1032_v50 }
 0x223   : > { %v1101_v53 = vpop.permute.xlu0 %1100 }
 0x224   : > { %v967_v54 = vpop.permute.xlu1 %966  ;;  %v1136_v21 = vsel %vm554_vm1, %v1101_v53, %v5212_v51  ;;  %v1135_v48 = vsel %vm554_vm1, %v1099_v44, %v1101_v53 }
 0x225   : > { %v999_v14 = vsel %vm484_vm0, %v965_v45, %v967_v54 }
 0x227   : > { %v983_v56 = vpop.permute.xlu0 %982 }
 0x228   : > { %v1036_v57 = vpop.permute.xlu1 %1035 }
 0x229   : > { %v1068_v40 = vsel %vm519_vm2, %v5208_v47, %v1036_v57 }
 0x22b   : > { %v5214_v59 = vpop.permute.xlu0 %1051 }
 0x22c   : > { %v5216_v60 = vpop.permute.xlu1 %1104 }
 0x22d   : > { %v1137_v44 = vsel %vm554_vm1, %v5212_v51, %v5216_v60 }
 0x22f   : > { %v5218_v61 = vpop.permute.xlu0 %1120 }
 0x230   : > { %v979_v63 = vpop.permute.xlu1 %978 }
 0x233   : > { %v985_v1 = vpop.permute.xlu0 %984 }
 0x234   : > { %v1048_v2 = vpop.permute.xlu1 %1047  ;;  %v1007_v34 = vsel %vm484_vm0, %v983_v56, %v985_v1 }
 0x237   : > { %v1054_v3 = vpop.permute.xlu0 %1053 }
 0x238   : > { %v1117_v4 = vpop.permute.xlu1 %1116 }
 0x23b   : > { %v5220_v5 = vpop.permute.xlu0 %1122 }
 0x23c   : > { %v981_v6 = vpop.permute.xlu1 %980  ;;  %v1145_v22 = vsel %vm554_vm1, %v5218_v61, %v5220_v5 }
 0x23d   : > { %v1006_v7 = vsel %vm484_vm0, %v981_v6, %v983_v56  ;;  %v1005_v8 = vsel %vm484_vm0, %v979_v63, %v981_v6 }
 0x23e   : > { %1213 = vmatprep.subr.bf16.mxu0 %v1006_v7 }
 0x23f   : > { %v969_v10 = vpop.permute.xlu0 %968  ;;  %1214 = vmatpush1.bf16.msra.mxu0 %v1005_v8 }
 0x240   : > { %v1050_v12 = vpop.permute.xlu1 %1049  ;;  %1215 = vmatprep.subr.bf16.mxu0 %v1067_v11  ;;  %v1000_v13 = vsel %vm484_vm0, %v967_v54, %v969_v10 }
 0x241   : > { %1264 = vmatprep.subr.bf16.mxu1 %v1000_v13  ;;  %v1075_v18 = vsel %vm519_vm2, %v1050_v12, %v5214_v59  ;;  %v1074_v9 = vsel %vm519_vm2, %v1048_v2, %v1050_v12 }
 0x242   : > { %1265 = vmatpush1.bf16.msra.mxu1 %v999_v14 }
 0x243   : > { %v5229_v17 = vpop.permute.xlu0 %1037  ;;  %1216 = vmatpush1.bf16.msra.mxu0 %v1066_v16 }
 0x244   : > { %v1119_v19 = vpop.permute.xlu1 %1118  ;;  %1217 = vmatprep.subr.bf16.mxu0 %v1075_v18  ;;  %v1069_v38 = vsel %vm519_vm2, %v1036_v57, %v5229_v17 }
 0x245   : > { %v1144_v30 = vsel %vm554_vm1, %v1119_v19, %v5218_v61  ;;  %v1143_v35 = vsel %vm554_vm1, %v1117_v4, %v1119_v19 }
 0x247   : > { %v5234_v20 = vpop.permute.xlu0 %1106  ;;  %1218 = vmatpush1.bf16.msra.mxu0 %v1074_v9 }
 0x248   : > { %v5238_v24 = vpop.permute.xlu1 %972  ;;  %1219 = vmatprep.subr.bf16.mxu0 %v1136_v21 }
 0x24b   : > { %v971_v62 = vpop.permute.xlu0 %970  ;;  %1220 = vmatpush1.bf16.msra.mxu0 %v1135_v48 }
 0x24c   : > { %v987_v32 = vpop.permute.xlu1 %986  ;;  %1221 = vmatprep.subr.bf16.mxu0 %v1144_v30  ;;  %v1002_v31 = vsel %vm484_vm0, %v971_v62, %v5238_v24  ;;  %v1001_v45 = vsel %vm484_vm0, %v969_v10, %v971_v62 }
 0x24d   : > { %v1008_v33 = vsel %vm484_vm0, %v985_v1, %v987_v32 }
 0x24e   : > { %1266 = vmatprep.subr.bf16.mxu1 %v1008_v33 }
 0x24f   : > { %1267 = vmatpush1.bf16.msra.mxu1 %v1007_v34  ;;  %v975_v37 = vpop.permute.xlu0 %974  ;;  %1222 = vmatpush1.bf16.msra.mxu0 %v1143_v35 }
 0x250   : > { %v5253_v39 = vpop.permute.xlu1 %4723  ;;  %1268 = vmatprep.subr.bf16.mxu1 %v1069_v38  ;;  %1313 = vmatprep.subr.bf16.mxu0 %v5085_v58  ;;  %v1076_v58 = vsel %vm519_vm2, %v5214_v59, %v1054_v3 }
 0x251   : > { %v4725_v51 = vunpack.i.l.bf16 %v5253_v39 }
 0x252   : > { %1240 = vmatmul.mubr.bf16.vlgmr.msra.gmra.mrb[16].mxu0 %v5249_v36 }
 0x253   : > { %1269 = vmatpush1.bf16.msra.mxu1 %v1068_v40  ;;  %v5259_v52 = vpop.permute.xlu0 %1041  ;;  %1314 = vmatpush1.bf16.msra.mxu0 %v5083_v55  ;;  %v1004_v59 = vsel %vm484_vm0, %v975_v37, %v4725_v51 }
 0x254   : > { %v5262_v0 = vpop.permute.xlu1 %1055  ;;  %1315 = vmatprep.subr.bf16.mxu0 %v5104_v25  ;;  %1249 = vmatprep.mubr.bf16.mxu0 %v4800_v15  ;;  %v1138_v25 = vsel %vm554_vm1, %v5216_v60, %v5234_v20  ;;  %v4726_v60 = vunpack.i.h.bf16 %v5253_v39 }
 0x255   : > { %v1077_v27 = vsel %vm519_vm2, %v1054_v3, %v5262_v0 }
 0x256   : > { %1270 = vmatprep.subr.bf16.mxu1 %v1077_v27 }
 0x257   : > { %1271 = vmatpush1.bf16.msra.mxu1 %v1076_v58  ;;  %v5275_v55 = vpop.permute.xlu0 %4728  ;;  %1316 = vmatpush1.bf16.msra.mxu0 %v5102_v23 }
 0x258   : > { %v1040_v43 = vpop.permute.xlu1 %1039  ;;  %1272 = vmatprep.subr.bf16.mxu1 %v1138_v25  ;;  %1317 = vmatprep.subr.bf16.mxu0 %v1002_v31  ;;  %v4730_v63 = vunpack.i.l.bf16 %v5275_v55  ;;  %v4731_v11 = vunpack.i.h.bf16 %v5275_v55 }
 0x25a   : > { %1250 = vmatmul.mubr.bf16.gmra.mrb[20].mxu0 %v5273_v28 }
 0x25b   : > { %1273 = vmatpush1.bf16.msra.mxu1 %v1137_v44  ;;  %v1060_v23 = vpop.permute.xlu0 %1059  ;;  %1318 = vmatpush1.bf16.msra.mxu0 %v1001_v45 }
 0x25c   : > { %v5288_v46 = vpop.permute.xlu1 %1124  ;;  %1345 = vmatprep.mubr.bf16.mxu0 %v4800_v15 }
 0x25d   : > { %v1146_v47 = vsel %vm554_vm1, %v5220_v5, %v5288_v46 }
 0x25e   : > { %1274 = vmatprep.subr.bf16.mxu1 %v1146_v47 }
 0x25f   : > { %1275 = vmatpush1.bf16.msra.mxu1 %v1145_v22  ;;  %v989_v49 = vpop.permute.xlu0 %988 }
 0x260   : > { %v1044_v50 = vpop.permute.xlu1 %1043  ;;  %1366 = vmatprep.subr.bf16.mxu1 %v5108_v29  ;;  %v1009_v57 = vsel %vm484_vm0, %v987_v32, %v989_v49  ;;  %v1071_v29 = vsel %vm519_vm2, %v1040_v43, %v5259_v52 }
 0x261   : > { %v1073_v4 = vsel %vm519_vm2, %v1044_v50, %v4730_v63  ;;  %v1072_v10 = vsel %vm519_vm2, %v5259_v52, %v1044_v50 }
 0x262   : > { %1293 = vmatmul.mubr.bf16.vlgmr.msra.gmra.mrb[16].mxu1 %v5249_v36 }
 0x263   : > { %1367 = vmatpush1.bf16.msra.mxu1 %v5106_v26  ;;  %1302 = vmatprep.mubr.bf16.mxu1 %v4800_v15  ;;  %v993_v53 = vpop.permute.xlu0 %992 }
 0x264   : > { %v991_v54 = vpop.permute.xlu1 %990  ;;  %1368 = vmatprep.subr.bf16.mxu1 %v5122_v42  ;;  %v1003_v42 = vsel %vm484_vm0, %v5238_v24, %v975_v37  ;;  %v1012_v1 = vsel %vm484_vm0, %v993_v53, %v4726_v60 }
 0x265   : > { %v1010_v56 = vsel %vm484_vm0, %v989_v49, %v991_v54  ;;  %v1011_v3 = vsel %vm484_vm0, %v991_v54, %v993_v53 }
 0x266   : > { %1319 = vmatprep.subr.bf16.mxu0 %v1010_v56 }
 0x267   : > { %1369 = vmatpush1.bf16.msra.mxu1 %v5120_v41  ;;  %1320 = vmatpush1.bf16.msra.mxu0 %v1009_v57  ;;  %v1109_v61 = vpop.permute.xlu0 %1108  ;;  %v1070_v41 = vsel %vm519_vm2, %v5229_v17, %v1040_v43 }
 0x268   : > { %v1111_v26 = vpop.permute.xlu1 %1110  ;;  %1321 = vmatprep.subr.bf16.mxu0 %v1071_v29  ;;  %1370 = vmatprep.subr.bf16.mxu1 %v1004_v59  ;;  %v1139_v18 = vsel %vm554_vm1, %v5234_v20, %v1109_v61 }
 0x269   : > { %v1140_v12 = vsel %vm554_vm1, %v1109_v61, %v1111_v26 }
 0x26a   : > { %1303 = vmatmul.mubr.bf16.gmra.mrb[20].mxu1 %v5273_v28 }
 0x26b   : > { %1371 = vmatpush1.bf16.msra.mxu1 %v1003_v42  ;;  %1322 = vmatpush1.bf16.msra.mxu0 %v1070_v41  ;;  %v1113_v5 = vpop.permute.xlu0 %1112 }
 0x26c   : > { %v1115_v2 = vpop.permute.xlu1 %1114  ;;  %1372 = vmatprep.subr.bf16.mxu1 %v1012_v1  ;;  %1398 = vmatprep.mubr.bf16.mxu1 %v4800_v15  ;;  %v1141_v48 = vsel %vm554_vm1, %v1111_v26, %v1113_v5 }
 0x26d   : > { %v1142_v19 = vsel %vm554_vm1, %v1113_v5, %v1115_v2 }
 0x26f   : > { %1373 = vmatpush1.bf16.msra.mxu1 %v1011_v3  ;;  %v1127_v17 = vpop.permute.xlu0 %1126 }
 0x270   : > { %v1058_v6 = vpop.permute.xlu1 %1057  ;;  %1374 = vmatprep.subr.bf16.mxu1 %v1073_v4  ;;  %v1147_v24 = vsel %vm554_vm1, %v5288_v46, %v1127_v17 }
 0x271   : > { %v1079_v7 = vsel %vm519_vm2, %v1058_v6, %v1060_v23  ;;  %v1078_v8 = vsel %vm519_vm2, %v5262_v0, %v1058_v6 }
 0x272   : > { %1323 = vmatprep.subr.bf16.mxu0 %v1079_v7 }
 0x273   : > { %1324 = vmatpush1.bf16.msra.mxu0 %v1078_v8  ;;  %1375 = vmatpush1.bf16.msra.mxu1 %v1072_v10  ;;  %v1131_v62 = vpop.permute.xlu0 %1130 }
 0x274   : > { %v1062_v13 = vpop.permute.xlu1 %1061  ;;  %1325 = vmatprep.subr.bf16.mxu0 %v1140_v12 }
 0x275   : > { %v1081_v14 = vsel %vm519_vm2, %v1062_v13, %v4731_v11  ;;  %v1080_v16 = vsel %vm519_vm2, %v1060_v23, %v1062_v13 }
 0x276   : > { %1376 = vmatprep.subr.bf16.mxu1 %v1081_v14 }
 0x277   : > { %1326 = vmatpush1.bf16.msra.mxu0 %v1139_v18  ;;  %1377 = vmatpush1.bf16.msra.mxu1 %v1080_v16 }
 0x278   : > { %v1129_v9 = vpop.permute.xlu1 %1128  ;;  %1378 = vmatprep.subr.bf16.mxu1 %v1142_v19 }
 0x279   : > { %v1148_v21 = vsel %vm554_vm1, %v1127_v17, %v1129_v9  ;;  %v1149_v32 = vsel %vm554_vm1, %v1129_v9, %v1131_v62 }
 0x27a   : > { %1327 = vmatprep.subr.bf16.mxu0 %v1148_v21 }
 0x27b   : > { %1328 = vmatpush1.bf16.msra.mxu0 %v1147_v24  ;;  %1379 = vmatpush1.bf16.msra.mxu1 %v1141_v48 }
 0x27c   : > { %v1133_v30 = vpop.permute.xlu1 %1132 }
 0x27d   : > { %v1150_v20 = vsel %vm554_vm1, %v1131_v62, %v1133_v30 }
 0x27e   : > { %1346 = vmatmul.mubr.bf16.vlgmr.msra.gmra.mrb[24].mxu0 %v5249_v36  ;;  %1380 = vmatprep.subr.bf16.mxu1 %v1150_v20 }
 0x27f   : > { %1381 = vmatpush1.bf16.msra.mxu1 %v1149_v32  ;;  %1355 = vmatprep.mubr.bf16.mxu0 %v4800_v15 }
 0x282   : > { %1399 = vmatmul.mubr.bf16.vlgmr.msra.gmra.mrb[24].mxu1 %v5249_v36 }
 0x283   : > { %1408 = vmatprep.mubr.bf16.mxu1 %v4800_v15 }
 0x284   : > { %v5346_v33 = vpop.permute.xlu0 %1177 }
 0x286   : > { %1356 = vmatmul.mubr.bf16.gmra.mrb[28].mxu0 %v5273_v28 }
 0x287   : > { %1811 = vmatprep.mubr.bf16.mxu0 %v4800_v15 }
 0x288   : > { %v5354_v31 = vpop.permute.xlu0 %1187 }
 0x28a   : > { %1409 = vmatmul.mubr.bf16.gmra.mrb[28].mxu1 %v5273_v28 }
 0x28b   : > { %1864 = vmatprep.mubr.bf16.mxu1 %v4800_v15 }
 0x28d   : > { %v5349_v38 = vpop.permute.xlu1 %1182 }
 0x291   : > { %v5358_v46 = vpop.permute.xlu1 %1192 }
 0x325   : > { %v1241_v34 = vpop.f32.mrb[16].mxu0 }
 0x326   : > { %v1242_v35 = vadd.f32 %v1241_v34, %v5346_v33  ;;  %v1243_v37 = vpop.f32.mrb[17].mxu0 }
 0x327   : > { %v1244_v36 = vadd.f32 %v1243_v37, %v5346_v33  ;;  %v1245_v39 = vpop.f32.mrb[18].mxu0 }
 0x328   : > { %v1246_v40 = vadd.f32 %v1245_v39, %v5349_v38  ;;  %v1247_v52 = vpop.f32.mrb[19].mxu0  ;;  %v1419_v27 = vmax.f32 %v1242_v35, 0.0 }
 0x329   : > { %v1248_v0 = vadd.f32 %v1247_v52, %v5349_v38  ;;  %v1420_v28 = vmax.f32 %v1244_v36, 0.0 }
 0x32a   : > { %v1427_v58 = vmax.f32 %v1246_v40, 0.0 }
 0x32b   : > { %v1428_v55 = vmax.f32 %v1248_v0, 0.0 }
 0x32c   : > { %v1451_v25 = vpack.c.bf16 %v1427_v58, %v1419_v27 }
 0x32d   : > { %v1452_v43 = vpack.c.bf16 %v1428_v55, %v1420_v28  ;;  %v1251_v44 = vpop.f32.mrb[20].mxu0 }
 0x32e   : > { %v1252_v45 = vadd.f32 %v1251_v44, %v5354_v31  ;;  %v1253_v23 = vpop.f32.mrb[21].mxu0  ;;  %1535 = vrot.lane.b32.xlu0 %v1451_v25, %s4799_s23 }
 0x32f   : > { %v1254_v47 = vadd.f32 %v1253_v23, %v5354_v31  ;;  %v1255_v22 = vpop.f32.mrb[22].mxu0  ;;  %1779 = vmatprep.subr.bf16.mxu0 %v1452_v43 }
 0x330   : > { %v1256_v49 = vadd.f32 %v1255_v22, %v5358_v46  ;;  %v1257_v50 = vpop.f32.mrb[23].mxu0  ;;  %1780 = vmatpush1.bf16.msra.mxu0 %v1451_v25  ;;  %v1435_v53 = vmax.f32 %v1252_v45, 0.0 }
 0x331   : > { %v1258_v51 = vadd.f32 %v1257_v50, %v5358_v46  ;;  %v1436_v56 = vmax.f32 %v1254_v47, 0.0 }
 0x332   : > { %v1443_v54 = vmax.f32 %v1256_v49, 0.0  ;;  %1603 = vrot.lane.b32.xlu0 %v1451_v25, %s4798_s22 }
 0x333   : > { %v1444_v57 = vmax.f32 %v1258_v51, 0.0 }
 0x334   : > { %v1459_v29 = vpack.c.bf16 %v1443_v54, %v1435_v53 }
 0x335   : > { %v1460_v59 = vpack.c.bf16 %v1444_v57, %v1436_v56  ;;  %v1294_v26 = vpop.f32.mrb[16].mxu1 }
 0x336   : > { %v1295_v60 = vadd.f32 %v1294_v26, %v5346_v33  ;;  %v1296_v61 = vpop.f32.mrb[17].mxu1  ;;  %1553 = vrot.lane.b32.xlu1 %v1459_v29, %s4799_s23  ;;  %1671 = vrot.lane.b32.xlu0 %v1451_v25, %s4801_s24 }
 0x337   : > { %v1297_v42 = vadd.f32 %v1296_v61, %v5346_v33  ;;  %v1298_v41 = vpop.f32.mrb[18].mxu1  ;;  %1781 = vmatprep.subr.bf16.mxu0 %v1460_v59 }
 0x338   : > { %v1299_v63 = vadd.f32 %v1298_v41, %v5349_v38  ;;  %v1300_v1 = vpop.f32.mrb[19].mxu1  ;;  %1782 = vmatpush1.bf16.msra.mxu0 %v1459_v29  ;;  %v1421_v3 = vmax.f32 %v1295_v60, 0.0 }
 0x339   : > { %v1301_v2 = vadd.f32 %v1300_v1, %v5349_v38  ;;  %v1422_v5 = vmax.f32 %v1297_v42, 0.0 }
 0x33a   : > { %v1429_v4 = vmax.f32 %v1299_v63, 0.0  ;;  %1621 = vrot.lane.b32.xlu1 %v1459_v29, %s4798_s22  ;;  %1537 = vrot.lane.b32.xlu0 %v1452_v43, %s4799_s23 }
 0x33b   : > { %v1430_v6 = vmax.f32 %v1301_v2, 0.0 }
 0x33c   : > { %v1453_v7 = vpack.c.bf16 %v1429_v4, %v1421_v3 }
 0x33d   : > { %v1454_v8 = vpack.c.bf16 %v1430_v6, %v1422_v5  ;;  %v1304_v10 = vpop.f32.mrb[20].mxu1 }
 0x33e   : > { %v1305_v11 = vadd.f32 %v1304_v10, %v5354_v31  ;;  %v1306_v12 = vpop.f32.mrb[21].mxu1  ;;  %1689 = vrot.lane.b32.xlu1 %v1459_v29, %s4801_s24  ;;  %1605 = vrot.lane.b32.xlu0 %v1452_v43, %s4798_s22 }
 0x33f   : > { %v1307_v13 = vadd.f32 %v1306_v12, %v5354_v31  ;;  %v1308_v14 = vpop.f32.mrb[22].mxu1  ;;  %1832 = vmatprep.subr.bf16.mxu1 %v1454_v8 }
 0x340   : > { %v1309_v16 = vadd.f32 %v1308_v14, %v5358_v46  ;;  %v1310_v17 = vpop.f32.mrb[23].mxu1  ;;  %1833 = vmatpush1.bf16.msra.mxu1 %v1453_v7  ;;  %v1437_v19 = vmax.f32 %v1305_v11, 0.0 }
 0x341   : > { %v1311_v18 = vadd.f32 %v1310_v17, %v5358_v46  ;;  %v1438_v21 = vmax.f32 %v1307_v13, 0.0 }
 0x342   : > { %v1445_v9 = vmax.f32 %v1309_v16, 0.0  ;;  %1555 = vrot.lane.b32.xlu1 %v1460_v59, %s4799_s23  ;;  %1673 = vrot.lane.b32.xlu0 %v1452_v43, %s4801_s24 }
 0x343   : > { %v1446_v24 = vmax.f32 %v1311_v18, 0.0 }
 0x344   : > { %v1461_v48 = vpack.c.bf16 %v1445_v9, %v1437_v19  ;;  %v1745_v19 = vld [vmem:[%s7624_s6 + $0x10] sm:$0xff]  ;;  %v1744_v9 = vld [vmem:[%s7624_s6 + $0x8] sm:$0xff] }
 0x345   : > { %v5380_v62 = vpack.c.bf16 %v1446_v24, %v1438_v21  ;;  %v1746_v24 = vld [vmem:[%s7624_s6 + $0x18] sm:$0xff] }
 0x346   : > { %1623 = vrot.lane.b32.xlu1 %v1460_v59, %s4798_s22  ;;  %1541 = vrot.lane.b32.xlu0 %v1454_v8, %s4799_s23 }
 0x347   : > { %1834 = vmatprep.subr.bf16.mxu1 %v5380_v62 }
 0x348   : > { %1835 = vmatpush1.bf16.msra.mxu1 %v1461_v48 }
 0x34a   : > { %1691 = vrot.lane.b32.xlu1 %v1460_v59, %s4801_s24  ;;  %1609 = vrot.lane.b32.xlu0 %v1454_v8, %s4798_s22 }
 0x34e   : > { %1539 = vrot.lane.b32.xlu1 %v1453_v7, %s4799_s23  ;;  %1557 = vrot.lane.b32.xlu0 %v1461_v48, %s4799_s23 }
 0x351   : > { %v1347_v30 = vpop.f32.mrb[24].mxu0 }
 0x352   : > { %v1348_v20 = vadd.f32 %v1347_v30, %v5346_v33  ;;  %v1349_v32 = vpop.f32.mrb[25].mxu0  ;;  %1607 = vrot.lane.b32.xlu1 %v1453_v7, %s4798_s22  ;;  %1677 = vrot.lane.b32.xlu0 %v1454_v8, %s4801_s24 }
 0x353   : > { %v1350_v34 = vadd.f32 %v1349_v32, %v5346_v33  ;;  %v1351_v35 = vpop.f32.mrb[26].mxu0 }
 0x354   : > { %v1352_v37 = vadd.f32 %v1351_v35, %v5349_v38  ;;  %v1353_v36 = vpop.f32.mrb[27].mxu0  ;;  %v1423_v52 = vmax.f32 %v1348_v20, 0.0 }
 0x355   : > { %v1354_v39 = vadd.f32 %v1353_v36, %v5349_v38  ;;  %v1400_v40 = vpop.f32.mrb[24].mxu1  ;;  %v1424_v28 = vmax.f32 %v1350_v34, 0.0 }
 0x356   : > { %v1431_v0 = vmax.f32 %v1352_v37, 0.0  ;;  %v1401_v27 = vadd.f32 %v1400_v40, %v5346_v33  ;;  %v1402_v58 = vpop.f32.mrb[25].mxu1  ;;  %1675 = vrot.lane.b32.xlu1 %v1453_v7, %s4801_s24  ;;  %1625 = vrot.lane.b32.xlu0 %v1461_v48, %s4798_s22 }
 0x357   : > { %v1432_v55 = vmax.f32 %v1354_v39, 0.0  ;;  %v1403_v25 = vadd.f32 %v1402_v58, %v5346_v33  ;;  %v1404_v43 = vpop.f32.mrb[26].mxu1 }
 0x358   : > { %v5399_v44 = vpack.c.bf16 %v1431_v0, %v1423_v52  ;;  %v1405_v45 = vadd.f32 %v1404_v43, %v5349_v38  ;;  %v1406_v23 = vpop.f32.mrb[27].mxu1  ;;  %v1425_v50 = vmax.f32 %v1401_v27, 0.0 }
 0x359   : > { %v5402_v47 = vpack.c.bf16 %v1432_v55, %v1424_v28  ;;  %v1407_v22 = vadd.f32 %v1406_v23, %v5349_v38  ;;  %v1357_v49 = vpop.f32.mrb[28].mxu0  ;;  %v1426_v33 = vmax.f32 %v1403_v25, 0.0 }
 0x35a   : > { %v1433_v51 = vmax.f32 %v1405_v45, 0.0  ;;  %v1358_v53 = vadd.f32 %v1357_v49, %v5354_v31  ;;  %v1359_v54 = vpop.f32.mrb[29].mxu0  ;;  %1543 = vrot.lane.b32.xlu1 %v5399_v44, %s4799_s23  ;;  %1693 = vrot.lane.b32.xlu0 %v1461_v48, %s4801_s24 }
 0x35b   : > { %v1434_v56 = vmax.f32 %v1407_v22, 0.0  ;;  %v1360_v57 = vadd.f32 %v1359_v54, %v5354_v31  ;;  %v1361_v29 = vpop.f32.mrb[30].mxu0 }
 0x35c   : > { %v5410_v59 = vpack.c.bf16 %v1433_v51, %v1425_v50  ;;  %v1362_v38 = vadd.f32 %v1361_v29, %v5358_v46  ;;  %v1363_v26 = vpop.f32.mrb[31].mxu0  ;;  %v1439_v41 = vmax.f32 %v1358_v53, 0.0 }
 0x35d   : > { %v5413_v60 = vpack.c.bf16 %v1434_v56, %v1426_v33  ;;  %v1364_v61 = vadd.f32 %v1363_v26, %v5358_v46  ;;  %v1410_v42 = vpop.f32.mrb[28].mxu1  ;;  %v1440_v3 = vmax.f32 %v1360_v57, 0.0 }
 0x35e   : > { %v1447_v63 = vmax.f32 %v1362_v38, 0.0  ;;  %v1411_v1 = vadd.f32 %v1410_v42, %v5354_v31  ;;  %v1412_v2 = vpop.f32.mrb[29].mxu1  ;;  %1611 = vrot.lane.b32.xlu1 %v5399_v44, %s4798_s22  ;;  %1559 = vrot.lane.b32.xlu0 %v5380_v62, %s4799_s23 }
 0x35f   : > { %v1448_v4 = vmax.f32 %v1364_v61, 0.0  ;;  %v1413_v5 = vadd.f32 %v1412_v2, %v5354_v31  ;;  %v1414_v6 = vpop.f32.mrb[30].mxu1 }
 0x360   : > { %v5422_v7 = vpack.c.bf16 %v1447_v63, %v1439_v41  ;;  %v1415_v8 = vadd.f32 %v1414_v6, %v5358_v46  ;;  %v1416_v10 = vpop.f32.mrb[31].mxu1  ;;  %v1441_v13 = vmax.f32 %v1411_v1, 0.0 }
 0x361   : > { %v5425_v11 = vpack.c.bf16 %v1448_v4, %v1440_v3  ;;  %v1417_v12 = vadd.f32 %v1416_v10, %v5358_v46  ;;  %v1442_v16 = vmax.f32 %v1413_v5, 0.0  ;;  %v1743_v46 = vld [vmem:[%s7624_s6] sm:$0xff] }
 0x362   : > { %v1449_v14 = vmax.f32 %v1415_v8, 0.0  ;;  %1679 = vrot.lane.b32.xlu1 %v5399_v44, %s4801_s24  ;;  %1627 = vrot.lane.b32.xlu0 %v5380_v62, %s4798_s22  ;;  %v5531_v3 = vld [vmem:[%s7623_s5] sm:$0xff]  }
 0x363   : > { %v1450_v31 = vmax.f32 %v1417_v12, 0.0 }
 0x364   : > { %v5432_v17 = vpack.c.bf16 %v1449_v14, %v1441_v13  ;;  %v5545_v14 = vld [vmem:[%s7623_s5 + $0x8] sm:$0xff]  }
 0x365   : > { %v5434_v18 = vpack.c.bf16 %v1450_v31, %v1442_v16 }
 0x366   : > { %1561 = vrot.lane.b32.xlu1 %v5422_v7, %s4799_s23  ;;  %1545 = vrot.lane.b32.xlu0 %v5402_v47, %s4799_s23 }
 0x36a   : > { %1629 = vrot.lane.b32.xlu1 %v5422_v7, %s4798_s22  ;;  %1613 = vrot.lane.b32.xlu0 %v5402_v47, %s4798_s22 }
 0x36e   : > { %1547 = vrot.lane.b32.xlu1 %v5410_v59, %s4799_s23  ;;  %1563 = vrot.lane.b32.xlu0 %v5425_v11, %s4799_s23 }
 0x372   : > { %1615 = vrot.lane.b32.xlu1 %v5410_v59, %s4798_s22  ;;  %1681 = vrot.lane.b32.xlu0 %v5402_v47, %s4801_s24 }
 0x376   : > { %1565 = vrot.lane.b32.xlu1 %v5432_v17, %s4799_s23  ;;  %1631 = vrot.lane.b32.xlu0 %v5425_v11, %s4798_s22 }
 0x37a   : > { %1683 = vrot.lane.b32.xlu1 %v5410_v59, %s4801_s24  ;;  %1695 = vrot.lane.b32.xlu0 %v5380_v62, %s4801_s24 }
 0x37e   : > { %1633 = vrot.lane.b32.xlu1 %v5432_v17, %s4798_s22  ;;  %1699 = vrot.lane.b32.xlu0 %v5425_v11, %s4801_s24 }
 0x382   : > { %1697 = vrot.lane.b32.xlu1 %v5422_v7, %s4801_s24  ;;  %1549 = vrot.lane.b32.xlu0 %v5413_v60, %s4799_s23 }
 0x386   : > { %1701 = vrot.lane.b32.xlu1 %v5432_v17, %s4801_s24  ;;  %1567 = vrot.lane.b32.xlu0 %v5434_v18, %s4799_s23 }
 0x38a   : > { %1551 = vrot.lane.b32.xlu1 %v4800_v15, %s4799_s23  ;;  %1617 = vrot.lane.b32.xlu0 %v5413_v60, %s4798_s22 }
 0x38e   : > { %1569 = vrot.lane.b32.xlu1 %v4800_v15, %s4799_s23  ;;  %1635 = vrot.lane.b32.xlu0 %v5434_v18, %s4798_s22 }
 0x392   : > { %1619 = vrot.lane.b32.xlu1 %v4800_v15, %s4798_s22  ;;  %1685 = vrot.lane.b32.xlu0 %v5413_v60, %s4801_s24 }
 0x396   : > { %1637 = vrot.lane.b32.xlu1 %v4800_v15, %s4798_s22  ;;  %1703 = vrot.lane.b32.xlu0 %v5434_v18, %s4801_s24 }
 0x39a   : > { %1687 = vrot.lane.b32.xlu1 %v4800_v15, %s4801_s24  ;;  %1749 = vperm.xlu0 %4721, %v1743_v46  }
 0x39e   : > { %1705 = vrot.lane.b32.xlu1 %v4800_v15, %s4801_s24  ;;  %1759 = vperm.xlu0 %4721, %v1745_v19  }
 0x3a0   : > { %v1536_v21 = vpop.permute.xlu0 %1535 }
 0x3a2   : > { %1754 = vperm.xlu1 %4720, %v1744_v9  }
 0x3a4   : > { %v1604_v48 = vpop.permute.xlu0 %1603 }
 0x3a6   : > { %1764 = vperm.xlu1 %4720, %v1746_v24  }
 0x3a8   : > { %v1554_v62 = vpop.permute.xlu1 %1553  ;;  %v1672_v30 = vpop.permute.xlu0 %1671 }
 0x3aa   : > { %4733 = vrot.lane.b32.xlu1 %v4800_v15, %s4799_s23 }
 0x3ac   : > { %v1622_v20 = vpop.permute.xlu1 %1621  ;;  %v1538_v32 = vpop.permute.xlu0 %1537 }
 0x3ad   : > { %v1571_v55 = vsel %vm484_vm0, %v1536_v21, %v1538_v32 }
 0x3b0   : > { %v1690_v34 = vpop.permute.xlu1 %1689  ;;  %v1606_v35 = vpop.permute.xlu0 %1605 }
 0x3b1   : > { %v1639_v51 = vsel %vm519_vm2, %v1604_v48, %v1606_v35 }
 0x3b4   : > { %v1556_v37 = vpop.permute.xlu1 %1555  ;;  %v1674_v36 = vpop.permute.xlu0 %1673 }
 0x3b5   : > { %v1579_v23 = vsel %vm484_vm0, %v1554_v62, %v1556_v37  ;;  %v1707_v42 = vsel %vm554_vm1, %v1672_v30, %v1674_v36 }
 0x3b8   : > { %v1624_v39 = vpop.permute.xlu1 %1623  ;;  %v1542_v40 = vpop.permute.xlu0 %1541 }
 0x3b9   : > { %v1647_v57 = vsel %vm519_vm2, %v1622_v20, %v1624_v39 }
 0x3bc   : > { %v1692_v52 = vpop.permute.xlu1 %1691  ;;  %v1610_v0 = vpop.permute.xlu0 %1609 }
 0x3bd   : > { %v1715_v2 = vsel %vm554_vm1, %v1690_v34, %v1692_v52 }
 0x3c0   : > { %v1540_v27 = vpop.permute.xlu1 %1539  ;;  %v1558_v58 = vpop.permute.xlu0 %1557 }
 0x3c1   : > { %v1572_v28 = vsel %vm484_vm0, %v1538_v32, %v1540_v27  ;;  %v1580_v25 = vsel %vm484_vm0, %v1556_v37, %v1558_v58  ;;  %v1573_v29 = vsel %vm484_vm0, %v1540_v27, %v1542_v40 }
 0x3c2   : > { %1783 = vmatprep.subr.bf16.mxu0 %v1572_v28 }
 0x3c3   : > { %1784 = vmatpush1.bf16.msra.mxu0 %v1571_v55 }
 0x3c4   : > { %v1608_v43 = vpop.permute.xlu1 %1607  ;;  %v5507_v45 = vpop.permute.xlu0 %1677  ;;  %1785 = vmatprep.subr.bf16.mxu0 %v1580_v25 }
 0x3c5   : > { %v1640_v22 = vsel %vm519_vm2, %v1606_v35, %v1608_v43 }
 0x3c7   : > { %1786 = vmatpush1.bf16.msra.mxu0 %v1579_v23 }
 0x3c8   : > { %v5511_v49 = vpop.permute.xlu1 %1675  ;;  %v1626_v50 = vpop.permute.xlu0 %1625  ;;  %1787 = vmatprep.subr.bf16.mxu0 %v1640_v22 }
 0x3c9   : > { %v1648_v53 = vsel %vm519_vm2, %v1624_v39, %v1626_v50  ;;  %v1708_v38 = vsel %vm554_vm1, %v1674_v36, %v5511_v49  ;;  %v1709_v24 = vsel %vm554_vm1, %v5511_v49, %v5507_v45 }
 0x3cb   : > { %1788 = vmatpush1.bf16.msra.mxu0 %v1639_v51 }
 0x3cc   : > { %v1544_v54 = vpop.permute.xlu1 %1543  ;;  %v5515_v33 = vpop.permute.xlu0 %1693  ;;  %1789 = vmatprep.subr.bf16.mxu0 %v1648_v53 }
 0x3cd   : > { %v1574_v56 = vsel %vm484_vm0, %v1542_v40, %v1544_v54  ;;  %v1716_v41 = vsel %vm554_vm1, %v1692_v52, %v5515_v33 }
 0x3ce   : > { %1836 = vmatprep.subr.bf16.mxu1 %v1574_v56 }
 0x3cf   : > { %1790 = vmatpush1.bf16.msra.mxu0 %v1647_v57  ;;  %1837 = vmatpush1.bf16.msra.mxu1 %v1573_v29 }
 0x3d0   : > { %v1612_v26 = vpop.permute.xlu1 %1611  ;;  %v1560_v61 = vpop.permute.xlu0 %1559  ;;  %1791 = vmatprep.subr.bf16.mxu0 %v1708_v38 }
 0x3d1   : > { %v1581_v8 = vsel %vm484_vm0, %v1558_v58, %v1560_v61  ;;  %v1642_v10 = vsel %vm519_vm2, %v1610_v0, %v1612_v26 }
 0x3d3   : > { %1792 = vmatpush1.bf16.msra.mxu0 %v1707_v42 }
 0x3d4   : > { %v5525_v63 = vpop.permute.xlu1 %1679  ;;  %v1628_v1 = vpop.permute.xlu0 %1627  ;;  %1793 = vmatprep.subr.bf16.mxu0 %v1716_v41 }
 0x3d5   : > { %v1649_v46 = vsel %vm519_vm2, %v1626_v50, %v1628_v1 }
 0x3d7   : > { %1794 = vmatpush1.bf16.msra.mxu0 %v1715_v2 }
 0x3d8   : > { %v1562_v4 = vpop.permute.xlu1 %1561  ;;  %v1546_v5 = vpop.permute.xlu0 %1545  ;;  %1885 = vmatprep.subr.bf16.mxu0 %v5402_v47  ;;  %v1641_v47 = vsel %vm519_vm2, %v1608_v43, %v1610_v0 }
 0x3d9   : > { %v1582_v6 = vsel %vm484_vm0, %v1560_v61, %v1562_v4  ;;  %v1575_v19 = vsel %vm484_vm0, %v1544_v54, %v1546_v5 }
 0x3da   : > { %1812 = vmatmul.mubr.bf16.vlgmr.msra.gmra.mrb[32].mxu0 %v5531_v3  ;;  %1838 = vmatprep.subr.bf16.mxu1 %v1582_v6 }
 0x3db   : > { %1839 = vmatpush1.bf16.msra.mxu1 %v1581_v8  ;;  %1886 = vmatpush1.bf16.msra.mxu0 %v5399_v44 }
 0x3dc   : > { %v1630_v12 = vpop.permute.xlu1 %1629  ;;  %1840 = vmatprep.subr.bf16.mxu1 %v1642_v10  ;;  %v1614_v13 = vpop.permute.xlu0 %1613  ;;  %1887 = vmatprep.subr.bf16.mxu0 %v5425_v11 }
 0x3dd   : > { %1821 = vmatprep.mubr.bf16.mxu0 %v4800_v15  ;;  %v1650_v44 = vsel %vm519_vm2, %v1628_v1, %v1630_v12  ;;  %v1643_v37 = vsel %vm519_vm2, %v1612_v26, %v1614_v13 }
 0x3df   : > { %1841 = vmatpush1.bf16.msra.mxu1 %v1641_v47  ;;  %1888 = vmatpush1.bf16.msra.mxu0 %v5422_v7  ;;  %v1710_v7 = vsel %vm554_vm1, %v5507_v45, %v5525_v63 }
 0x3e0   : > { %v5549_v16 = vpop.permute.xlu1 %1547  ;;  %1842 = vmatprep.subr.bf16.mxu1 %v1650_v44  ;;  %v1564_v31 = vpop.permute.xlu0 %1563 }
 0x3e1   : > { %v1576_v11 = vsel %vm484_vm0, %v1546_v5, %v5549_v16  ;;  %v1583_v20 = vsel %vm484_vm0, %v1562_v4, %v1564_v31 }
 0x3e2   : > { %1822 = vmatmul.mubr.bf16.gmra.mrb[36].mxu0 %v5545_v14  ;;  %1889 = vmatprep.subr.bf16.mxu0 %v1576_v11 }
 0x3e3   : > { %1843 = vmatpush1.bf16.msra.mxu1 %v1649_v46  ;;  %1890 = vmatpush1.bf16.msra.mxu0 %v1575_v19 }
 0x3e4   : > { %v5559_v9 = vpop.permute.xlu1 %1615  ;;  %1844 = vmatprep.subr.bf16.mxu1 %v1710_v7  ;;  %v1682_v21 = vpop.permute.xlu0 %1681  ;;  %1917 = vmatprep.mubr.bf16.mxu0 %v4800_v15 }
 0x3e5   : > { %v1644_v32 = vsel %vm519_vm2, %v1614_v13, %v5559_v9  ;;  %v1711_v55 = vsel %vm554_vm1, %v5525_v63, %v1682_v21 }
 0x3e7   : > { %1845 = vmatpush1.bf16.msra.mxu1 %v1709_v24 }
 0x3e8   : > { %v1566_v48 = vpop.permute.xlu1 %1565  ;;  %v1632_v62 = vpop.permute.xlu0 %1631 }
 0x3e9   : > { %v1584_v30 = vsel %vm484_vm0, %v1564_v31, %v1566_v48  ;;  %v1651_v52 = vsel %vm519_vm2, %v1630_v12, %v1632_v62 }
 0x3ea   : > { %1891 = vmatprep.subr.bf16.mxu0 %v1584_v30 }
 0x3eb   : > { %1892 = vmatpush1.bf16.msra.mxu0 %v1583_v20 }
 0x3ec   : > { %v5569_v34 = vpop.permute.xlu1 %1683  ;;  %v1696_v35 = vpop.permute.xlu0 %1695  ;;  %1893 = vmatprep.subr.bf16.mxu0 %v1644_v32 }
 0x3ed   : > { %v1712_v0 = vsel %vm554_vm1, %v1682_v21, %v5569_v34  ;;  %v1717_v25 = vsel %vm554_vm1, %v5515_v33, %v1696_v35 }
 0x3ef   : > { %1894 = vmatpush1.bf16.msra.mxu0 %v1643_v37 }
 0x3f0   : > { %v1634_v36 = vpop.permute.xlu1 %1633  ;;  %v1700_v39 = vpop.permute.xlu0 %1699 }
 0x3f1   : > { %v1652_v40 = vsel %vm519_vm2, %v1632_v62, %v1634_v36 }
 0x3f2   : > { %1895 = vmatprep.subr.bf16.mxu0 %v1652_v40 }
 0x3f3   : > { %1896 = vmatpush1.bf16.msra.mxu0 %v1651_v52 }
 0x3f4   : > { %v1698_v27 = vpop.permute.xlu1 %1697  ;;  %v1550_v58 = vpop.permute.xlu0 %1549  ;;  %1897 = vmatprep.subr.bf16.mxu0 %v1712_v0 }
 0x3f5   : > { %v1718_v28 = vsel %vm554_vm1, %v1696_v35, %v1698_v27  ;;  %v1719_v23 = vsel %vm554_vm1, %v1698_v27, %v1700_v39  ;;  %v1577_v53 = vsel %vm484_vm0, %v5549_v16, %v1550_v58 }
 0x3f6   : > { %1846 = vmatprep.subr.bf16.mxu1 %v1718_v28 }
 0x3f7   : > { %1847 = vmatpush1.bf16.msra.mxu1 %v1717_v25  ;;  %1898 = vmatpush1.bf16.msra.mxu0 %v1711_v55 }
 0x3f8   : > { %v1702_v43 = vpop.permute.xlu1 %1701  ;;  %1938 = vmatprep.subr.bf16.mxu1 %v5413_v60  ;;  %v1568_v22 = vpop.permute.xlu0 %1567 }
 0x3f9   : > { %v1720_v45 = vsel %vm554_vm1, %v1700_v39, %v1702_v43 }
 0x3fa   : > { %1865 = vmatmul.mubr.bf16.vlgmr.msra.gmra.mrb[32].mxu1 %v5531_v3  ;;  %1899 = vmatprep.subr.bf16.mxu0 %v1720_v45 }
 0x3fb   : > { %1900 = vmatpush1.bf16.msra.mxu0 %v1719_v23  ;;  %1939 = vmatpush1.bf16.msra.mxu1 %v5410_v59 }
 0x3fc   : > { %v1552_v49 = vpop.permute.xlu1 %1551  ;;  %1940 = vmatprep.subr.bf16.mxu1 %v5434_v18  ;;  %1874 = vmatprep.mubr.bf16.mxu1 %v4800_v15  ;;  %v1618_v50 = vpop.permute.xlu0 %1617 }
 0x3fd   : > { %v1578_v60 = vsel %vm484_vm0, %v1550_v58, %v1552_v49  ;;  %v1645_v57 = vsel %vm519_vm2, %v5559_v9, %v1618_v50 }
 0x3fe   : > { %1918 = vmatmul.mubr.bf16.vlgmr.msra.gmra.mrb[40].mxu0 %v5531_v3 }
 0x3ff   : > { %1941 = vmatpush1.bf16.msra.mxu1 %v5432_v17  ;;  %1927 = vmatprep.mubr.bf16.mxu0 %v4800_v15  ;;  %v1585_v17 = vsel %vm484_vm0, %v1566_v48, %v1568_v22 }
 0x400   : > { %v1570_v51 = vpop.permute.xlu1 %1569  ;;  %1942 = vmatprep.subr.bf16.mxu1 %v1578_v60  ;;  %v1636_v54 = vpop.permute.xlu0 %1635 }
 0x401   : > { %v1586_v59 = vsel %vm484_vm0, %v1568_v22, %v1570_v51  ;;  %v1653_v61 = vsel %vm519_vm2, %v1634_v36, %v1636_v54 }
 0x402   : > { %1875 = vmatmul.mubr.bf16.gmra.mrb[36].mxu1 %v5545_v14 }
 0x403   : > { %1943 = vmatpush1.bf16.msra.mxu1 %v1577_v53  ;;  %1970 = vmatprep.mubr.bf16.mxu1 %v4800_v15 }
 0x404   : > { %v1620_v18 = vpop.permute.xlu1 %1619  ;;  %1944 = vmatprep.subr.bf16.mxu1 %v1586_v59  ;;  %v1686_v38 = vpop.permute.xlu0 %1685 }
 0x405   : > { %v1646_v33 = vsel %vm519_vm2, %v1618_v50, %v1620_v18  ;;  %v1713_v63 = vsel %vm554_vm1, %v5569_v34, %v1686_v38 }
 0x406   : > { %1928 = vmatmul.mubr.bf16.gmra.mrb[44].mxu0 %v5545_v14 }
 0x407   : > { %1945 = vmatpush1.bf16.msra.mxu1 %v1585_v17  ;;  %2383 = vmatprep.mubr.bf16.mxu0 %v4800_v15 }
 0x408   : > { %v1638_v56 = vpop.permute.xlu1 %1637  ;;  %1946 = vmatprep.subr.bf16.mxu1 %v1646_v33  ;;  %v1704_v1 = vpop.permute.xlu0 %1703 }
 0x409   : > { %v1654_v29 = vsel %vm519_vm2, %v1636_v54, %v1638_v56  ;;  %v1721_v4 = vsel %vm554_vm1, %v1702_v43, %v1704_v1 }
 0x40b   : > { %1947 = vmatpush1.bf16.msra.mxu1 %v1645_v57 }
 0x40c   : > { %v1688_v26 = vpop.permute.xlu1 %1687  ;;  %1948 = vmatprep.subr.bf16.mxu1 %v1654_v29 }
 0x40d   : > { %v1714_v42 = vsel %vm554_vm1, %v1686_v38, %v1688_v26 }
 0x40f   : > { %1949 = vmatpush1.bf16.msra.mxu1 %v1653_v61 }
 0x410   : > { %v1706_v41 = vpop.permute.xlu1 %1705  ;;  %1950 = vmatprep.subr.bf16.mxu1 %v1714_v42 }
 0x411   : > { %v1722_v2 = vsel %vm554_vm1, %v1704_v1, %v1706_v41 }
 0x413   : > { %1951 = vmatpush1.bf16.msra.mxu1 %v1713_v63 }
 0x414   : > { %1952 = vmatprep.subr.bf16.mxu1 %v1722_v2 }
 0x417   : > { %1953 = vmatpush1.bf16.msra.mxu1 %v1721_v4 }
 0x419   : > { %v5616_v5 = vpop.permute.xlu0 %1749 }
 0x41a   : > { %1971 = vmatmul.mubr.bf16.vlgmr.msra.gmra.mrb[40].mxu1 %v5531_v3 }
 0x41b   : > { %1980 = vmatprep.mubr.bf16.mxu1 %v4800_v15 }
 0x41d   : > { %v5624_v7 = vpop.permute.xlu0 %1759 }
 0x421   : > { %v5619_v12 = vpop.permute.xlu1 %1754 }
 0x422   : > { %1981 = vmatmul.mubr.bf16.gmra.mrb[44].mxu1 %v5545_v14 }
 0x423   : > { %2436 = vmatprep.mubr.bf16.mxu1 %v4800_v15 }
 0x425   : > { %v5628_v62 = vpop.permute.xlu1 %1764 }
 0x4ad   : > { %v1813_v6 = vpop.f32.mrb[32].mxu0 }
 0x4ae   : > { %v1814_v8 = vadd.f32 %v1813_v6, %v5616_v5  ;;  %v1815_v10 = vpop.f32.mrb[33].mxu0 }
 0x4af   : > { %v1816_v13 = vadd.f32 %v1815_v10, %v5616_v5  ;;  %v1817_v3 = vpop.f32.mrb[34].mxu0 }
 0x4b0   : > { %v1818_v47 = vadd.f32 %v1817_v3, %v5619_v12  ;;  %v1819_v44 = vpop.f32.mrb[35].mxu0  ;;  %v1991_v16 = vmax.f32 %v1814_v8, 0.0 }
 0x4b1   : > { %v1820_v14 = vadd.f32 %v1819_v44, %v5619_v12  ;;  %v1992_v11 = vmax.f32 %v1816_v13, 0.0 }
 0x4b2   : > { %v1999_v31 = vmax.f32 %v1818_v47, 0.0 }
 0x4b3   : > { %v2000_v46 = vmax.f32 %v1820_v14, 0.0 }
 0x4b4   : > { %v2023_v19 = vpack.c.bf16 %v1999_v31, %v1991_v16 }
 0x4b5   : > { %v2024_v9 = vpack.c.bf16 %v2000_v46, %v1992_v11  ;;  %v1823_v21 = vpop.f32.mrb[36].mxu0 }
 0x4b6   : > { %v1824_v24 = vadd.f32 %v1823_v21, %v5624_v7  ;;  %v1825_v48 = vpop.f32.mrb[37].mxu0  ;;  %2107 = vrot.lane.b32.xlu0 %v2023_v19, %s4799_s23 }
 0x4b7   : > { %v1826_v30 = vadd.f32 %v1825_v48, %v5624_v7  ;;  %v1827_v20 = vpop.f32.mrb[38].mxu0  ;;  %2351 = vmatprep.subr.bf16.mxu0 %v2024_v9 }
 0x4b8   : > { %v1828_v32 = vadd.f32 %v1827_v20, %v5628_v62  ;;  %v1829_v34 = vpop.f32.mrb[39].mxu0  ;;  %2352 = vmatpush1.bf16.msra.mxu0 %v2023_v19  ;;  %v2007_v37 = vmax.f32 %v1824_v24, 0.0 }
 0x4b9   : > { %v1830_v35 = vadd.f32 %v1829_v34, %v5628_v62  ;;  %v2008_v39 = vmax.f32 %v1826_v30, 0.0 }
 0x4ba   : > { %v2015_v36 = vmax.f32 %v1828_v32, 0.0  ;;  %2175 = vrot.lane.b32.xlu0 %v2023_v19, %s4798_s22 }
 0x4bb   : > { %v2016_v40 = vmax.f32 %v1830_v35, 0.0 }
 0x4bc   : > { %v2031_v52 = vpack.c.bf16 %v2015_v36, %v2007_v37 }
 0x4bd   : > { %v2032_v0 = vpack.c.bf16 %v2016_v40, %v2008_v39 }
 0x4be   : > { %2125 = vrot.lane.b32.xlu1 %v2031_v52, %s4799_s23  ;;  %2243 = vrot.lane.b32.xlu0 %v2023_v19, %s4801_s24 }
 0x4bf   : > { %2353 = vmatprep.subr.bf16.mxu0 %v2032_v0 }
 0x4c0   : > { %2354 = vmatpush1.bf16.msra.mxu0 %v2031_v52 }
 0x4c2   : > { %2193 = vrot.lane.b32.xlu1 %v2031_v52, %s4798_s22  ;;  %2109 = vrot.lane.b32.xlu0 %v2024_v9, %s4799_s23 }
 0x4c6   : > { %2261 = vrot.lane.b32.xlu1 %v2031_v52, %s4801_s24  ;;  %2177 = vrot.lane.b32.xlu0 %v2024_v9, %s4798_s22 }
 0x4ca   : > { %2127 = vrot.lane.b32.xlu1 %v2032_v0, %s4799_s23  ;;  %2245 = vrot.lane.b32.xlu0 %v2024_v9, %s4801_s24 }
 0x4cd   : > { %v1866_v27 = vpop.f32.mrb[32].mxu1 }
 0x4ce   : > { %v1867_v58 = vadd.f32 %v1866_v27, %v5616_v5  ;;  %v1868_v28 = vpop.f32.mrb[33].mxu1  ;;  %2195 = vrot.lane.b32.xlu1 %v2032_v0, %s4798_s22 }
 0x4cf   : > { %v1869_v55 = vadd.f32 %v1868_v28, %v5616_v5  ;;  %v1870_v25 = vpop.f32.mrb[34].mxu1 }
 0x4d0   : > { %v1871_v43 = vadd.f32 %v1870_v25, %v5619_v12  ;;  %v1872_v45 = vpop.f32.mrb[35].mxu1  ;;  %v1993_v49 = vmax.f32 %v1867_v58, 0.0 }
 0x4d1   : > { %v1873_v23 = vadd.f32 %v1872_v45, %v5619_v12  ;;  %v1919_v22 = vpop.f32.mrb[40].mxu0  ;;  %v1994_v53 = vmax.f32 %v1869_v55, 0.0 }
 0x4d2   : > { %v2001_v60 = vmax.f32 %v1871_v43, 0.0  ;;  %v1920_v50 = vadd.f32 %v1919_v22, %v5616_v5  ;;  %v1921_v51 = vpop.f32.mrb[41].mxu0  ;;  %2263 = vrot.lane.b32.xlu1 %v2032_v0, %s4801_s24 }
 0x4d3   : > { %v2002_v59 = vmax.f32 %v1873_v23, 0.0  ;;  %v1922_v18 = vadd.f32 %v1921_v51, %v5616_v5  ;;  %v1923_v17 = vpop.f32.mrb[42].mxu0 }
 0x4d4   : > { %v2025_v54 = vpack.c.bf16 %v2001_v60, %v1993_v49  ;;  %v1924_v33 = vadd.f32 %v1923_v17, %v5619_v12  ;;  %v1925_v56 = vpop.f32.mrb[43].mxu0  ;;  %v1995_v26 = vmax.f32 %v1920_v50, 0.0 }
 0x4d5   : > { %v2026_v57 = vpack.c.bf16 %v2002_v59, %v1994_v53  ;;  %v1926_v29 = vadd.f32 %v1925_v56, %v5619_v12  ;;  %v1876_v38 = vpop.f32.mrb[36].mxu1  ;;  %v1996_v63 = vmax.f32 %v1922_v18, 0.0 }
 0x4d6   : > { %v2003_v61 = vmax.f32 %v1924_v33, 0.0  ;;  %v1877_v42 = vadd.f32 %v1876_v38, %v5624_v7  ;;  %v1878_v41 = vpop.f32.mrb[37].mxu1  ;;  %2111 = vrot.lane.b32.xlu1 %v2025_v54, %s4799_s23 }
 0x4d7   : > { %v2004_v1 = vmax.f32 %v1926_v29, 0.0  ;;  %v1879_v2 = vadd.f32 %v1878_v41, %v5624_v7  ;;  %v1880_v4 = vpop.f32.mrb[38].mxu1  ;;  %2404 = vmatprep.subr.bf16.mxu1 %v2026_v57  ;;  %v2317_v41 = vld [vmem:[%s7626_s8 + $0x10] sm:$0xff] }
 0x4d8   : > { %v5655_v6 = vpack.c.bf16 %v2003_v61, %v1995_v26  ;;  %v1881_v8 = vadd.f32 %v1880_v4, %v5628_v62  ;;  %v1882_v10 = vpop.f32.mrb[39].mxu1  ;;  %2405 = vmatpush1.bf16.msra.mxu1 %v2025_v54  ;;  %v2009_v44 = vmax.f32 %v1877_v42, 0.0  ;;  %v5756_v26 = vpop.permute.xlu1 %4733  ;;  %v2315_v61 = vld [vmem:[%s7626_s8] sm:$0xff] }
 0x4d9   : > { %v5658_v13 = vpack.c.bf16 %v2004_v1, %v1996_v63  ;;  %v1883_v3 = vadd.f32 %v1882_v10, %v5628_v62  ;;  %v1929_v47 = vpop.f32.mrb[44].mxu0  ;;  %v2010_v11 = vmax.f32 %v1879_v2, 0.0 }
 0x4da   : > { %v2017_v14 = vmax.f32 %v1881_v8, 0.0  ;;  %v1930_v16 = vadd.f32 %v1929_v47, %v5624_v7  ;;  %v1931_v31 = vpop.f32.mrb[45].mxu0  ;;  %2179 = vrot.lane.b32.xlu1 %v2025_v54, %s4798_s22 }
 0x4db   : > { %v2018_v46 = vmax.f32 %v1883_v3, 0.0  ;;  %v1932_v19 = vadd.f32 %v1931_v31, %v5624_v7  ;;  %v1933_v9 = vpop.f32.mrb[46].mxu0 }
 0x4dc   : > { %v2033_v21 = vpack.c.bf16 %v2017_v14, %v2009_v44  ;;  %v1934_v24 = vadd.f32 %v1933_v9, %v5628_v62  ;;  %v1935_v48 = vpop.f32.mrb[47].mxu0  ;;  %v2011_v32 = vmax.f32 %v1930_v16, 0.0 }
 0x4dd   : > { %v2034_v30 = vpack.c.bf16 %v2018_v46, %v2010_v11  ;;  %v1936_v20 = vadd.f32 %v1935_v48, %v5628_v62  ;;  %v2012_v35 = vmax.f32 %v1932_v19, 0.0 }
 0x4de   : > { %v2019_v34 = vmax.f32 %v1934_v24, 0.0  ;;  %2247 = vrot.lane.b32.xlu1 %v2025_v54, %s4801_s24  ;;  %2129 = vrot.lane.b32.xlu0 %v2033_v21, %s4799_s23 }
 0x4df   : > { %v2020_v37 = vmax.f32 %v1936_v20, 0.0  ;;  %2406 = vmatprep.subr.bf16.mxu1 %v2034_v30 }
 0x4e0   : > { %v5668_v36 = vpack.c.bf16 %v2019_v34, %v2011_v32  ;;  %2407 = vmatpush1.bf16.msra.mxu1 %v2033_v21 }
 0x4e1   : > { %v5670_v39 = vpack.c.bf16 %v2020_v37, %v2012_v35 }
 0x4e2   : > { %2113 = vrot.lane.b32.xlu1 %v2026_v57, %s4799_s23  ;;  %2197 = vrot.lane.b32.xlu0 %v2033_v21, %s4798_s22 }
 0x4e6   : > { %2181 = vrot.lane.b32.xlu1 %v2026_v57, %s4798_s22  ;;  %2265 = vrot.lane.b32.xlu0 %v2033_v21, %s4801_s24 }
 0x4ea   : > { %2249 = vrot.lane.b32.xlu1 %v2026_v57, %s4801_s24  ;;  %2131 = vrot.lane.b32.xlu0 %v2034_v30, %s4799_s23 }
 0x4ed   : > { %v1972_v40 = vpop.f32.mrb[40].mxu1 }
 0x4ee   : > { %v1973_v52 = vadd.f32 %v1972_v40, %v5616_v5  ;;  %v1974_v0 = vpop.f32.mrb[41].mxu1  ;;  %2133 = vrot.lane.b32.xlu1 %v5668_v36, %s4799_s23  ;;  %2199 = vrot.lane.b32.xlu0 %v2034_v30, %s4798_s22 }
 0x4ef   : > { %v1975_v27 = vadd.f32 %v1974_v0, %v5616_v5  ;;  %v1976_v58 = vpop.f32.mrb[42].mxu1 }
 0x4f0   : > { %v1977_v28 = vadd.f32 %v1976_v58, %v5619_v12  ;;  %v1978_v55 = vpop.f32.mrb[43].mxu1  ;;  %v1997_v43 = vmax.f32 %v1973_v52, 0.0 }
 0x4f1   : > { %v1979_v25 = vadd.f32 %v1978_v55, %v5619_v12  ;;  %v1998_v23 = vmax.f32 %v1975_v27, 0.0 }
 0x4f2   : > { %v2005_v45 = vmax.f32 %v1977_v28, 0.0  ;;  %2185 = vrot.lane.b32.xlu1 %v5658_v13, %s4798_s22  ;;  %2267 = vrot.lane.b32.xlu0 %v2034_v30, %s4801_s24 }
 0x4f3   : > { %v2006_v22 = vmax.f32 %v1979_v25, 0.0 }
 0x4f4   : > { %v5688_v49 = vpack.c.bf16 %v2005_v45, %v1997_v43 }
 0x4f5   : > { %v5690_v60 = vpack.c.bf16 %v2006_v22, %v1998_v23  ;;  %v1982_v5 = vpop.f32.mrb[44].mxu1  ;;  %v5785_v23 = vld [vmem:[%s7625_s7] sm:$0xff]  }
 0x4f6   : > { %v1983_v50 = vadd.f32 %v1982_v5, %v5624_v7  ;;  %v1984_v51 = vpop.f32.mrb[45].mxu1  ;;  %2201 = vrot.lane.b32.xlu1 %v5668_v36, %s4798_s22  ;;  %2115 = vrot.lane.b32.xlu0 %v5655_v6, %s4799_s23 }
 0x4f7   : > { %v1985_v12 = vadd.f32 %v1984_v51, %v5624_v7  ;;  %v1986_v53 = vpop.f32.mrb[46].mxu1  ;;  %v2316_v7 = vld [vmem:[%s7626_s8 + $0x8] sm:$0xff] }
 0x4f8   : > { %v1987_v59 = vadd.f32 %v1986_v53, %v5628_v62  ;;  %v1988_v18 = vpop.f32.mrb[47].mxu1  ;;  %v2013_v54 = vmax.f32 %v1983_v50, 0.0 }
 0x4f9   : > { %v1989_v17 = vadd.f32 %v1988_v18, %v5628_v62  ;;  %v2014_v56 = vmax.f32 %v1985_v12, 0.0  ;;  %v2318_v62 = vld [vmem:[%s7626_s8 + $0x18] sm:$0xff] }
 0x4fa   : > { %v2021_v33 = vmax.f32 %v1987_v59, 0.0  ;;  %2269 = vrot.lane.b32.xlu1 %v5668_v36, %s4801_s24  ;;  %2183 = vrot.lane.b32.xlu0 %v5655_v6, %s4798_s22 }
 0x4fb   : > { %v2022_v57 = vmax.f32 %v1989_v17, 0.0 }
 0x4fc   : > { %v5704_v29 = vpack.c.bf16 %v2021_v33, %v2013_v54 }
 0x4fd   : > { %v5706_v38 = vpack.c.bf16 %v2022_v57, %v2014_v56 }
 0x4fe   : > { %2203 = vrot.lane.b32.xlu1 %v5670_v39, %s4798_s22  ;;  %2251 = vrot.lane.b32.xlu0 %v5655_v6, %s4801_s24 }
 0x502   : > { %2119 = vrot.lane.b32.xlu1 %v5688_v49, %s4799_s23  ;;  %2117 = vrot.lane.b32.xlu0 %v5658_v13, %s4799_s23 }
 0x506   : > { %2189 = vrot.lane.b32.xlu1 %v5690_v60, %s4798_s22  ;;  %4738 = vrot.lane.b32.xlu0 %v4800_v15, %s4798_s22 }
 0x50a   : > { %2137 = vrot.lane.b32.xlu1 %v5704_v29, %s4799_s23  ;;  %2135 = vrot.lane.b32.xlu0 %v5670_v39, %s4799_s23 }
 0x50e   : > { %2255 = vrot.lane.b32.xlu1 %v5688_v49, %s4801_s24  ;;  %2187 = vrot.lane.b32.xlu0 %v5688_v49, %s4798_s22 }
 0x512   : > { %2259 = vrot.lane.b32.xlu1 %v4800_v15, %s4801_s24  ;;  %2121 = vrot.lane.b32.xlu0 %v5690_v60, %s4799_s23 }
 0x516   : > { %2207 = vrot.lane.b32.xlu1 %v5706_v38, %s4798_s22  ;;  %2205 = vrot.lane.b32.xlu0 %v5704_v29, %s4798_s22 }
 0x51a   : > { %2273 = vrot.lane.b32.xlu1 %v5704_v29, %s4801_s24  ;;  %2139 = vrot.lane.b32.xlu0 %v5706_v38, %s4799_s23 }
 0x51e   : > { %2277 = vrot.lane.b32.xlu1 %v4800_v15, %s4801_s24  ;;  %2253 = vrot.lane.b32.xlu0 %v5658_v13, %s4801_s24 }
 0x522   : > { %2326 = vperm.xlu1 %4720, %v2316_v7   ;;  %2257 = vrot.lane.b32.xlu0 %v5690_v60, %s4801_s24 }
 0x526   : > { %2336 = vperm.xlu1 %4720, %v2318_v62   ;;  %2271 = vrot.lane.b32.xlu0 %v5670_v39, %s4801_s24 }
 0x528   : > { %v2108_v42 = vpop.permute.xlu0 %2107 }
 0x52a   : > { %2275 = vrot.lane.b32.xlu0 %v5706_v38, %s4801_s24 }
 0x52c   : > { %v2176_v1 = vpop.permute.xlu0 %2175 }
 0x52e   : > { %2321 = vperm.xlu0 %4721, %v2315_v61  }
 0x530   : > { %v2126_v63 = vpop.permute.xlu1 %2125  ;;  %v2244_v8 = vpop.permute.xlu0 %2243 }
 0x532   : > { %2331 = vperm.xlu0 %4721, %v2317_v41  }
 0x534   : > { %v2194_v2 = vpop.permute.xlu1 %2193  ;;  %v2110_v3 = vpop.permute.xlu0 %2109 }
 0x535   : > { %v2143_v11 = vsel %vm484_vm0, %v2108_v42, %v2110_v3 }
 0x538   : > { %v2262_v4 = vpop.permute.xlu1 %2261  ;;  %v2178_v14 = vpop.permute.xlu0 %2177 }
 0x539   : > { %v2211_v34 = vsel %vm519_vm2, %v2176_v1, %v2178_v14 }
 0x53c   : > { %v2128_v10 = vpop.permute.xlu1 %2127  ;;  %v2246_v46 = vpop.permute.xlu0 %2245 }
 0x53d   : > { %v2151_v48 = vsel %vm484_vm0, %v2126_v63, %v2128_v10  ;;  %v2279_v28 = vsel %vm554_vm1, %v2244_v8, %v2246_v46 }
 0x540   : > { %v2196_v47 = vpop.permute.xlu1 %2195 }
 0x541   : > { %v2219_v52 = vsel %vm519_vm2, %v2194_v2, %v2196_v47 }
 0x544   : > { %v2264_v44 = vpop.permute.xlu1 %2263 }
 0x545   : > { %v2287_v45 = vsel %vm554_vm1, %v2262_v4, %v2264_v44 }
 0x548   : > { %v2112_v16 = vpop.permute.xlu1 %2111 }
 0x549   : > { %v2144_v31 = vsel %vm484_vm0, %v2110_v3, %v2112_v16 }
 0x54a   : > { %2355 = vmatprep.subr.bf16.mxu0 %v2144_v31 }
 0x54b   : > { %2356 = vmatpush1.bf16.msra.mxu0 %v2143_v11 }
 0x54c   : > { %v2180_v19 = vpop.permute.xlu1 %2179 }
 0x54d   : > { %v2212_v30 = vsel %vm519_vm2, %v2178_v14, %v2180_v19 }
 0x550   : > { %v5766_v9 = vpop.permute.xlu1 %2247  ;;  %v2130_v21 = vpop.permute.xlu0 %2129 }
 0x551   : > { %v2152_v24 = vsel %vm484_vm0, %v2128_v10, %v2130_v21  ;;  %v2280_v0 = vsel %vm554_vm1, %v2246_v46, %v5766_v9 }
 0x552   : > { %2357 = vmatprep.subr.bf16.mxu0 %v2152_v24 }
 0x553   : > { %2358 = vmatpush1.bf16.msra.mxu0 %v2151_v48 }
 0x554   : > { %v2114_v20 = vpop.permute.xlu1 %2113  ;;  %v2198_v32 = vpop.permute.xlu0 %2197  ;;  %2359 = vmatprep.subr.bf16.mxu0 %v2212_v30 }
 0x555   : > { %v2220_v35 = vsel %vm519_vm2, %v2196_v47, %v2198_v32  ;;  %v2145_v53 = vsel %vm484_vm0, %v2112_v16, %v2114_v20 }
 0x557   : > { %2360 = vmatpush1.bf16.msra.mxu0 %v2211_v34 }
 0x558   : > { %v2182_v37 = vpop.permute.xlu1 %2181  ;;  %v5773_v40 = vpop.permute.xlu0 %2265  ;;  %2361 = vmatprep.subr.bf16.mxu0 %v2220_v35 }
 0x559   : > { %v2288_v55 = vsel %vm554_vm1, %v2264_v44, %v5773_v40 }
 0x55b   : > { %2362 = vmatpush1.bf16.msra.mxu0 %v2219_v52 }
 0x55c   : > { %v2250_v27 = vpop.permute.xlu1 %2249  ;;  %v2132_v58 = vpop.permute.xlu0 %2131  ;;  %2363 = vmatprep.subr.bf16.mxu0 %v2280_v0 }
 0x55d   : > { %v2281_v2 = vsel %vm554_vm1, %v5766_v9, %v2250_v27 }
 0x55f   : > { %2364 = vmatpush1.bf16.msra.mxu0 %v2279_v28 }
 0x560   : > { %v2134_v25 = vpop.permute.xlu1 %2133  ;;  %v2200_v43 = vpop.permute.xlu0 %2199  ;;  %2365 = vmatprep.subr.bf16.mxu0 %v2288_v55 }
 0x561   : > { %v2221_v42 = vsel %vm519_vm2, %v2198_v32, %v2200_v43 }
 0x563   : > { %2366 = vmatpush1.bf16.msra.mxu0 %v2287_v45 }
 0x564   : > { %v2186_v22 = vpop.permute.xlu1 %2185  ;;  %v2268_v5 = vpop.permute.xlu0 %2267  ;;  %2457 = vmatprep.subr.bf16.mxu0 %v5658_v13  ;;  %v5799_v13 = vld [vmem:[%s7625_s7 + $0x8] sm:$0xff]  }
 0x565   : > { %v2289_v44 = vsel %vm554_vm1, %v5773_v40, %v2268_v5 }
 0x566   : > { %2384 = vmatmul.mubr.bf16.vlgmr.msra.gmra.mrb[48].mxu0 %v5785_v23 }
 0x567   : > { %2458 = vmatpush1.bf16.msra.mxu0 %v5655_v6  ;;  %2393 = vmatprep.mubr.bf16.mxu0 %v4800_v15  ;;  %v2154_v6 = vsel %vm484_vm0, %v2132_v58, %v2134_v25 }
 0x568   : > { %v5791_v50 = vpop.permute.xlu1 %2201  ;;  %v2116_v51 = vpop.permute.xlu0 %2115  ;;  %2459 = vmatprep.subr.bf16.mxu0 %v5670_v39  ;;  %v2153_v39 = vsel %vm484_vm0, %v2130_v21, %v2132_v58 }
 0x569   : > { %v2146_v12 = vsel %vm484_vm0, %v2114_v20, %v2116_v51  ;;  %v2222_v56 = vsel %vm519_vm2, %v2200_v43, %v5791_v50 }
 0x56a   : > { %2408 = vmatprep.subr.bf16.mxu1 %v2146_v12 }
 0x56b   : > { %2409 = vmatpush1.bf16.msra.mxu1 %v2145_v53  ;;  %2460 = vmatpush1.bf16.msra.mxu0 %v5668_v36  ;;  %v2213_v36 = vsel %vm519_vm2, %v2180_v19, %v2182_v37  ;;  %v4735_v19 = vunpack.i.l.bf16 %v5756_v26 }
 0x56c   : > { %v5803_v59 = vpop.permute.xlu1 %2269  ;;  %2410 = vmatprep.subr.bf16.mxu1 %v2154_v6  ;;  %v2184_v18 = vpop.permute.xlu0 %2183  ;;  %v4077_v6 = vld [vmem:[#allocation5 + $0x4a0] ss:$36 sps:$4 sm:$0xff]  }
 0x56d   : > { %v2214_v17 = vsel %vm519_vm2, %v2182_v37, %v2184_v18  ;;  %v2290_v4 = vsel %vm554_vm1, %v2268_v5, %v5803_v59  ;;  %v2215_v31 = vsel %vm519_vm2, %v2184_v18, %v2186_v22  ;;  %v5870_v18 = vunpack.c.h.bf16 %v4800_v15 }
 0x56e   : > { %2394 = vmatmul.mubr.bf16.gmra.mrb[52].mxu0 %v5799_v13 }
 0x56f   : > { %2411 = vmatpush1.bf16.msra.mxu1 %v2153_v39  ;;  %2489 = vmatprep.mubr.bf16.mxu0 %v4800_v15  ;;  %7809 = vst [vmem:[#allocation9_spill] sm:$0xff] %v5870_v18  ;;  %v4101_v39 = vunpack.c.l.bf16 %v4077_v6 }
 0x570   : > { %v2204_v54 = vpop.permute.xlu1 %2203  ;;  %2412 = vmatprep.subr.bf16.mxu1 %v2214_v17  ;;  %v5809_v33 = vpop.permute.xlu0 %2251  ;;  %v4110_v17 = vunpack.c.h.bf16 %v4077_v6 }
 0x571   : > { %v2282_v41 = vsel %vm554_vm1, %v2250_v27, %v5809_v33  ;;  %v2223_v24 = vsel %vm519_vm2, %v5791_v50, %v2204_v54 }
 0x573   : > { %2413 = vmatpush1.bf16.msra.mxu1 %v2213_v36  ;;  %v5874_v36 = vld [vmem:[#allocation5 + $0x4a4] sm:$0xff] }
 0x574   : > { %v2120_v57 = vpop.permute.xlu1 %2119  ;;  %2414 = vmatprep.subr.bf16.mxu1 %v2222_v56  ;;  %v2118_v7 = vpop.permute.xlu0 %2117  ;;  %v5878_v56 = vld [vmem:[#allocation5 + $0x534] sm:$0xff] }
 0x575   : > { %v2147_v62 = vsel %vm484_vm0, %v2116_v51, %v2118_v7  ;;  %v2148_v61 = vsel %vm484_vm0, %v2118_v7, %v2120_v57 }
 0x576   : > { %2461 = vmatprep.subr.bf16.mxu0 %v2148_v61  ;;  %v6068_v61 = vld [vmem:[#allocation5 + $0x3c] sm:$0xff] }
 0x577   : > { %2415 = vmatpush1.bf16.msra.mxu1 %v2221_v42  ;;  %2462 = vmatpush1.bf16.msra.mxu0 %v2147_v62  ;;  %v6066_v42 = vld [vmem:[#allocation5 + $0x18] sm:$0xff]  ;;  %7834 = vst [vmem:[#allocation34_spill] sm:$0xff] %v6068_v61  ;;  %v6134_v61 = vld [vmem:[#allocation5 + $0xe8] sm:$0xff] }
 0x578   : > { %v2190_v63 = vpop.permute.xlu1 %2189  ;;  %2416 = vmatprep.subr.bf16.mxu1 %v2282_v41  ;;  %v4739_v1 = vpop.permute.xlu0 %4738  ;;  %v6060_v41 = vld [vmem:[#allocation5 + $0x34] sm:$0xff]  ;;  %7833 = vst [vmem:[#allocation33_spill] sm:$0xff] %v6066_v42  ;;  %v6125_v42 = vld [vmem:[#allocation5 + $0x120] sm:$0xff]  ;;  %7846 = vst [vmem:[#allocation46_spill] sm:$0xff] %v6134_v61  ;;  %v7860_v61 = vunpack.c.h.bf16 %v5874_v36 }
 0x579   : > { %v4740_v30 = vunpack.i.l.bf16 %v4739_v1  ;;  %v4741_v40 = vunpack.i.h.bf16 %v4739_v1  ;;  %v5890_v1 = vld [vmem:[#allocation5 + $0x558] sm:$0xff]  ;;  %7831 = vst [vmem:[#allocation31_spill] sm:$0xff] %v6060_v41  ;;  %7844 = vst [vmem:[#allocation44_spill] sm:$0xff] %v6125_v42 }
 0x57b   : > { %2417 = vmatpush1.bf16.msra.mxu1 %v2281_v2  ;;  %v2218_v34 = vsel %vm519_vm2, %v2190_v63, %v4740_v30  ;;  %v5892_v2 = vld [vmem:[#allocation5 + $0x57c] sm:$0xff]  ;;  %v5912_v30 = vld [vmem:[#allocation5 + $0x24] sm:$0xff] }
 0x57c   : > { %v2138_v8 = vpop.permute.xlu1 %2137  ;;  %2418 = vmatprep.subr.bf16.mxu1 %v2290_v4  ;;  %v2136_v10 = vpop.permute.xlu0 %2135  ;;  %v6053_v4 = vld [vmem:[#allocation5 + $0x10] sm:$0xff] }
 0x57d   : > { %v2155_v3 = vsel %vm484_vm0, %v2134_v25, %v2136_v10  ;;  %v2156_v47 = vsel %vm484_vm0, %v2136_v10, %v2138_v8  ;;  %v5896_v10 = vld [vmem:[#allocation5 + $0x488] sm:$0xff]  ;;  %7829 = vst [vmem:[#allocation29_spill] sm:$0xff] %v6053_v4 }
 0x57e   : > { %2463 = vmatprep.subr.bf16.mxu0 %v2156_v47 }
 0x57f   : > { %2419 = vmatpush1.bf16.msra.mxu1 %v2289_v44  ;;  %2464 = vmatpush1.bf16.msra.mxu0 %v2155_v3  ;;  %v4251_v44 = vld [vmem:[#allocation5 + $0x530] ss:$36 sps:$4 sm:$0xff]  }
 0x580   : > { %2510 = vmatprep.subr.bf16.mxu1 %v5690_v60  ;;  %v2188_v14 = vpop.permute.xlu0 %2187  ;;  %v2256_v11 = vpop.permute.xlu1 %2255  ;;  %v6031_v3 = vld [vmem:[#allocation5 + $0x58c] sm:$0xff] }
 0x581   : > { %v2216_v16 = vsel %vm519_vm2, %v2186_v22, %v2188_v14  ;;  %v2217_v0 = vsel %vm519_vm2, %v2188_v14, %v2190_v63  ;;  %7825 = vst [vmem:[#allocation25_spill] sm:$0xff] %v6031_v3  ;;  %v6106_v14 = vld [vmem:[#allocation5 + $0xc4] sm:$0xff] }
 0x582   : > { %2437 = vmatmul.mubr.bf16.vlgmr.msra.gmra.mrb[48].mxu1 %v5785_v23  ;;  %2465 = vmatprep.subr.bf16.mxu0 %v2216_v16  ;;  %7841 = vst [vmem:[#allocation41_spill] sm:$0xff] %v6106_v14 }
 0x583   : > { %2466 = vmatpush1.bf16.msra.mxu0 %v2215_v31  ;;  %2511 = vmatpush1.bf16.msra.mxu1 %v5688_v49  ;;  %v5902_v31 = vld [vmem:[#allocation5 + $0x4ac] sm:$0xff] }
 0x584   : > { %2512 = vmatprep.subr.bf16.mxu1 %v5706_v38  ;;  %v2122_v46 = vpop.permute.xlu0 %2121  ;;  %2446 = vmatprep.mubr.bf16.mxu1 %v4800_v15  ;;  %v2260_v49 = vpop.permute.xlu1 %2259  ;;  %v4736_v38 = vunpack.i.h.bf16 %v5756_v26 }
 0x585   : > { %v2150_v60 = vsel %vm484_vm0, %v2122_v46, %v4735_v19  ;;  %v2149_v48 = vsel %vm484_vm0, %v2120_v57, %v2122_v46  ;;  %v5880_v57 = vld [vmem:[#allocation5 + $0x4c8] sm:$0xff] }
 0x587   : > { %2513 = vmatpush1.bf16.msra.mxu1 %v5704_v29 }
 0x588   : > { %2514 = vmatprep.subr.bf16.mxu1 %v2150_v60  ;;  %v2206_v9 = vpop.permute.xlu0 %2205  ;;  %v2208_v35 = vpop.permute.xlu1 %2207 }
 0x589   : > { %v2224_v21 = vsel %vm519_vm2, %v2204_v54, %v2206_v9  ;;  %v2226_v27 = vsel %vm519_vm2, %v2208_v35, %v4741_v40  ;;  %v2225_v28 = vsel %vm519_vm2, %v2206_v9, %v2208_v35  ;;  %v4087_v54 = vld [vmem:[#allocation5 + $0x4e8] ss:$36 sps:$4 sm:$0xff]   ;;  %v5906_v9 = vld [vmem:[#allocation5] sm:$0xff]  ;;  %v4284_v35 = vunpack.c.h.bf16 %v4251_v44  ;;  %v5920_v40 = vld [vmem:[#allocation5 + $0x4d0] sm:$0xff] }
 0x58a   : > { %2447 = vmatmul.mubr.bf16.gmra.mrb[52].mxu1 %v5799_v13  ;;  %2467 = vmatprep.subr.bf16.mxu0 %v2224_v21  ;;  %v4119_v7 = vunpack.c.l.bf16 %v4087_v54  ;;  %v4128_v46 = vunpack.c.h.bf16 %v4087_v54  ;;  %v5941_v54 = vld [vmem:[#allocation5 + $0x6c] sm:$0xff] }
 0x58b   : > { %2468 = vmatpush1.bf16.msra.mxu0 %v2223_v24  ;;  %2515 = vmatpush1.bf16.msra.mxu1 %v2149_v48  ;;  %v4261_v24 = vld [vmem:[#allocation5 + $0x578] ss:$36 sps:$4 sm:$0xff]   ;;  %v6010_v21 = vld [vmem:[#allocation5 + $0x54c] sm:$0xff]  ;;  %v6023_v48 = vld [vmem:[#allocation5 + $0x504] sm:$0xff] }
 0x58c   : > { %v2140_v29 = vpop.permute.xlu0 %2139  ;;  %2542 = vmatprep.mubr.bf16.mxu1 %v4800_v15  ;;  %v2274_v55 = vpop.permute.xlu1 %2273  ;;  %v4302_v6 = vunpack.c.h.bf16 %v4261_v24  ;;  %7821 = vst [vmem:[#allocation21_spill] sm:$0xff] %v6010_v21  ;;  %7823 = vst [vmem:[#allocation23_spill] sm:$0xff] %v6023_v48 }
 0x58d   : > { %v2157_v20 = vsel %vm484_vm0, %v2138_v8, %v2140_v29  ;;  %v2158_v32 = vsel %vm484_vm0, %v2140_v29, %v4736_v38  ;;  %v6014_v38 = vld [vmem:[#allocation5 + $0x74] sm:$0xff] }
 0x58e   : > { %2516 = vmatprep.subr.bf16.mxu1 %v2158_v32  ;;  %v5917_v32 = vld [vmem:[#allocation5 + $0x53c] sm:$0xff]  ;;  %v6039_v29 = vld [vmem:[#allocation5 + $0x594] sm:$0xff] }
 0x58f   : > { %2517 = vmatpush1.bf16.msra.mxu1 %v2157_v20  ;;  %v5915_v20 = vld [vmem:[#allocation5 + $0x518] sm:$0xff]  ;;  %7827 = vst [vmem:[#allocation27_spill] sm:$0xff] %v6039_v29 }
 0x590   : > { %v2254_v37 = vpop.permute.xlu0 %2253  ;;  %2518 = vmatprep.subr.bf16.mxu1 %v2218_v34  ;;  %v2278_v50 = vpop.permute.xlu1 %2277  ;;  %v4275_v34 = vunpack.c.l.bf16 %v4251_v44  ;;  %v5975_v44 = vld [vmem:[#allocation5 + $0x498] sm:$0xff] }
 0x591   : > { %v2283_v26 = vsel %vm554_vm1, %v5809_v33, %v2254_v37  ;;  %v2284_v52 = vsel %vm554_vm1, %v2254_v37, %v2256_v11  ;;  %v5872_v33 = vld [vmem:[#allocation5 + $0x480] sm:$0xff]  ;;  %7812 = vst [vmem:[#allocation12_spill] sm:$0xff] %v5975_v44 }
 0x592   : > { %2469 = vmatprep.subr.bf16.mxu0 %v2284_v52  ;;  %v5998_v52 = vld [vmem:[#allocation5 + $0x4fc] sm:$0xff] }
 0x593   : > { %2470 = vmatpush1.bf16.msra.mxu0 %v2283_v26  ;;  %2519 = vmatpush1.bf16.msra.mxu1 %v2217_v0  ;;  %v5996_v0 = vld [vmem:[#allocation5 + $0x4d8] sm:$0xff]  ;;  %7819 = vst [vmem:[#allocation19_spill] sm:$0xff] %v5998_v52  ;;  %v6037_v26 = vld [vmem:[#allocation5 + $0x570] sm:$0xff] }
 0x594   : > { %v2258_v58 = vpop.permute.xlu0 %2257  ;;  %2520 = vmatprep.subr.bf16.mxu1 %v2226_v27  ;;  %7818 = vst [vmem:[#allocation18_spill] sm:$0xff] %v5996_v0  ;;  %7826 = vst [vmem:[#allocation26_spill] sm:$0xff] %v6037_v26  ;;  %v6055_v27 = vld [vmem:[#allocation5 + $0xbc] sm:$0xff] }
 0x595   : > { %v2286_v25 = vsel %vm554_vm1, %v2258_v58, %v2260_v49  ;;  %v2285_v5 = vsel %vm554_vm1, %v2256_v11, %v2258_v58  ;;  %v5926_v58 = vld [vmem:[#allocation5 + $0x4f4] sm:$0xff]  ;;  %v6029_v49 = vld [vmem:[#allocation5 + $0x568] sm:$0xff]  ;;  %7830 = vst [vmem:[#allocation30_spill] sm:$0xff] %v6055_v27 }
 0x596   : > { %7824 = vst [vmem:[#allocation24_spill] sm:$0xff] %v6029_v49 }
 0x597   : > { %2521 = vmatpush1.bf16.msra.mxu1 %v2225_v28  ;;  %v4164_v28 = vmul.f32 %v4128_v46, %v5870_v18  ;;  %v5987_v46 = vld [vmem:[#allocation5 + $0xfc] sm:$0xff] }
 0x598   : > { %v2272_v43 = vpop.permute.xlu0 %2271  ;;  %2522 = vmatprep.subr.bf16.mxu1 %v2286_v25  ;;  %v4293_v25 = vunpack.c.l.bf16 %v4261_v24  ;;  %7815 = vst [vmem:[#allocation15_spill] sm:$0xff] %v5987_v46 }
 0x599   : > { %v2291_v45 = vsel %vm554_vm1, %v5803_v59, %v2272_v43  ;;  %v2292_v22 = vsel %vm554_vm1, %v2272_v43, %v2274_v55  ;;  %v5867_v59 = vunpack.c.l.bf16 %v4800_v15  ;;  %v6083_v43 = vld [vmem:[#allocation5 + $0x7c] sm:$0xff] }
 0x59a   : > { %2471 = vmatprep.subr.bf16.mxu0 %v2292_v22  ;;  %7837 = vst [vmem:[#allocation37_spill] sm:$0xff] %v6083_v43 }
 0x59b   : > { %2472 = vmatpush1.bf16.msra.mxu0 %v2291_v45  ;;  %2523 = vmatpush1.bf16.msra.mxu1 %v2285_v5  ;;  %7808 = vst [vmem:[#allocation8_spill] sm:$0xff] %v5867_v59  ;;  %v4137_v62 = vmul.f32 %v4101_v39, %v5867_v59  ;;  %v4155_v19 = vmul.f32 %v4119_v7, %v5867_v59  ;;  %v5932_v5 = vld [vmem:[#allocation5 + $0x48] sm:$0xff]  ;;  %v5956_v7 = vld [vmem:[#allocation5 + $0x490] sm:$0xff] }
 0x59c   : > { %v2276_v51 = vpop.permute.xlu0 %2275  ;;  %v4311_v39 = vmul.f32 %v4275_v34, %v5867_v59  ;;  %v4329_v24 = vmul.f32 %v4293_v25, %v5867_v59  ;;  %v4338_v25 = vmul.f32 %v4302_v6, %v5870_v18  ;;  %v5967_v45 = vld [vmem:[#allocation5 + $0x8] sm:$0xff]  ;;  %v5985_v34 = vld [vmem:[#allocation5 + $0xd8] sm:$0xff] }
 0x59d   : > { %v2293_v12 = vsel %vm554_vm1, %v2274_v55, %v2276_v51  ;;  %v2294_v53 = vsel %vm554_vm1, %v2276_v51, %v2278_v50  ;;  %7814 = vst [vmem:[#allocation14_spill] sm:$0xff] %v5985_v34  ;;  %v5989_v51 = vld [vmem:[#allocation5 + $0x520] sm:$0xff]  ;;  %v2695_v34 = vld [vmem:[#allocation5 + $0x68] ss:$36 sps:$4 sm:$0xff]  }
 0x59e   : > { %2490 = vmatmul.mubr.bf16.vlgmr.msra.gmra.mrb[56].mxu0 %v5785_v23  ;;  %2524 = vmatprep.subr.bf16.mxu1 %v2294_v53  ;;  %v5937_v53 = vld [vmem:[#allocation5 + $0x560] sm:$0xff]  ;;  %7816 = vst [vmem:[#allocation16_spill] sm:$0xff] %v5989_v51  ;;  %v2727_v3 = vunpack.c.l.bf16 %v2695_v34  ;;  %v2736_v49 = vunpack.c.h.bf16 %v2695_v34 }
 0x59f   : > { %2525 = vmatpush1.bf16.msra.mxu1 %v2293_v12  ;;  %2499 = vmatprep.mubr.bf16.mxu0 %v4800_v15  ;;  %v5954_v12 = vld [vmem:[#allocation5 + $0xb4] sm:$0xff]  ;;  %v5991_v50 = vld [vmem:[#allocation5 + $0x544] sm:$0xff] }
 0x5a0   : > { %7810 = vst [vmem:[#allocation10_spill] sm:$0xff] %v5954_v12  ;;  %7817 = vst [vmem:[#allocation17_spill] sm:$0xff] %v5991_v50  ;;  %v2763_v43 = vmul.f32 %v2727_v3, %v5867_v59 }
 0x5a2   : > { %2543 = vmatmul.mubr.bf16.vlgmr.msra.gmra.mrb[56].mxu1 %v5785_v23  ;;  %v5876_v23 = vld [vmem:[#allocation5 + $0x510] sm:$0xff] }
 0x5a3   : > { %2552 = vmatprep.mubr.bf16.mxu1 %v4800_v15  ;;  %v4146_v15 = vmul.f32 %v4110_v17, %v5870_v18  ;;  %v4320_v17 = vmul.f32 %v4284_v35, %v5870_v18  ;;  %v5952_v35 = vld [vmem:[#allocation5 + $0x90] sm:$0xff] }
 0x5a5   : > { %v4237_v60 = vadd.f32 %v4146_v15, %v4137_v62  ;;  %v5945_v15 = vld [vmem:[#allocation5 + $0x584] sm:$0xff]  ;;  %v4411_v22 = vadd.f32 %v4320_v17, %v4311_v39  ;;  %v5970_v62 = vld [vmem:[#allocation5 + $0x2c] sm:$0xff] }
 0x5a6   : > { %2500 = vmatmul.mubr.bf16.gmra.mrb[60].mxu0 %v5799_v13  ;;  %v2685_v17 = vld [vmem:[#allocation5 + $0x20] ss:$36 sps:$4 sm:$0xff]  }
 0x5a7   : > { %v4238_v55 = vadd.f32 %v4237_v60, %v4155_v19  ;;  %v5962_v19 = vld [vmem:[#allocation5 + $0x4b4] sm:$0xff]  ;;  %v4412_v39 = vadd.f32 %v4411_v22, %v4329_v24  ;;  %v6008_v24 = vld [vmem:[#allocation5 + $0x528] sm:$0xff]  ;;  %v2709_v8 = vunpack.c.l.bf16 %v2685_v17 }
 0x5a8   : > { %7811 = vst [vmem:[#allocation11_spill] sm:$0xff] %v5962_v19  ;;  %7820 = vst [vmem:[#allocation20_spill] sm:$0xff] %v6008_v24  ;;  %v6132_v24 = vld [vmem:[#allocation5 + $0x144] sm:$0xff] }
 0x5a9   : > { %v4239_v60 = vadd.f32 %v4238_v55, %v4164_v28  ;;  %v5977_v28 = vld [vmem:[#allocation5 + $0x4bc] sm:$0xff]  ;;  %v4413_v55 = vadd.f32 %v4412_v39, %v4338_v25  ;;  %v6004_v39 = vld [vmem:[#allocation5 + $0x50] sm:$0xff]  ;;  %v2745_v34 = vmul.f32 %v2709_v8, %v5867_v59  ;;  %v2772_v8 = vmul.f32 %v2736_v49, %v5870_v18  ;;  %7845 = vst [vmem:[#allocation45_spill] sm:$0xff] %v6132_v24 }
 0x5aa   : > { %2553 = vmatmul.mubr.bf16.gmra.mrb[60].mxu1 %v5799_v13  ;;  %v5882_v13 = vld [vmem:[#allocation5 + $0x4ec] sm:$0xff]  ;;  %7813 = vst [vmem:[#allocation13_spill] sm:$0xff] %v5977_v28 }
 0x5ab   : > { %v4240_v6 = vrot.slane %v4239_v60, 4  ;;  %v4414_v25 = vrot.slane %v4413_v55, 4  ;;  %v7871_v19 = vunpack.c.l.bf16 %v5882_v13 }
 0x5ad   : > { %v4241_v37 = vadd.f32 %v4240_v6, %v4239_v60  ;;  %v6018_v6 = vld [vmem:[#allocation5 + $0x4e0] sm:$0xff]  ;;  %v4415_v47 = vadd.f32 %v4414_v25, %v4413_v55  ;;  %v6047_v55 = vld [vmem:[#allocation5 + $0x98] sm:$0xff]  ;;  %v6099_v21 = vpop.permute.xlu0 %2321 }
 0x5ae   : > { %7822 = vst [vmem:[#allocation22_spill] sm:$0xff] %v6018_v6  ;;  %7828 = vst [vmem:[#allocation28_spill] sm:$0xff] %v6047_v55  ;;  %v6062_v25 = vld [vmem:[#allocation5 + $0xe0] sm:$0xff]  ;;  %v2718_v55 = vunpack.c.h.bf16 %v2685_v17  ;;  %v7854_v6 = vunpack.c.l.bf16 %v5872_v33 }
 0x5af   : > { %v4242_v60 = vrot.slane %v4241_v37, 2  ;;  %v4416_v11 = vrot.slane %v4415_v47, 2  ;;  %7832 = vst [vmem:[#allocation32_spill] sm:$0xff] %v6062_v25  ;;  %v6104_v25 = vld [vmem:[#allocation5 + $0xa0] sm:$0xff] }
 0x5b0   : > { %7840 = vst [vmem:[#allocation40_spill] sm:$0xff] %v6104_v25  ;;  %v2754_v26 = vmul.f32 %v2718_v55, %v5870_v18  ;;  %v6138_v25 = vld [vmem:[#allocation5 + $0x10c] sm:$0xff] }
 0x5b1   : > { %v4243_v16 = vadd.f32 %v4242_v60, %v4241_v37  ;;  %v4417_v22 = vadd.f32 %v4416_v11, %v4415_v47  ;;  %v6070_v37 = vld [vmem:[#allocation5 + $0x104] sm:$0xff]  ;;  %v6081_v60 = vld [vmem:[#allocation5 + $0x58] sm:$0xff]  ;;  %7847 = vst [vmem:[#allocation47_spill] sm:$0xff] %v6138_v25 }
 0x5b2   : > { %7835 = vst [vmem:[#allocation35_spill] sm:$0xff] %v6070_v37  ;;  %7836 = vst [vmem:[#allocation36_spill] sm:$0xff] %v6081_v60  ;;  %v6088_v47 = vld [vmem:[#allocation5 + $0x60] sm:$0xff]  ;;  %v6111_v60 = vld [vmem:[#allocation5 + $0xa8] sm:$0xff] }
 0x5b3   : > { %v4244_v29 = vrot.slane %v4243_v16, 1  ;;  %v4418_v27 = vrot.slane %v4417_v22, 1  ;;  %7838 = vst [vmem:[#allocation38_spill] sm:$0xff] %v6088_v47  ;;  %v6090_v11 = vld [vmem:[#allocation5 + $0x84] sm:$0xff]  ;;  %7842 = vst [vmem:[#allocation42_spill] sm:$0xff] %v6111_v60  ;;  %v2845_v47 = vadd.f32 %v2754_v26, %v2745_v34  ;;  %v6143_v26 = vpop.permute.xlu0 %2331 }
 0x5b4   : > { %7839 = vst [vmem:[#allocation39_spill] sm:$0xff] %v6090_v11 }
 0x5b5   : > { %v4245_v50 = vadd.f32 %v4244_v29, %v4243_v16  ;;  %v4419_v37 = vadd.f32 %v4418_v27, %v4417_v22  ;;  %v6113_v16 = vpop.permute.xlu1 %2326  ;;  %v6121_v22 = vld [vmem:[#allocation5 + $0xcc] sm:$0xff]  ;;  %v2846_v48 = vadd.f32 %v2845_v47, %v2763_v43 }
 0x5b6   : > { %7843 = vst [vmem:[#allocation43_spill] sm:$0xff] %v6121_v22 }
 0x5b7   : > { %v4498_v49 = vsel %vm4420_vm4, %v4245_v50, %v4419_v37 }
 0x639   : > { %v2385_v17 = vpop.f32.mrb[48].mxu0 }
 0x63a   : > { %v2386_v46 = vadd.f32 %v2385_v17, %v6099_v21  ;;  %v2387_v63 = vpop.f32.mrb[49].mxu0 }
 0x63b   : > { %v2388_v29 = vadd.f32 %v2387_v63, %v6099_v21  ;;  %v2389_v41 = vpop.f32.mrb[50].mxu0 }
 0x63c   : > { %v2390_v17 = vadd.f32 %v2389_v41, %v6113_v16  ;;  %v2391_v27 = vpop.f32.mrb[51].mxu0  ;;  %v2563_v41 = vmax.f32 %v2386_v46, 0.0  ;;  %v6153_v46 = vld [vmem:[#allocation5 + $0xf0] sm:$0xff] }
 0x63d   : > { %v2392_v63 = vadd.f32 %v2391_v27, %v6113_v16  ;;  %v2564_v55 = vmax.f32 %v2388_v29, 0.0  ;;  %v6146_v29 = vsel %vm4430_vm5, %v4498_v49, 0.0  ;;  %7849 = vst [vmem:[#allocation49_spill] sm:$0xff] %v6153_v46 }
 0x63e   : > { %v2571_v11 = vmax.f32 %v2390_v17, 0.0  ;;  %7848 = vst [vmem:[#allocation48_spill] sm:$0xff] %v6146_v29  ;;  %v6148_v17 = vld [vmem:[#allocation5 + $0xb0] ss:$36 sps:$4 sm:$0xff]  }
 0x63f   : > { %v2572_v51 = vmax.f32 %v2392_v63, 0.0  ;;  %v2892_v24 = vunpack.c.h.bf16 %v6148_v17 }
 0x640   : > { %v2595_v4 = vpack.c.bf16 %v2571_v11, %v2563_v41  ;;  %v6164_v11 = vld [vmem:[#allocation5 + $0xf8] ss:$36 sps:$4 sm:$0xff]  }
 0x641   : > { %v2596_v37 = vpack.c.bf16 %v2572_v51, %v2564_v55  ;;  %v2395_v34 = vpop.f32.mrb[52].mxu0  ;;  %v6157_v55 = vpop.permute.xlu1 %2336  ;;  %v2883_v51 = vunpack.c.l.bf16 %v6148_v17  ;;  %v2901_v60 = vunpack.c.l.bf16 %v6164_v11 }
 0x642   : > { %v2396_v41 = vadd.f32 %v2395_v34, %v6143_v26  ;;  %v2397_v27 = vpop.f32.mrb[53].mxu0  ;;  %v6159_v49 = vunpack.c.l.bf16 %v2595_v4  ;;  %v6161_v3 = vunpack.c.h.bf16 %v2595_v4  ;;  %v2847_v34 = vadd.f32 %v2846_v48, %v2772_v8 }
 0x643   : > { %v2398_v63 = vadd.f32 %v2397_v27, %v6143_v26  ;;  %v2399_v12 = vpop.f32.mrb[54].mxu0  ;;  %v6167_v43 = vunpack.c.l.bf16 %v2596_v37  ;;  %v6172_v42 = vunpack.c.h.bf16 %v2596_v37  ;;  %v7855_v37 = vunpack.c.l.bf16 %v5874_v36 }
 0x644   : > { %7850 = vst [vmem:[#allocation50_spill] sm:$0xff] %v6159_v49  ;;  %7851 = vst [vmem:[#allocation51_spill] sm:$0xff] %v6161_v3  ;;  %v2400_v47 = vadd.f32 %v2399_v12, %v6157_v55  ;;  %v2401_v50 = vpop.f32.mrb[55].mxu0  ;;  %v2579_v22 = vmax.f32 %v2396_v41, 0.0  ;;  %v4129_v52 = vmul.f32 %v7854_v6, %v6159_v49  ;;  %v7857_v41 = vunpack.c.h.bf16 %v5872_v33 }
 0x645   : > { %7852 = vst [vmem:[#allocation52_spill] sm:$0xff] %v6167_v43  ;;  %7853 = vst [vmem:[#allocation53_spill] sm:$0xff] %v6172_v42  ;;  %v2402_v4 = vadd.f32 %v2401_v50, %v6157_v55  ;;  %v2580_v29 = vmax.f32 %v2398_v63, 0.0  ;;  %v4138_v17 = vmul.f32 %v7855_v37, %v6161_v3  ;;  %v6184_v50 = vld [vmem:[#allocation5 + $0x114] sm:$0xff]  ;;  %v7858_v48 = vunpack.c.l.bf16 %v5876_v23 }
 0x646   : > { %v2587_v14 = vmax.f32 %v2400_v47, 0.0  ;;  %7856 = vst [vmem:[#allocation54_spill] sm:$0xff] %v6184_v50  ;;  %v4130_v47 = vmul.f32 %v7857_v41, %v6167_v43  ;;  %v7859_v63 = vunpack.c.l.bf16 %v5878_v56  ;;  %v4139_v37 = vmul.f32 %v7860_v61, %v6172_v42 }
 0x647   : > { %v2588_v12 = vmax.f32 %v2402_v4, 0.0  ;;  %v4303_v8 = vmul.f32 %v7858_v48, %v6159_v49  ;;  %v7862_v33 = vunpack.c.h.bf16 %v5878_v56  ;;  %v2848_v61 = vrot.slane %v2847_v34, 4 }
 0x648   : > { %v2603_v27 = vpack.c.bf16 %v2587_v14, %v2579_v22  ;;  %v4312_v4 = vmul.f32 %v7859_v63, %v6161_v3  ;;  %v7861_v14 = vunpack.c.h.bf16 %v5876_v23  ;;  %v2910_v23 = vunpack.c.h.bf16 %v6164_v11 }
 0x649   : > { %v2604_v6 = vpack.c.bf16 %v2588_v12, %v2580_v29  ;;  %v4313_v41 = vmul.f32 %v7862_v33, %v6172_v42  ;;  %v7867_v63 = vunpack.c.l.bf16 %v5880_v57  ;;  %v7869_v29 = vunpack.c.h.bf16 %v5880_v57 }
 0x64a   : > { %v4304_v22 = vmul.f32 %v7861_v14, %v6167_v43  ;;  %v6204_v46 = vunpack.c.l.bf16 %v2603_v27  ;;  %v6206_v48 = vunpack.c.h.bf16 %v2603_v27  ;;  %v4165_v14 = vadd.f32 %v4138_v17, %v4129_v52 }
 0x64b   : > { %v6210_v12 = vunpack.c.l.bf16 %v2604_v6  ;;  %v6212_v36 = vunpack.c.h.bf16 %v2604_v6  ;;  %v7868_v27 = vunpack.c.l.bf16 %v5890_v1  ;;  %v4339_v28 = vadd.f32 %v4312_v4, %v4303_v8 }
 0x64c   : > { %7863 = vst [vmem:[#allocation55_spill] sm:$0xff] %v6204_v46  ;;  %7864 = vst [vmem:[#allocation56_spill] sm:$0xff] %v6206_v48  ;;  %v4147_v56 = vmul.f32 %v7867_v63, %v6204_v46  ;;  %v4174_v25 = vadd.f32 %v4139_v37, %v4130_v47  ;;  %v7870_v6 = vunpack.c.h.bf16 %v5890_v1  ;;  %v4348_v11 = vadd.f32 %v4313_v41, %v4304_v22 }
 0x64d   : > { %7865 = vst [vmem:[#allocation57_spill] sm:$0xff] %v6210_v12  ;;  %7866 = vst [vmem:[#allocation58_spill] sm:$0xff] %v6212_v36  ;;  %v4321_v33 = vmul.f32 %v7868_v27, %v6204_v46  ;;  %v4148_v0 = vmul.f32 %v7869_v29, %v6210_v12  ;;  %v4156_v63 = vmul.f32 %v7871_v19, %v6206_v48  ;;  %v7872_v17 = vunpack.c.l.bf16 %v5892_v2 }
 0x64e   : > { %v4322_v44 = vmul.f32 %v7870_v6, %v6210_v12  ;;  %v4166_v52 = vadd.f32 %v4165_v14, %v4147_v56  ;;  %v7873_v57 = vunpack.c.h.bf16 %v5882_v13  ;;  %v7874_v1 = vunpack.c.h.bf16 %v5892_v2  ;;  %v6243_v14 = vld [vmem:[#allocation5 + $0x168] sm:$0xff] }
 0x64f   : > { %v4330_v27 = vmul.f32 %v7872_v17, %v6206_v48  ;;  %v4340_v8 = vadd.f32 %v4339_v28, %v4321_v33  ;;  %v4175_v47 = vadd.f32 %v4174_v25, %v4148_v0  ;;  %v6241_v56 = vmul.f32 %v2883_v51, %v5867_v59  ;;  %7876 = vst [vmem:[#allocation60_spill] sm:$0xff] %v6243_v14 }
 0x650   : > { %v4157_v4 = vmul.f32 %v7873_v57, %v6212_v36  ;;  %v4331_v37 = vmul.f32 %v7874_v1, %v6212_v36  ;;  %v4349_v22 = vadd.f32 %v4348_v11, %v4322_v44  ;;  %v4167_v41 = vadd.f32 %v4166_v52, %v4156_v63  ;;  %v6254_v11 = vld [vmem:[#allocation5 + $0x18c] sm:$0xff] }
 0x651   : > { %v4341_v29 = vadd.f32 %v4340_v8, %v4330_v27  ;;  %7875 = vst [vmem:[#allocation59_spill] sm:$0xff] %v6241_v56  ;;  %v2849_v6 = vadd.f32 %v2848_v61, %v2847_v34  ;;  %v6246_v13 = vmul.f32 %v2892_v24, %v5870_v18  ;;  %v6249_v2 = vmul.f32 %v2901_v60, %v5867_v59 }
 0x652   : > { %v4176_v28 = vadd.f32 %v4175_v47, %v4157_v4  ;;  %v4350_v33 = vadd.f32 %v4349_v22, %v4331_v37  ;;  %v4168_v0 = vrot.slane %v4167_v41, 4  ;;  %v6252_v44 = vmul.f32 %v2910_v23, %v5870_v18  ;;  %7880 = vst [vmem:[#allocation64_spill] sm:$0xff] %v6254_v11 }
 0x653   : > { %7877 = vst [vmem:[#allocation61_spill] sm:$0xff] %v6246_v13  ;;  %v4342_v25 = vrot.slane %v4341_v29, 4  ;;  %7878 = vst [vmem:[#allocation62_spill] sm:$0xff] %v6249_v2  ;;  %v7881_v24 = vunpack.c.l.bf16 %v5906_v9  ;;  %v7882_v60 = vunpack.c.l.bf16 %v5912_v30  ;;  %v2850_v47 = vrot.slane %v2849_v6, 2 }
 0x654   : > { %7879 = vst [vmem:[#allocation63_spill] sm:$0xff] %v6252_v44  ;;  %v4177_v51 = vrot.slane %v4176_v28, 4  ;;  %v4351_v63 = vrot.slane %v4350_v33, 4  ;;  %v4169_v34 = vadd.f32 %v4168_v0, %v4167_v41  ;;  %v7886_v59 = vunpack.c.h.bf16 %v5932_v5 }
 0x655   : > { %v4343_v61 = vadd.f32 %v4342_v25, %v4341_v29  ;;  %v2737_v27 = vmul.f32 %v7881_v24, %v6159_v49  ;;  %v2746_v8 = vmul.f32 %v7882_v60, %v6161_v3  ;;  %v2438_v23 = vpop.f32.mrb[48].mxu1  ;;  %v7883_v29 = vunpack.c.h.bf16 %v5906_v9 }
 0x656   : > { %v4178_v57 = vadd.f32 %v4177_v51, %v4176_v28  ;;  %v4352_v4 = vadd.f32 %v4351_v63, %v4350_v33  ;;  %v2439_v37 = vadd.f32 %v2438_v23, %v6099_v21  ;;  %v2440_v22 = vpop.f32.mrb[49].mxu1  ;;  %v4170_v17 = vrot.slane %v4169_v34, 2 }
 0x657   : > { %v4344_v41 = vrot.slane %v4343_v61, 2  ;;  %v2738_v0 = vmul.f32 %v7883_v29, %v6167_v43  ;;  %v2441_v25 = vadd.f32 %v2440_v22, %v6099_v21  ;;  %v2442_v24 = vpop.f32.mrb[50].mxu1  ;;  %v7884_v28 = vunpack.c.h.bf16 %v5912_v30 }
 0x658   : > { %v4179_v52 = vrot.slane %v4178_v57, 2  ;;  %v4353_v60 = vrot.slane %v4352_v4, 2  ;;  %v2443_v51 = vadd.f32 %v2442_v24, %v6113_v16  ;;  %v2444_v63 = vpop.f32.mrb[51].mxu1  ;;  %v7885_v23 = vunpack.c.l.bf16 %v5932_v5 }
 0x659   : > { %v2747_v33 = vmul.f32 %v7884_v28, %v6172_v42  ;;  %v2773_v19 = vadd.f32 %v2746_v8, %v2737_v27  ;;  %v2445_v29 = vadd.f32 %v2444_v63, %v6113_v16  ;;  %v4171_v22 = vadd.f32 %v4170_v17, %v4169_v34 }
 0x65a   : > { %v2755_v1 = vmul.f32 %v7885_v23, %v6204_v46  ;;  %v4345_v18 = vadd.f32 %v4344_v41, %v4343_v61  ;;  %v2756_v14 = vmul.f32 %v7886_v59, %v6210_v12  ;;  %v2565_v30 = vmax.f32 %v2439_v37, 0.0 }
 0x65b   : > { %v2573_v28 = vmax.f32 %v2443_v51, 0.0  ;;  %v4180_v44 = vadd.f32 %v4179_v52, %v4178_v57  ;;  %v4354_v24 = vadd.f32 %v4353_v60, %v4352_v4  ;;  %v2566_v2 = vmax.f32 %v2441_v25, 0.0 }
 0x65c   : > { %v2574_v13 = vmax.f32 %v2445_v29, 0.0  ;;  %v2782_v56 = vadd.f32 %v2747_v33, %v2738_v0  ;;  %v6282_v50 = vadd.f32 %v2850_v47, %v2849_v6  ;;  %v7887_v8 = vunpack.c.l.bf16 %v5941_v54 }
 0x65d   : > { %v2597_v27 = vpack.c.bf16 %v2573_v28, %v2565_v30  ;;  %v2774_v17 = vadd.f32 %v2773_v19, %v2755_v1  ;;  %v7888_v34 = vunpack.c.l.bf16 %v5952_v35  ;;  %v2448_v61 = vpop.f32.mrb[52].mxu1  ;;  %v4172_v52 = vrot.slane %v4171_v22, 1 }
 0x65e   : > { %v2764_v63 = vmul.f32 %v7887_v8, %v6206_v48  ;;  %v2598_v59 = vpack.c.bf16 %v2574_v13, %v2566_v2  ;;  %v4346_v57 = vrot.slane %v4345_v18, 1  ;;  %v7890_v4 = vunpack.c.h.bf16 %v5941_v54  ;;  %v2450_v37 = vpop.f32.mrb[53].mxu1 }
 0x65f   : > { %v6290_v5 = vmul.f32 %v7888_v34, %v6159_v49  ;;  %v2449_v47 = vadd.f32 %v2448_v61, %v6143_v26  ;;  %v4181_v41 = vrot.slane %v4180_v44, 1  ;;  %v4355_v0 = vrot.slane %v4354_v24, 1  ;;  %v2452_v13 = vpop.f32.mrb[54].mxu1 }
 0x660   : > { %v2765_v6 = vmul.f32 %v7890_v4, %v6212_v36  ;;  %v2783_v25 = vadd.f32 %v2782_v56, %v2756_v14  ;;  %v6296_v19 = vunpack.c.l.bf16 %v2597_v27  ;;  %v6298_v1 = vunpack.c.h.bf16 %v2597_v27  ;;  %v2454_v51 = vpop.f32.mrb[55].mxu1 }
 0x661   : > { %7889 = vst [vmem:[#allocation65_spill] sm:$0xff] %v6290_v5  ;;  %v2451_v60 = vadd.f32 %v2450_v37, %v6143_v26  ;;  %v2852_v2 = vrot.slane %v6282_v50, 1  ;;  %v6302_v33 = vunpack.c.l.bf16 %v2598_v59  ;;  %v2453_v54 = vadd.f32 %v2452_v13, %v6157_v55 }
 0x662   : > { %7891 = vst [vmem:[#allocation66_spill] sm:$0xff] %v6296_v19  ;;  %7892 = vst [vmem:[#allocation67_spill] sm:$0xff] %v6298_v1  ;;  %v2775_v23 = vadd.f32 %v2774_v17, %v2764_v63  ;;  %v7894_v29 = vunpack.c.h.bf16 %v5952_v35  ;;  %v6310_v56 = vunpack.c.h.bf16 %v2598_v59  ;;  %v2455_v14 = vadd.f32 %v2454_v51, %v6157_v55 }
 0x663   : > { %7893 = vst [vmem:[#allocation68_spill] sm:$0xff] %v6302_v33  ;;  %v4173_v28 = vadd.f32 %v4172_v52, %v4171_v22  ;;  %v4347_v27 = vadd.f32 %v4346_v57, %v4345_v18  ;;  %v2581_v8 = vmax.f32 %v2449_v47, 0.0  ;;  %v2589_v34 = vmax.f32 %v2453_v54, 0.0 }
 0x664   : > { %v6308_v30 = vmul.f32 %v7894_v29, %v6167_v43  ;;  %7896 = vst [vmem:[#allocation70_spill] sm:$0xff] %v6310_v56  ;;  %v4182_v61 = vadd.f32 %v4181_v41, %v4180_v44  ;;  %v4356_v4 = vadd.f32 %v4355_v0, %v4354_v24  ;;  %v2582_v37 = vmax.f32 %v2451_v60, 0.0 }
 0x665   : > { %v2590_v9 = vmax.f32 %v2455_v14, 0.0  ;;  %v7897_v63 = vunpack.c.l.bf16 %v5896_v10  ;;  %v7898_v35 = vunpack.c.l.bf16 %v5902_v31  ;;  %v2605_v59 = vpack.c.bf16 %v2589_v34, %v2581_v8 }
 0x666   : > { %7895 = vst [vmem:[#allocation69_spill] sm:$0xff] %v6308_v30  ;;  %v7899_v51 = vunpack.c.h.bf16 %v5896_v10  ;;  %v7900_v18 = vunpack.c.l.bf16 %v5915_v20  ;;  %v7901_v24 = vunpack.c.l.bf16 %v5917_v32  ;;  %v7902_v47 = vunpack.c.h.bf16 %v5902_v31 }
 0x667   : > { %v4131_v17 = vmul.f32 %v7897_v63, %v6296_v19  ;;  %v4140_v13 = vmul.f32 %v7898_v35, %v6298_v1  ;;  %v2606_v57 = vpack.c.bf16 %v2590_v9, %v2582_v37  ;;  %v7903_v0 = vunpack.c.h.bf16 %v5915_v20 }
 0x668   : > { %v4132_v22 = vmul.f32 %v7899_v51, %v6302_v33  ;;  %v4305_v44 = vmul.f32 %v7900_v18, %v6296_v19  ;;  %v4314_v52 = vmul.f32 %v7901_v24, %v6298_v1  ;;  %v4141_v41 = vmul.f32 %v7902_v47, %v6310_v56 }
 0x669   : > { %v4306_v60 = vmul.f32 %v7903_v0, %v6302_v33  ;;  %v7904_v10 = vunpack.c.h.bf16 %v5917_v32  ;;  %v6337_v29 = vunpack.c.l.bf16 %v2605_v59  ;;  %v6339_v14 = vunpack.c.h.bf16 %v2605_v59 }
 0x66a   : > { %v2776_v8 = vrot.slane %v2775_v23, 4  ;;  %v6341_v34 = vadd.f32 %v2783_v25, %v2765_v6  ;;  %v6343_v9 = vunpack.c.l.bf16 %v2606_v57  ;;  %v6345_v37 = vunpack.c.h.bf16 %v2606_v57 }
 0x66b   : > { %v4315_v54 = vmul.f32 %v7904_v10, %v6310_v56  ;;  %7905 = vst [vmem:[#allocation71_spill] sm:$0xff] %v6337_v29  ;;  %7906 = vst [vmem:[#allocation72_spill] sm:$0xff] %v6339_v14  ;;  %v4490_v31 = vsel %vm4420_vm4, %v4173_v28, %v4347_v27  ;;  %v4491_v20 = vsel %vm4420_vm4, %v4182_v61, %v4356_v4  ;;  %v7910_v63 = vunpack.c.l.bf16 %v5920_v40 }
 0x66c   : > { %7907 = vst [vmem:[#allocation73_spill] sm:$0xff] %v6341_v34  ;;  %7908 = vst [vmem:[#allocation74_spill] sm:$0xff] %v6343_v9  ;;  %v4183_v35 = vadd.f32 %v4140_v13, %v4131_v17  ;;  %v7911_v59 = vunpack.c.l.bf16 %v5937_v53  ;;  %v4357_v18 = vadd.f32 %v4314_v52, %v4305_v44  ;;  %v7912_v6 = vunpack.c.h.bf16 %v5920_v40 }
 0x66d   : > { %7909 = vst [vmem:[#allocation75_spill] sm:$0xff] %v6345_v37  ;;  %v4149_v32 = vmul.f32 %v7910_v63, %v6337_v29  ;;  %v4192_v24 = vadd.f32 %v4141_v41, %v4132_v22  ;;  %v7913_v28 = vunpack.c.h.bf16 %v5937_v53  ;;  %v4366_v61 = vadd.f32 %v4315_v54, %v4306_v60 }
 0x66e   : > { %v4323_v51 = vmul.f32 %v7911_v59, %v6337_v29  ;;  %v4150_v25 = vmul.f32 %v7912_v6, %v6343_v9  ;;  %v7914_v4 = vunpack.c.l.bf16 %v5926_v58  ;;  %v7915_v13 = vunpack.c.l.bf16 %v5945_v15 }
 0x66f   : > { %v4324_v27 = vmul.f32 %v7913_v28, %v6343_v9  ;;  %v4184_v17 = vadd.f32 %v4183_v35, %v4149_v32  ;;  %v7916_v40 = vunpack.c.h.bf16 %v5926_v58  ;;  %v7917_v53 = vunpack.c.h.bf16 %v5945_v15 }
 0x670   : > { %v4158_v57 = vmul.f32 %v7914_v4, %v6339_v14  ;;  %v4332_v47 = vmul.f32 %v7915_v13, %v6339_v14  ;;  %v4358_v44 = vadd.f32 %v4357_v18, %v4323_v51  ;;  %v4193_v22 = vadd.f32 %v4192_v24, %v4150_v25 }
 0x671   : > { %v4159_v52 = vmul.f32 %v7916_v40, %v6345_v37  ;;  %v4333_v41 = vmul.f32 %v7917_v53, %v6345_v37  ;;  %v4367_v0 = vadd.f32 %v4366_v61, %v4324_v27  ;;  %v6375_v63 = vadd.f32 %v2852_v2, %v6282_v50 }
 0x672   : > { %v4185_v60 = vadd.f32 %v4184_v17, %v4158_v57  ;;  %v4359_v10 = vadd.f32 %v4358_v44, %v4332_v47  ;;  %v7919_v59 = vunpack.c.l.bf16 %v5967_v45  ;;  %v7920_v51 = vunpack.c.l.bf16 %v5970_v62  ;;  %v2491_v44 = vpop.f32.mrb[56].mxu0 }
 0x673   : > { %7918 = vst [vmem:[#allocation76_spill] sm:$0xff] %v6375_v63  ;;  %v4194_v32 = vadd.f32 %v4193_v22, %v4159_v52  ;;  %v4368_v35 = vadd.f32 %v4367_v0, %v4333_v41  ;;  %v4509_v25 = vsel %vm4430_vm5, %v4490_v31, 0.0  ;;  %v4510_v24 = vsel %vm4430_vm5, %v4491_v20, 0.0 }
 0x674   : > { %v2739_v58 = vmul.f32 %v7919_v59, %v6296_v19  ;;  %v2748_v18 = vmul.f32 %v7920_v51, %v6298_v1  ;;  %v4186_v15 = vrot.slane %v4185_v60, 4  ;;  %v4360_v6 = vrot.slane %v4359_v10, 4 }
 0x675   : > { %v4195_v28 = vrot.slane %v4194_v32, 4  ;;  %v4369_v27 = vrot.slane %v4368_v35, 4  ;;  %v7921_v50 = vunpack.c.l.bf16 %v6004_v39  ;;  %v6388_v61 = vadd.f32 %v2776_v8, %v2775_v23  ;;  %v2493_v23 = vpop.f32.mrb[57].mxu0 }
 0x676   : > { %v4187_v4 = vadd.f32 %v4186_v15, %v4185_v60  ;;  %v4361_v57 = vadd.f32 %v4360_v6, %v4359_v10  ;;  %v7923_v17 = vunpack.c.h.bf16 %v5967_v45  ;;  %v7924_v47 = vunpack.c.h.bf16 %v5970_v62  ;;  %v2495_v10 = vpop.f32.mrb[58].mxu0 }
 0x677   : > { %v2757_v2 = vmul.f32 %v7921_v50, %v6337_v29  ;;  %7922 = vst [vmem:[#allocation77_spill] sm:$0xff] %v6388_v61  ;;  %v4196_v20 = vadd.f32 %v4195_v28, %v4194_v32  ;;  %v4370_v40 = vadd.f32 %v4369_v27, %v4368_v35  ;;  %v6396_v52 = vadd.f32 %v4510_v24, %v4509_v25  ;;  %v2497_v51 = vpop.f32.mrb[59].mxu0  ;;  %v7986_v29 = vld [vmem:[#allocation25_spill] sm:$0xff] }
 0x678   : > { %v2740_v13 = vmul.f32 %v7923_v17, %v6302_v33  ;;  %v2749_v31 = vmul.f32 %v7924_v47, %v6310_v56  ;;  %v2791_v22 = vadd.f32 %v2748_v18, %v2739_v58  ;;  %v2492_v53 = vadd.f32 %v2491_v44, %v6099_v21 }
 0x679   : > { %v4188_v8 = vrot.slane %v4187_v4, 2  ;;  %v4362_v41 = vrot.slane %v4361_v57, 2  ;;  %v7925_v0 = vunpack.c.h.bf16 %v6004_v39  ;;  %v2494_v60 = vadd.f32 %v2493_v23, %v6099_v21  ;;  %v2544_v39 = vpop.f32.mrb[56].mxu1 }
 0x67a   : > { %v4197_v62 = vrot.slane %v4196_v20, 2  ;;  %v7926_v32 = vunpack.c.l.bf16 %v6014_v38  ;;  %v2792_v59 = vadd.f32 %v2791_v22, %v2757_v2  ;;  %v2496_v58 = vadd.f32 %v2495_v10, %v6113_v16 }
 0x67b   : > { %v2758_v45 = vmul.f32 %v7925_v0, %v6343_v9  ;;  %v6407_v18 = vadd.f32 %v4188_v8, %v4187_v4  ;;  %v4371_v15 = vrot.slane %v4370_v40, 2  ;;  %v2800_v6 = vadd.f32 %v2749_v31, %v2740_v13  ;;  %v2546_v4 = vpop.f32.mrb[57].mxu1 }
 0x67c   : > { %v2766_v35 = vmul.f32 %v7926_v32, %v6339_v14  ;;  %v2498_v25 = vadd.f32 %v2497_v51, %v6113_v16  ;;  %v6410_v24 = vadd.f32 %v4197_v62, %v4196_v20  ;;  %v6412_v28 = vadd.f32 %v4362_v41, %v4361_v57  ;;  %v2548_v20 = vpop.f32.mrb[58].mxu1 }
 0x67d   : > { %v7927_v27 = vunpack.c.h.bf16 %v6014_v38  ;;  %v2567_v2 = vmax.f32 %v2492_v53, 0.0  ;;  %v2575_v17 = vmax.f32 %v2496_v58, 0.0  ;;  %v2545_v47 = vadd.f32 %v2544_v39, %v6099_v21  ;;  %v2550_v38 = vpop.f32.mrb[59].mxu1 }
 0x67e   : > { %v6420_v44 = vadd.f32 %v2800_v6, %v2758_v45  ;;  %v2568_v13 = vmax.f32 %v2494_v60, 0.0  ;;  %v2576_v31 = vmax.f32 %v2498_v25, 0.0  ;;  %v2547_v22 = vadd.f32 %v2546_v4, %v6099_v21  ;;  %v2501_v45 = vpop.f32.mrb[60].mxu0 }
 0x67f   : > { %v6417_v50 = vmul.f32 %v7927_v27, %v6345_v37  ;;  %v6423_v23 = vadd.f32 %v2792_v59, %v2766_v35  ;;  %v2599_v57 = vpack.c.bf16 %v2575_v17, %v2567_v2  ;;  %v2549_v8 = vadd.f32 %v2548_v20, %v6113_v16  ;;  %v2503_v58 = vpop.f32.mrb[61].mxu0 }
 0x680   : > { %v6427_v53 = vadd.f32 %v4371_v15, %v4370_v40  ;;  %v2600_v0 = vpack.c.bf16 %v2576_v31, %v2568_v13  ;;  %v2551_v10 = vadd.f32 %v2550_v38, %v6113_v16  ;;  %v2569_v32 = vmax.f32 %v2545_v47, 0.0  ;;  %v2505_v25 = vpop.f32.mrb[62].mxu0  ;;  %v2554_v31 = vpop.f32.mrb[60].mxu1 }
 0x681   : > { %v6432_v21 = vunpack.c.l.bf16 %v2599_v57  ;;  %v2577_v35 = vmax.f32 %v2549_v8, 0.0  ;;  %v2502_v59 = vadd.f32 %v2501_v45, %v6143_v26  ;;  %v2570_v6 = vmax.f32 %v2547_v22, 0.0  ;;  %v2507_v17 = vpop.f32.mrb[63].mxu0 }
 0x682   : > { %v6435_v51 = vunpack.c.l.bf16 %v2600_v0  ;;  %v2578_v40 = vmax.f32 %v2551_v10, 0.0  ;;  %v2504_v15 = vadd.f32 %v2503_v58, %v6143_v26  ;;  %v6438_v16 = vunpack.c.h.bf16 %v2599_v57  ;;  %v2556_v10 = vpop.f32.mrb[61].mxu1 }
 0x683   : > { %7928 = vst [vmem:[#allocation78_spill] sm:$0xff] %v6432_v21  ;;  %v6440_v39 = vunpack.c.h.bf16 %v2600_v0  ;;  %v2601_v27 = vpack.c.bf16 %v2577_v35, %v2569_v32  ;;  %v2506_v2 = vadd.f32 %v2505_v25, %v6157_v55  ;;  %v2583_v4 = vmax.f32 %v2502_v59, 0.0 }
 0x684   : > { %7929 = vst [vmem:[#allocation79_spill] sm:$0xff] %v6435_v51  ;;  %7930 = vst [vmem:[#allocation80_spill] sm:$0xff] %v6438_v16  ;;  %v2602_v47 = vpack.c.bf16 %v2578_v40, %v2570_v6  ;;  %v2508_v13 = vadd.f32 %v2507_v17, %v6157_v55  ;;  %v7932_v22 = vunpack.c.l.bf16 %v5956_v7  ;;  %v2584_v8 = vmax.f32 %v2504_v15, 0.0  ;;  %v2558_v6 = vpop.f32.mrb[62].mxu1 }
 0x685   : > { %7931 = vst [vmem:[#allocation81_spill] sm:$0xff] %v6440_v39  ;;  %v2591_v38 = vmax.f32 %v2506_v2, 0.0  ;;  %v2555_v57 = vadd.f32 %v2554_v31, %v6143_v26  ;;  %v7933_v0 = vunpack.c.h.bf16 %v5956_v7  ;;  %v6451_v32 = vunpack.c.l.bf16 %v2601_v27  ;;  %v2560_v17 = vpop.f32.mrb[63].mxu1 }
 0x686   : > { %v4133_v20 = vmul.f32 %v7932_v22, %v6432_v21  ;;  %v6453_v35 = vunpack.c.h.bf16 %v2601_v27  ;;  %v2592_v59 = vmax.f32 %v2508_v13, 0.0  ;;  %v2557_v58 = vadd.f32 %v2556_v10, %v6143_v26  ;;  %v7940_v26 = vld [vmem:[#allocation11_spill] sm:$0xff] }
 0x687   : > { %v4134_v45 = vmul.f32 %v7933_v0, %v6435_v51  ;;  %7934 = vst [vmem:[#allocation82_spill] sm:$0xff] %v6451_v32  ;;  %v6456_v40 = vunpack.c.l.bf16 %v2602_v47  ;;  %v6458_v25 = vunpack.c.h.bf16 %v2602_v47  ;;  %v2607_v15 = vpack.c.bf16 %v2591_v38, %v2583_v4 }
 0x688   : > { %7935 = vst [vmem:[#allocation83_spill] sm:$0xff] %v6453_v35  ;;  %v2559_v2 = vadd.f32 %v2558_v6, %v6157_v55  ;;  %v2608_v31 = vpack.c.bf16 %v2592_v59, %v2584_v8  ;;  %v2585_v22 = vmax.f32 %v2555_v57, 0.0  ;;  %v2586_v7 = vmax.f32 %v2557_v58, 0.0 }
 0x689   : > { %7936 = vst [vmem:[#allocation84_spill] sm:$0xff] %v6456_v40  ;;  %7937 = vst [vmem:[#allocation85_spill] sm:$0xff] %v6458_v25  ;;  %v2561_v0 = vadd.f32 %v2560_v17, %v6157_v55  ;;  %v6462_v54 = vunpack.c.l.bf16 %v2607_v15  ;;  %v6464_v27 = vunpack.c.h.bf16 %v2607_v15  ;;  %v7941_v10 = vunpack.c.l.bf16 %v7940_v26  ;;  %v7945_v55 = vld [vmem:[#allocation12_spill] sm:$0xff]  ;;  %v7947_v15 = vld [vmem:[#allocation13_spill] sm:$0xff] }
 0x68a   : > { %v2593_v13 = vmax.f32 %v2559_v2, 0.0  ;;  %v6469_v47 = vunpack.c.l.bf16 %v2608_v31  ;;  %v6471_v4 = vunpack.c.h.bf16 %v2608_v31  ;;  %v7944_v8 = vunpack.c.h.bf16 %v7940_v26 }
 0x68b   : > { %7938 = vst [vmem:[#allocation86_spill] sm:$0xff] %v6462_v54  ;;  %7939 = vst [vmem:[#allocation87_spill] sm:$0xff] %v6464_v27  ;;  %v4142_v60 = vmul.f32 %v7941_v10, %v6438_v16  ;;  %v2594_v38 = vmax.f32 %v2561_v0, 0.0  ;;  %v7946_v58 = vunpack.c.l.bf16 %v7945_v55  ;;  %v7948_v2 = vunpack.c.l.bf16 %v7947_v15  ;;  %v7949_v10 = vld [vmem:[#allocation18_spill] sm:$0xff] }
 0x68c   : > { %7942 = vst [vmem:[#allocation11_spill] sm:$0xff] %v6469_v47  ;;  %7943 = vst [vmem:[#allocation88_spill] sm:$0xff] %v6471_v4  ;;  %v4143_v57 = vmul.f32 %v7944_v8, %v6440_v39  ;;  %v2609_v59 = vpack.c.bf16 %v2593_v13, %v2585_v22  ;;  %v7950_v62 = vunpack.c.l.bf16 %v7949_v10  ;;  %v7951_v0 = vunpack.c.h.bf16 %v7945_v55 }
 0x68d   : > { %v4135_v6 = vmul.f32 %v7946_v58, %v6451_v32  ;;  %v4144_v17 = vmul.f32 %v7948_v2, %v6453_v35  ;;  %v2610_v31 = vpack.c.bf16 %v2594_v38, %v2586_v7  ;;  %v7952_v22 = vunpack.c.h.bf16 %v7947_v15  ;;  %v7958_v38 = vld [vmem:[#allocation19_spill] sm:$0xff] }
 0x68e   : > { %v4151_v41 = vmul.f32 %v7950_v62, %v6462_v54  ;;  %v4136_v63 = vmul.f32 %v7951_v0, %v6456_v40  ;;  %v7953_v26 = vunpack.c.h.bf16 %v7949_v10  ;;  %v6494_v58 = vunpack.c.l.bf16 %v2609_v59  ;;  %v7961_v10 = vld [vmem:[#allocation22_spill] sm:$0xff] }
 0x68f   : > { %v4145_v13 = vmul.f32 %v7952_v22, %v6458_v25  ;;  %v6496_v2 = vunpack.c.h.bf16 %v2609_v59  ;;  %v4201_v11 = vadd.f32 %v4142_v60, %v4133_v20  ;;  %v4210_v43 = vadd.f32 %v4143_v57, %v4134_v45 }
 0x690   : > { %v4152_v8 = vmul.f32 %v7953_v26, %v6469_v47  ;;  %7954 = vst [vmem:[#allocation12_spill] sm:$0xff] %v6494_v58  ;;  %v6498_v62 = vunpack.c.l.bf16 %v2610_v31  ;;  %v6500_v7 = vunpack.c.h.bf16 %v2610_v31  ;;  %v7959_v55 = vunpack.c.l.bf16 %v7958_v38 }
 0x691   : > { %7955 = vst [vmem:[#allocation13_spill] sm:$0xff] %v6496_v2  ;;  %v7960_v15 = vunpack.c.h.bf16 %v7958_v38  ;;  %v7962_v26 = vunpack.c.l.bf16 %v7961_v10  ;;  %v4202_v59 = vadd.f32 %v4201_v11, %v4151_v41  ;;  %v4219_v60 = vadd.f32 %v4144_v17, %v4135_v6 }
 0x692   : > { %7956 = vst [vmem:[#allocation18_spill] sm:$0xff] %v6498_v62  ;;  %7957 = vst [vmem:[#allocation89_spill] sm:$0xff] %v6500_v7  ;;  %v4160_v0 = vmul.f32 %v7959_v55, %v6464_v27  ;;  %v4211_v30 = vadd.f32 %v4210_v43, %v4152_v8  ;;  %v7963_v20 = vunpack.c.h.bf16 %v7961_v10  ;;  %v7964_v57 = vrot.slane %v6407_v18, 1  ;;  %v7968_v8 = vld [vmem:[#allocation16_spill] sm:$0xff] }
 0x693   : > { %v4161_v22 = vmul.f32 %v7960_v15, %v6471_v4  ;;  %v4153_v49 = vmul.f32 %v7962_v26, %v6494_v58  ;;  %v4228_v55 = vadd.f32 %v4145_v13, %v4136_v63  ;;  %v4373_v38 = vrot.slane %v6427_v53, 1  ;;  %v7965_v15 = vld [vmem:[#allocation23_spill] sm:$0xff] }
 0x694   : > { %v4154_v45 = vmul.f32 %v7963_v20, %v6498_v62  ;;  %v6517_v31 = vadd.f32 %v7964_v57, %v6407_v18  ;;  %v7966_v5 = vunpack.c.l.bf16 %v7965_v15  ;;  %v4203_v26 = vadd.f32 %v4202_v59, %v4160_v0 }
 0x695   : > { %v4212_v11 = vadd.f32 %v4211_v30, %v4161_v22  ;;  %v4220_v43 = vadd.f32 %v4219_v60, %v4153_v49  ;;  %v7967_v41 = vunpack.c.h.bf16 %v7965_v15  ;;  %v7969_v10 = vunpack.c.l.bf16 %v7968_v8  ;;  %v7974_v60 = vld [vmem:[#allocation17_spill] sm:$0xff] }
 0x696   : > { %v4162_v37 = vmul.f32 %v7966_v5, %v6496_v2  ;;  %v4229_v17 = vadd.f32 %v4228_v55, %v4154_v45  ;;  %v7970_v63 = vunpack.c.h.bf16 %v7968_v8  ;;  %v4204_v20 = vrot.slane %v4203_v26, 4  ;;  %v7971_v5 = vld [vmem:[#allocation20_spill] sm:$0xff] }
 0x697   : > { %v4163_v6 = vmul.f32 %v7967_v41, %v6500_v7  ;;  %v4307_v18 = vmul.f32 %v7969_v10, %v6432_v21  ;;  %v4213_v57 = vrot.slane %v4212_v11, 4  ;;  %v7972_v30 = vunpack.c.l.bf16 %v7971_v5 }
 0x698   : > { %v4308_v13 = vmul.f32 %v7970_v63, %v6435_v51  ;;  %v4221_v14 = vadd.f32 %v4220_v43, %v4162_v37  ;;  %v7973_v22 = vunpack.c.h.bf16 %v7971_v5  ;;  %v7975_v45 = vunpack.c.l.bf16 %v7974_v60  ;;  %v7977_v43 = vld [vmem:[#allocation21_spill] sm:$0xff] }
 0x699   : > { %v4309_v49 = vmul.f32 %v7972_v30, %v6451_v32  ;;  %v4230_v0 = vadd.f32 %v4229_v17, %v4163_v6  ;;  %v7976_v15 = vunpack.c.h.bf16 %v7974_v60  ;;  %v4205_v8 = vadd.f32 %v4204_v20, %v4203_v26 }
 0x69a   : > { %v4310_v59 = vmul.f32 %v7973_v22, %v6456_v40  ;;  %v4316_v55 = vmul.f32 %v7975_v45, %v6438_v16  ;;  %v4214_v10 = vadd.f32 %v4213_v57, %v4212_v11  ;;  %v4222_v37 = vrot.slane %v4221_v14, 4  ;;  %v7980_v22 = vld [vmem:[#allocation24_spill] sm:$0xff]  ;;  %v7983_v57 = vld [vmem:[#allocation26_spill] sm:$0xff] }
 0x69b   : > { %v4317_v41 = vmul.f32 %v7976_v15, %v6440_v39  ;;  %v7978_v63 = vunpack.c.l.bf16 %v7977_v43  ;;  %v4231_v6 = vrot.slane %v4230_v0, 4  ;;  %v7979_v17 = vunpack.c.h.bf16 %v7977_v43 }
 0x69c   : > { %v7981_v36 = vunpack.c.l.bf16 %v7980_v22  ;;  %v7982_v60 = vunpack.c.h.bf16 %v7980_v22  ;;  %v4206_v26 = vrot.slane %v4205_v8, 2  ;;  %v4215_v11 = vrot.slane %v4214_v10, 2 }
 0x69d   : > { %v4318_v30 = vmul.f32 %v7978_v63, %v6453_v35  ;;  %v4319_v5 = vmul.f32 %v7979_v17, %v6458_v25  ;;  %v4223_v20 = vadd.f32 %v4222_v37, %v4221_v14  ;;  %v7984_v48 = vunpack.c.l.bf16 %v7983_v57  ;;  %v7989_v14 = vld [vmem:[#allocation27_spill] sm:$0xff] }
 0x69e   : > { %v4325_v45 = vmul.f32 %v7981_v36, %v6462_v54  ;;  %v4326_v15 = vmul.f32 %v7982_v60, %v6469_v47  ;;  %v4232_v9 = vadd.f32 %v4231_v6, %v4230_v0  ;;  %v7985_v43 = vunpack.c.h.bf16 %v7983_v57 }
 0x69f   : > { %v4327_v63 = vmul.f32 %v7984_v48, %v6494_v58  ;;  %v7987_v12 = vunpack.c.l.bf16 %v7986_v29  ;;  %v7988_v22 = vunpack.c.h.bf16 %v7986_v29  ;;  %v4224_v56 = vrot.slane %v4223_v20, 2 }
 0x6a0   : > { %v4328_v17 = vmul.f32 %v7985_v43, %v6498_v62  ;;  %v7990_v37 = vunpack.c.l.bf16 %v7989_v14  ;;  %v7991_v48 = vunpack.c.h.bf16 %v7989_v14  ;;  %v4375_v6 = vadd.f32 %v4316_v55, %v4307_v18 }
 0x6a1   : > { %v4334_v36 = vmul.f32 %v7987_v12, %v6464_v27  ;;  %v4335_v60 = vmul.f32 %v7988_v22, %v6471_v4  ;;  %v4233_v57 = vrot.slane %v4232_v9, 2  ;;  %v4384_v43 = vadd.f32 %v4317_v41, %v4308_v13 }
 0x6a2   : > { %v4336_v1 = vmul.f32 %v7990_v37, %v6496_v2  ;;  %v4337_v0 = vmul.f32 %v7991_v48, %v6500_v7  ;;  %v4393_v33 = vadd.f32 %v4318_v30, %v4309_v49  ;;  %v4402_v19 = vadd.f32 %v4319_v5, %v4310_v59 }
 0x6a3   : > { %v4207_v46 = vadd.f32 %v4206_v26, %v4205_v8  ;;  %v4216_v12 = vadd.f32 %v4215_v11, %v4214_v10  ;;  %v7992_v29 = vrot.slane %v6412_v28, 1  ;;  %v4376_v42 = vadd.f32 %v4375_v6, %v4325_v45 }
 0x6a4   : > { %v4225_v3 = vadd.f32 %v4224_v56, %v4223_v20  ;;  %v4385_v34 = vadd.f32 %v4384_v43, %v4326_v15  ;;  %v4394_v61 = vadd.f32 %v4393_v33, %v4327_v63  ;;  %v4403_v37 = vadd.f32 %v4402_v19, %v4328_v17 }
 0x6a5   : > { %v4365_v22 = vadd.f32 %v7992_v29, %v6412_v28  ;;  %v7993_v14 = vrot.slane %v6410_v24, 1  ;;  %v4234_v18 = vadd.f32 %v4233_v57, %v4232_v9  ;;  %v4374_v13 = vadd.f32 %v4373_v38, %v6427_v53 }
 0x6a6   : > { %v4377_v49 = vadd.f32 %v4376_v42, %v4334_v36  ;;  %v4386_v59 = vadd.f32 %v4385_v34, %v4335_v60  ;;  %v4395_v55 = vadd.f32 %v4394_v61, %v4336_v1  ;;  %v4404_v41 = vadd.f32 %v4403_v37, %v4337_v0  ;;  %v7994_v0 = vld [vmem:[#allocation29_spill] sm:$0xff] }
 0x6a7   : > { %v4200_v48 = vadd.f32 %v7993_v14, %v6410_v24  ;;  %v6583_v8 = vadd.f32 %v6420_v44, %v6417_v50  ;;  %v4208_v28 = vrot.slane %v4207_v46, 1  ;;  %v4217_v56 = vrot.slane %v4216_v12, 1  ;;  %v7997_v14 = vld [vmem:[#allocation33_spill] sm:$0xff] }
 0x6a8   : > { %v4378_v10 = vrot.slane %v4377_v49, 4  ;;  %v4492_v19 = vsel %vm4420_vm4, %v6517_v31, %v4365_v22  ;;  %v4226_v33 = vrot.slane %v4225_v3, 1  ;;  %v4387_v30 = vrot.slane %v4386_v59, 4 }
 0x6a9   : > { %v4396_v24 = vrot.slane %v4395_v55, 4  ;;  %v4405_v9 = vrot.slane %v4404_v41, 4  ;;  %v4235_v5 = vrot.slane %v4234_v18, 1  ;;  %v4493_v42 = vsel %vm4420_vm4, %v4200_v48, %v4374_v13 }
 0x6aa   : > { %v4379_v53 = vadd.f32 %v4378_v10, %v4377_v49  ;;  %v4512_v1 = vsel %vm4430_vm5, %v4492_v19, 0.0  ;;  %v4388_v34 = vadd.f32 %v4387_v30, %v4386_v59  ;;  %v2794_v44 = vrot.slane %v6423_v23, 4  ;;  %v8003_v30 = vld [vmem:[#allocation34_spill] sm:$0xff] }
 0x6ab   : > { %v4397_v61 = vadd.f32 %v4396_v24, %v4395_v55  ;;  %v4406_v50 = vadd.f32 %v4405_v9, %v4404_v41  ;;  %v4209_v38 = vadd.f32 %v4208_v28, %v4207_v46  ;;  %v4218_v45 = vadd.f32 %v4217_v56, %v4216_v12  ;;  %v8000_v41 = vld [vmem:[#allocation31_spill] sm:$0xff] }
 0x6ac   : > { %v4380_v15 = vrot.slane %v4379_v53, 2  ;;  %v4513_v31 = vadd.f32 %v4512_v1, %v6396_v52  ;;  %v4389_v26 = vrot.slane %v4388_v34, 2  ;;  %v4514_v63 = vsel %vm4430_vm5, %v4493_v42, 0.0 }
 0x6ad   : > { %v4398_v11 = vrot.slane %v4397_v61, 2  ;;  %v4407_v20 = vrot.slane %v4406_v50, 2  ;;  %v4227_v17 = vadd.f32 %v4226_v33, %v4225_v3  ;;  %v4236_v36 = vadd.f32 %v4235_v5, %v4234_v18 }
 0x6ae   : > { %v4381_v60 = vadd.f32 %v4380_v15, %v4379_v53  ;;  %v7995_v6 = vunpack.c.l.bf16 %v7994_v0  ;;  %v4390_v43 = vadd.f32 %v4389_v26, %v4388_v34  ;;  %v7996_v46 = vunpack.c.h.bf16 %v7994_v0 }
 0x6af   : > { %v4399_v29 = vadd.f32 %v4398_v11, %v4397_v61  ;;  %v4408_v22 = vadd.f32 %v4407_v20, %v4406_v50  ;;  %v4515_v37 = vadd.f32 %v4514_v63, %v4513_v31  ;;  %v7998_v48 = vunpack.c.l.bf16 %v7997_v14  ;;  %v8006_v61 = vld [vmem:[#allocation36_spill] sm:$0xff]  ;;  %v8009_v20 = vld [vmem:[#allocation38_spill] sm:$0xff] }
 0x6b0   : > { %v2741_v57 = vmul.f32 %v7995_v6, %v6432_v21  ;;  %v2742_v12 = vmul.f32 %v7996_v46, %v6435_v51  ;;  %v4382_v52 = vrot.slane %v4381_v60, 1  ;;  %v7999_v3 = vunpack.c.h.bf16 %v7997_v14 }
 0x6b1   : > { %v2743_v13 = vmul.f32 %v7998_v48, %v6451_v32  ;;  %v4391_v49 = vrot.slane %v4390_v43, 1  ;;  %v4400_v59 = vrot.slane %v4399_v29, 1  ;;  %v4409_v55 = vrot.slane %v4408_v22, 1  ;;  %v8012_v48 = vld [vmem:[#allocation37_spill] sm:$0xff] }
 0x6b2   : > { %v2744_v18 = vmul.f32 %v7999_v3, %v6456_v40  ;;  %v8001_v28 = vunpack.c.l.bf16 %v8000_v41  ;;  %v4383_v10 = vadd.f32 %v4382_v52, %v4381_v60  ;;  %v8002_v19 = vunpack.c.h.bf16 %v8000_v41 }
 0x6b3   : > { %v8004_v24 = vunpack.c.l.bf16 %v8003_v30  ;;  %v8005_v5 = vunpack.c.h.bf16 %v8003_v30  ;;  %v4392_v42 = vadd.f32 %v4391_v49, %v4390_v43  ;;  %v4401_v1 = vadd.f32 %v4400_v59, %v4399_v29 }
 0x6b4   : > { %v2750_v56 = vmul.f32 %v8001_v28, %v6438_v16  ;;  %v2751_v33 = vmul.f32 %v8002_v19, %v6440_v39  ;;  %v4410_v34 = vadd.f32 %v4409_v55, %v4408_v22  ;;  %v8007_v50 = vunpack.c.l.bf16 %v8006_v61 }
 0x6b5   : > { %v2752_v9 = vmul.f32 %v8004_v24, %v6453_v35  ;;  %v2753_v53 = vmul.f32 %v8005_v5, %v6458_v25  ;;  %v4494_v31 = vsel %vm4420_vm4, %v4209_v38, %v4383_v10  ;;  %v8008_v26 = vunpack.c.h.bf16 %v8006_v61 }
 0x6b6   : > { %v2759_v15 = vmul.f32 %v8007_v50, %v6462_v54  ;;  %v8010_v63 = vunpack.c.l.bf16 %v8009_v20  ;;  %v8011_v0 = vunpack.c.h.bf16 %v8009_v20  ;;  %v4495_v43 = vsel %vm4420_vm4, %v4218_v45, %v4392_v42 }
 0x6b7   : > { %v2760_v11 = vmul.f32 %v8008_v26, %v6469_v47  ;;  %v4496_v29 = vsel %vm4420_vm4, %v4227_v17, %v4401_v1  ;;  %v4516_v22 = vsel %vm4430_vm5, %v4494_v31, 0.0  ;;  %v2809_v46 = vadd.f32 %v2750_v56, %v2741_v57  ;;  %v8015_v57 = vld [vmem:[#allocation39_spill] sm:$0xff] }
 0x6b8   : > { %v2761_v60 = vmul.f32 %v8010_v63, %v6494_v58  ;;  %v2762_v6 = vmul.f32 %v8011_v0, %v6498_v62  ;;  %v4497_v38 = vsel %vm4420_vm4, %v4236_v36, %v4410_v34  ;;  %v4517_v52 = vadd.f32 %v4516_v22, %v4515_v37  ;;  %v8021_v63 = vld [vmem:[#allocation51_spill] sm:$0xff]  ;;  %v8022_v0 = vld [vmem:[#allocation10_spill] sm:$0xff] }
 0x6b9   : > { %v4518_v14 = vsel %vm4430_vm5, %v4495_v43, 0.0  ;;  %v8013_v3 = vunpack.c.l.bf16 %v8012_v48  ;;  %v4520_v59 = vsel %vm4430_vm5, %v4496_v29, 0.0  ;;  %v8014_v55 = vunpack.c.h.bf16 %v8012_v48  ;;  %v8024_v29 = vld [vmem:[#allocation53_spill] sm:$0xff] }
 0x6ba   : > { %v2810_v41 = vadd.f32 %v2809_v46, %v2759_v15  ;;  %v2818_v17 = vadd.f32 %v2751_v33, %v2742_v12  ;;  %v4519_v28 = vadd.f32 %v4518_v14, %v4517_v52  ;;  %v8016_v56 = vunpack.c.l.bf16 %v8015_v57  ;;  %v8018_v33 = vld [vmem:[#allocation77_spill] sm:$0xff]  ;;  %v8027_v52 = vld [vmem:[#allocation14_spill] sm:$0xff] }
 0x6bb   : > { %v2768_v49 = vmul.f32 %v8013_v3, %v6464_v27  ;;  %v2769_v45 = vmul.f32 %v8014_v55, %v6471_v4  ;;  %v2827_v37 = vadd.f32 %v2752_v9, %v2743_v13  ;;  %v2836_v10 = vadd.f32 %v2753_v53, %v2744_v18  ;;  %v8019_v15 = vld [vmem:[#allocation73_spill] sm:$0xff]  ;;  %v8029_v3 = vld [vmem:[#allocation48_spill] sm:$0xff] }
 0x6bc   : > { %v2770_v36 = vmul.f32 %v8016_v56, %v6496_v2  ;;  %v4522_v19 = vsel %vm4430_vm5, %v4497_v38, 0.0  ;;  %v8017_v30 = vunpack.c.h.bf16 %v8015_v57  ;;  %v2819_v42 = vadd.f32 %v2818_v17, %v2760_v11  ;;  %v8026_v38 = vld [vmem:[#allocation55_spill] sm:$0xff]  ;;  %v8030_v17 = vld [vmem:[#allocation66_spill] sm:$0xff] }
 0x6bd   : > { %v2811_v5 = vadd.f32 %v2810_v41, %v2768_v49  ;;  %v4521_v1 = vadd.f32 %v4520_v59, %v4519_v28  ;;  %v2803_v34 = vrot.slane %v6583_v8, 4  ;;  %v2828_v61 = vadd.f32 %v2827_v37, %v2761_v60  ;;  %v8031_v28 = vld [vmem:[#allocation28_spill] sm:$0xff] }
 0x6be   : > { %v2771_v24 = vmul.f32 %v8017_v30, %v6500_v7  ;;  %v2837_v12 = vadd.f32 %v2836_v10, %v2762_v6  ;;  %v2778_v50 = vrot.slane %v8018_v33, 2  ;;  %v8020_v31 = vrot.slane %v8019_v15, 4  ;;  %v8035_v30 = vld [vmem:[#allocation67_spill] sm:$0xff] }
 0x6bf   : > { %v2812_v18 = vrot.slane %v2811_v5, 4  ;;  %v2820_v9 = vadd.f32 %v2819_v42, %v2769_v45  ;;  %v4523_v53 = vadd.f32 %v4522_v19, %v4521_v1  ;;  %v2829_v26 = vadd.f32 %v2828_v61, %v2770_v36  ;;  %v8038_v61 = vld [vmem:[#allocation40_spill] sm:$0xff] }
 0x6c0   : > { %v6653_v13 = vadd.f32 %v8020_v31, %v8019_v15  ;;  %v2838_v20 = vadd.f32 %v2837_v12, %v2771_v24  ;;  %v8023_v11 = vunpack.c.l.bf16 %v8022_v0  ;;  %v6661_v60 = vadd.f32 %v2794_v44, %v6423_v23  ;;  %v8036_v24 = vld [vmem:[#allocation30_spill] sm:$0xff] }
 0x6c1   : > { %v2821_v6 = vrot.slane %v2820_v9, 4  ;;  %v8025_v22 = vunpack.c.h.bf16 %v8022_v0  ;;  %v8028_v14 = vunpack.c.l.bf16 %v8027_v52  ;;  %v4525_v49 = vadd.f32 %v8029_v3, %v4523_v53 }
 0x6c2   : > { %v2920_v43 = vmul.f32 %v8023_v11, %v8021_v63  ;;  %v6671_v59 = vadd.f32 %v2803_v34, %v6583_v8  ;;  %v2830_v55 = vrot.slane %v2829_v26, 4  ;;  %v2839_v45 = vrot.slane %v2838_v20, 4  ;;  %v8033_v8 = vld [vmem:[#allocation68_spill] sm:$0xff] }
 0x6c3   : > { %v2921_v46 = vmul.f32 %v8025_v22, %v8024_v29  ;;  %v2929_v48 = vmul.f32 %v8028_v14, %v8026_v38  ;;  %v6674_v41 = vadd.f32 %v2778_v50, %v8018_v33  ;;  %v6677_v44 = vadd.f32 %v2812_v18, %v2811_v5  ;;  %4526 = vadd.xlane.f32.xlu1 %v4525_v49  ;;  %v8040_v50 = vld [vmem:[#allocation70_spill] sm:$0xff]  ;;  %v8046_v14 = vld [vmem:[#allocation41_spill] sm:$0xff] }
 0x6c4   : > { %v8032_v57 = vunpack.c.l.bf16 %v8031_v28  ;;  %v6682_v36 = vadd.f32 %v2821_v6, %v2820_v9  ;;  %v6684_v37 = vadd.f32 %v2830_v55, %v2829_v26  ;;  %v8034_v10 = vunpack.c.h.bf16 %v8031_v28  ;;  %v8043_v26 = vld [vmem:[#allocation42_spill] sm:$0xff]  ;;  %v8049_v28 = vld [vmem:[#allocation43_spill] sm:$0xff] }
 0x6c5   : > { %v8037_v42 = vunpack.c.l.bf16 %v8036_v24  ;;  %v6693_v34 = vadd.f32 %v2839_v45, %v2838_v20  ;;  %v8039_v12 = vunpack.c.l.bf16 %v8038_v61  ;;  %v8041_v15 = vunpack.c.h.bf16 %v8036_v24  ;;  %v8057_v22 = vld [vmem:[#allocation74_spill] sm:$0xff] }
 0x6c6   : > { %v2913_v56 = vmul.f32 %v8032_v57, %v8030_v17  ;;  %v2914_v19 = vmul.f32 %v8034_v10, %v8033_v8  ;;  %v8042_v9 = vunpack.c.h.bf16 %v8038_v61  ;;  %v8044_v0 = vunpack.c.l.bf16 %v8043_v26  ;;  %v8059_v5 = vld [vmem:[#allocation46_spill] sm:$0xff] }
 0x6c7   : > { %v2922_v1 = vmul.f32 %v8037_v42, %v8035_v30  ;;  %v2915_v33 = vmul.f32 %v8039_v12, %v6432_v21  ;;  %v2923_v31 = vmul.f32 %v8041_v15, %v8040_v50  ;;  %v8045_v20 = vunpack.c.h.bf16 %v8043_v26  ;;  %v8052_v15 = vld [vmem:[#allocation57_spill] sm:$0xff] }
 0x6c8   : > { %v2916_v53 = vmul.f32 %v8042_v9, %v6435_v51  ;;  %v2917_v11 = vmul.f32 %v8044_v0, %v6451_v32  ;;  %v8047_v3 = vunpack.c.l.bf16 %v8046_v14  ;;  %v8048_v55 = vunpack.c.h.bf16 %v8046_v14  ;;  %v8055_v14 = vld [vmem:[#allocation32_spill] sm:$0xff] }
 0x6c9   : > { %v2918_v6 = vmul.f32 %v8045_v20, %v6456_v40  ;;  %v8050_v57 = vunpack.c.l.bf16 %v8049_v28  ;;  %v2823_v24 = vrot.slane %v6682_v36, 2  ;;  %v2832_v42 = vrot.slane %v6684_v37, 2  ;;  %v8054_v20 = vld [vmem:[#allocation71_spill] sm:$0xff] }
 0x6ca   : > { %v2924_v49 = vmul.f32 %v8047_v3, %v6438_v16  ;;  %v2925_v45 = vmul.f32 %v8048_v55, %v6440_v39  ;;  %v8051_v61 = vunpack.c.h.bf16 %v8049_v28  ;;  %v8053_v9 = vunpack.c.h.bf16 %v8027_v52  ;;  %v8062_v52 = vld [vmem:[#allocation49_spill] sm:$0xff]  ;;  %v8071_v16 = vld [vmem:[#allocation35_spill] sm:$0xff] }
 0x6cb   : > { %v2926_v10 = vmul.f32 %v8050_v57, %v6453_v35  ;;  %v2841_v0 = vrot.slane %v6693_v34, 2  ;;  %v8056_v3 = vunpack.c.l.bf16 %v8055_v14  ;;  %v8058_v57 = vunpack.c.h.bf16 %v8055_v14  ;;  %v8066_v35 = vld [vmem:[#allocation15_spill] sm:$0xff] }
 0x6cc   : > { %v2927_v12 = vmul.f32 %v8051_v61, %v6458_v25  ;;  %v2930_v26 = vmul.f32 %v8053_v9, %v8052_v15  ;;  %v8060_v23 = vunpack.c.l.bf16 %v8059_v5  ;;  %v8061_v28 = vunpack.c.h.bf16 %v8059_v5 }
 0x6cd   : > { %v2931_v55 = vmul.f32 %v8056_v3, %v8054_v20  ;;  %v2932_v18 = vmul.f32 %v8058_v57, %v8057_v22  ;;  %v8063_v9 = vunpack.c.l.bf16 %v8062_v52  ;;  %v8064_v25 = vunpack.c.h.bf16 %v8062_v52  ;;  %v8065_v20 = vld [vmem:[#allocation56_spill] sm:$0xff]  ;;  %v8068_v22 = vld [vmem:[#allocation58_spill] sm:$0xff] }
 0x6ce   : > { %v2933_v38 = vmul.f32 %v8060_v23, %v6462_v54  ;;  %v2934_v61 = vmul.f32 %v8061_v28, %v6469_v47  ;;  %v8067_v14 = vunpack.c.l.bf16 %v8066_v35  ;;  %v8069_v39 = vunpack.c.h.bf16 %v8066_v35  ;;  %v8070_v54 = vld [vmem:[#allocation72_spill] sm:$0xff]  ;;  %v8073_v47 = vld [vmem:[#allocation75_spill] sm:$0xff] }
 0x6cf   : > { %v2935_v15 = vmul.f32 %v8063_v9, %v6494_v58  ;;  %v2936_v3 = vmul.f32 %v8064_v25, %v6498_v62  ;;  %v8072_v5 = vunpack.c.l.bf16 %v8071_v16  ;;  %v8074_v50 = vunpack.c.h.bf16 %v8071_v16  ;;  %v8075_v58 = vld [vmem:[#allocation47_spill] sm:$0xff]  ;;  %v8082_v16 = vld [vmem:[#allocation69_spill] sm:$0xff] }
 0x6d0   : > { %v2938_v57 = vmul.f32 %v8067_v14, %v8065_v20  ;;  %v2939_v23 = vmul.f32 %v8069_v39, %v8068_v22  ;;  %v8076_v52 = vunpack.c.l.bf16 %v8075_v58  ;;  %v8077_v62 = vunpack.c.h.bf16 %v8075_v58  ;;  %v8078_v20 = vld [vmem:[#allocation54_spill] sm:$0xff] }
 0x6d1   : > { %v2940_v28 = vmul.f32 %v8072_v5, %v8070_v54  ;;  %v2941_v9 = vmul.f32 %v8074_v50, %v8073_v47  ;;  %v8079_v35 = vunpack.c.l.bf16 %v8078_v20  ;;  %v8080_v22 = vunpack.c.h.bf16 %v8078_v20  ;;  %v8081_v54 = vld [vmem:[#allocation65_spill] sm:$0xff] }
 0x6d2   : > { %v2942_v25 = vmul.f32 %v8076_v52, %v6464_v27  ;;  %v2943_v14 = vmul.f32 %v8077_v62, %v6471_v4  ;;  %v2947_v30 = vadd.f32 %v2920_v43, %v8081_v54  ;;  %v2956_v50 = vadd.f32 %v2921_v46, %v8082_v16 }
 0x6d3   : > { %v2944_v39 = vmul.f32 %v8079_v35, %v6496_v2  ;;  %v2945_v5 = vmul.f32 %v8080_v22, %v6500_v7  ;;  %v2965_v47 = vadd.f32 %v2922_v1, %v2913_v56  ;;  %v2974_v29 = vadd.f32 %v2923_v31, %v2914_v19 }
 0x6d4   : > { %v2983_v63 = vadd.f32 %v2924_v49, %v2915_v33  ;;  %v2948_v52 = vadd.f32 %v2947_v30, %v2929_v48  ;;  %v2992_v27 = vadd.f32 %v2925_v45, %v2916_v53  ;;  %v3001_v40 = vadd.f32 %v2926_v10, %v2917_v11 }
 0x6d5   : > { %v3010_v58 = vadd.f32 %v2927_v12, %v2918_v6  ;;  %v2957_v62 = vadd.f32 %v2956_v50, %v2930_v26  ;;  %v2966_v4 = vadd.f32 %v2965_v47, %v2931_v55  ;;  %v2975_v32 = vadd.f32 %v2974_v29, %v2932_v18 }
 0x6d6   : > { %v2984_v51 = vadd.f32 %v2983_v63, %v2933_v38  ;;  %v2949_v35 = vadd.f32 %v2948_v52, %v2938_v57  ;;  %v2993_v2 = vadd.f32 %v2992_v27, %v2934_v61  ;;  %v3002_v21 = vadd.f32 %v3001_v40, %v2935_v15 }
 0x6d7   : > { %v3011_v20 = vadd.f32 %v3010_v58, %v2936_v3  ;;  %v2958_v22 = vadd.f32 %v2957_v62, %v2939_v23  ;;  %v2967_v7 = vadd.f32 %v2966_v4, %v2940_v28  ;;  %v2976_v54 = vadd.f32 %v2975_v32, %v2941_v9  ;;  %v8092_v58 = vld [vmem:[#allocation59_spill] sm:$0xff]  ;;  %v8093_v62 = vld [vmem:[#allocation61_spill] sm:$0xff] }
 0x6d8   : > { %v2985_v43 = vadd.f32 %v2984_v51, %v2942_v25  ;;  %v2950_v46 = vrot.slane %v2949_v35, 4  ;;  %v2994_v56 = vadd.f32 %v2993_v2, %v2943_v14  ;;  %v3003_v19 = vadd.f32 %v3002_v21, %v2944_v39 }
 0x6d9   : > { %v3012_v1 = vadd.f32 %v3011_v20, %v2945_v5  ;;  %v2959_v48 = vrot.slane %v2958_v22, 4  ;;  %v2968_v30 = vrot.slane %v2967_v7, 4  ;;  %v2977_v33 = vrot.slane %v2976_v54, 4 }
 0x6da   : > { %v2986_v31 = vrot.slane %v2985_v43, 4  ;;  %v8083_v47 = vrot.slane %v6653_v13, 2  ;;  %v2951_v29 = vadd.f32 %v2950_v46, %v2949_v35  ;;  %v2995_v27 = vrot.slane %v2994_v56, 4  ;;  %v3030_v46 = vld [vmem:[#allocation5 + $0x128] sm:$0xff] }
 0x6db   : > { %v3004_v40 = vrot.slane %v3003_v19, 4  ;;  %v2960_v38 = vadd.f32 %v2959_v48, %v2958_v22  ;;  %v2969_v18 = vadd.f32 %v2968_v30, %v2967_v7  ;;  %v2978_v4 = vadd.f32 %v2977_v33, %v2976_v54  ;;  %v8097_v30 = vld [vmem:[#allocation62_spill] sm:$0xff] }
 0x6dc   : > { %v2788_v63 = vadd.f32 %v8083_v47, %v6653_v13  ;;  %v3013_v32 = vrot.slane %v3012_v1, 4  ;;  %v2780_v51 = vrot.slane %v6674_v41, 1  ;;  %v8084_v21 = vrot.slane %v6661_v60, 2  ;;  %v3035_v47 = vld [vmem:[#allocation5 + $0x14c] sm:$0xff] }
 0x6dd   : > { %v8085_v53 = vrot.slane %v6671_v59, 2  ;;  %v8086_v13 = vrot.slane %v6677_v44, 2  ;;  %v2824_v49 = vadd.f32 %v2823_v24, %v6682_v36  ;;  %v2833_v7 = vadd.f32 %v2832_v42, %v6684_v37 }
 0x6de   : > { %v2797_v2 = vadd.f32 %v8084_v21, %v6661_v60  ;;  %v2842_v45 = vadd.f32 %v2841_v0, %v6693_v34  ;;  %v2987_v10 = vadd.f32 %v2986_v31, %v2985_v43  ;;  %v2789_v12 = vrot.slane %v2788_v63, 1  ;;  %v3032_v31 = vld [vmem:[#allocation5 + $0x138] sm:$0xff] }
 0x6df   : > { %v2806_v11 = vadd.f32 %v8085_v53, %v6671_v59  ;;  %v2815_v6 = vadd.f32 %v8086_v13, %v6677_v44  ;;  %v2952_v15 = vrot.slane %v2951_v29, 2  ;;  %v2996_v26 = vadd.f32 %v2995_v27, %v2994_v56  ;;  %v3031_v56 = vld [vmem:[#allocation5 + $0x130] sm:$0xff]  ;;  %v3042_v13 = vld [vmem:[#allocation5 + $0x180] sm:$0xff] }
 0x6e0   : > { %v3005_v55 = vadd.f32 %v3004_v40, %v3003_v19  ;;  %v2961_v60 = vrot.slane %v2960_v38, 2  ;;  %v2970_v61 = vrot.slane %v2969_v18, 2  ;;  %v2979_v3 = vrot.slane %v2978_v4, 2  ;;  %v8111_v19 = vld [vmem:[#allocation53_spill] sm:$0xff] }
 0x6e1   : > { %v3014_v57 = vadd.f32 %v3013_v32, %v3012_v1  ;;  %v6791_v59 = vadd.f32 %v2780_v51, %v6674_v41  ;;  %v2798_v23 = vrot.slane %v2797_v2, 1  ;;  %v2807_v44 = vrot.slane %v2806_v11, 1  ;;  %v3037_v32 = vld [vmem:[#allocation5 + $0x15c] sm:$0xff]  ;;  %v3040_v51 = vld [vmem:[#allocation5 + $0x170] sm:$0xff] }
 0x6e2   : > { %v2816_v28 = vrot.slane %v2815_v6, 1  ;;  %v2825_v36 = vrot.slane %v2824_v49, 1  ;;  %v2834_v24 = vrot.slane %v2833_v7, 1  ;;  %v2843_v37 = vrot.slane %v2842_v45, 1 }
 0x6e3   : > { %8087 = vst [vmem:[#allocation19_spill] sm:$0xff] %v6791_v59  ;;  %v2988_v42 = vrot.slane %v2987_v10, 2  ;;  %v6793_v34 = vadd.f32 %v2789_v12, %v2788_v63  ;;  %v6795_v0 = vadd.f32 %v2952_v15, %v2951_v29  ;;  %v2997_v9 = vrot.slane %v2996_v26, 2  ;;  %v3045_v12 = vld [vmem:[#allocation5 + $0x194] sm:$0xff]  ;;  %v3046_v15 = vld [vmem:[#allocation5 + $0x19c] sm:$0xff] }
 0x6e4   : > { %v3006_v25 = vrot.slane %v3005_v55, 2  ;;  %v6797_v14 = vadd.f32 %v2961_v60, %v2960_v38  ;;  %v6799_v39 = vadd.f32 %v2970_v61, %v2969_v18  ;;  %v6801_v5 = vadd.f32 %v2979_v3, %v2978_v4  ;;  %v3036_v38 = vld [vmem:[#allocation5 + $0x154] sm:$0xff]  ;;  %v3047_v61 = vld [vmem:[#allocation5 + $0x1a4] sm:$0xff] }
 0x6e5   : > { %8088 = vst [vmem:[#allocation22_spill] sm:$0xff] %v6793_v34  ;;  %v3015_v41 = vrot.slane %v3014_v57, 2  ;;  %v6803_v16 = vadd.f32 %v2798_v23, %v2797_v2  ;;  %v6805_v50 = vadd.f32 %v2807_v44, %v2806_v11  ;;  %v6807_v52 = vadd.f32 %v2816_v28, %v2815_v6  ;;  %v8098_v18 = vld [vmem:[#allocation63_spill] sm:$0xff]  ;;  %v8120_v59 = vld [vmem:[#allocation60_spill] sm:$0xff] }
 0x6e6   : > { %v3019_v35 = vadd.f32 %v8093_v62, %v8092_v58  ;;  %v6811_v20 = vadd.f32 %v2825_v36, %v2824_v49  ;;  %v6813_v22 = vadd.f32 %v2834_v24, %v2833_v7  ;;  %v6815_v54 = vadd.f32 %v2843_v37, %v2842_v45  ;;  %v3041_v11 = vld [vmem:[#allocation5 + $0x178] sm:$0xff] }
 0x6e7   : > { %8089 = vst [vmem:[#allocation23_spill] sm:$0xff] %v6803_v16  ;;  %8090 = vst [vmem:[#allocation16_spill] sm:$0xff] %v6805_v50  ;;  %v6817_v43 = vadd.f32 %v2988_v42, %v2987_v10  ;;  %v6820_v1 = vadd.f32 %v2997_v9, %v2996_v26  ;;  %v6822_v48 = vadd.f32 %v3006_v25, %v3005_v55  ;;  %v3051_v21 = vunpack.c.l.bf16 %v3030_v46  ;;  %v8108_v29 = vld [vmem:[#allocation51_spill] sm:$0xff]  ;;  %v8118_v16 = vld [vmem:[#allocation85_spill] sm:$0xff] }
 0x6e8   : > { %8091 = vst [vmem:[#allocation20_spill] sm:$0xff] %v6807_v52  ;;  %8094 = vst [vmem:[#allocation17_spill] sm:$0xff] %v6811_v20  ;;  %v3020_v33 = vadd.f32 %v3019_v35, %v8097_v30  ;;  %v6828_v40 = vadd.f32 %v3015_v41, %v3014_v57  ;;  %v3052_v2 = vunpack.c.h.bf16 %v3030_v46  ;;  %v3053_v53 = vunpack.c.l.bf16 %v3031_v56  ;;  %v8099_v46 = vld [vmem:[#allocation50_spill] sm:$0xff]  ;;  %v8115_v20 = vld [vmem:[#allocation80_spill] sm:$0xff] }
 0x6e9   : > { %8095 = vst [vmem:[#allocation21_spill] sm:$0xff] %v6813_v22  ;;  %8096 = vst [vmem:[#allocation24_spill] sm:$0xff] %v6815_v54  ;;  %v3054_v6 = vunpack.c.h.bf16 %v3031_v56  ;;  %v3055_v49 = vunpack.c.l.bf16 %v3032_v31  ;;  %v3056_v7 = vunpack.c.h.bf16 %v3032_v31  ;;  %v3060_v45 = vunpack.c.l.bf16 %v3035_v47  ;;  %v8100_v56 = vld [vmem:[#allocation44_spill] sm:$0xff]  ;;  %v8113_v54 = vld [vmem:[#allocation67_spill] sm:$0xff] }
 0x6ea   : > { %v3021_v4 = vadd.f32 %v3020_v33, %v8098_v18  ;;  %v3061_v26 = vunpack.c.h.bf16 %v3035_v47  ;;  %v3062_v55 = vunpack.c.l.bf16 %v3036_v38  ;;  %v3063_v60 = vunpack.c.h.bf16 %v3036_v38  ;;  %v8102_v47 = vld [vmem:[#allocation52_spill] sm:$0xff]  ;;  %v8114_v22 = vld [vmem:[#allocation70_spill] sm:$0xff]  ;;  %v8116_v52 = vld [vmem:[#allocation81_spill] sm:$0xff] }
 0x6eb   : > { %v3064_v3 = vunpack.c.l.bf16 %v3037_v32  ;;  %v3065_v57 = vunpack.c.h.bf16 %v3037_v32  ;;  %v3069_v23 = vunpack.c.l.bf16 %v3040_v51  ;;  %v3070_v44 = vunpack.c.h.bf16 %v3040_v51  ;;  %v8104_v51 = vld [vmem:[#allocation78_spill] sm:$0xff]  ;;  %v8117_v50 = vld [vmem:[#allocation83_spill] sm:$0xff] }
 0x6ec   : > { %v3022_v10 = vrot.slane %v3021_v4, 4  ;;  %v3071_v36 = vunpack.c.l.bf16 %v3041_v11  ;;  %v3072_v24 = vunpack.c.h.bf16 %v3041_v11  ;;  %v3073_v37 = vunpack.c.l.bf16 %v3042_v13  ;;  %v8119_v34 = vld [vmem:[#allocation55_spill] sm:$0xff] }
 0x6ed   : > { %v3074_v42 = vunpack.c.h.bf16 %v3042_v13  ;;  %v3078_v9 = vunpack.c.l.bf16 %v3045_v12  ;;  %v3079_v25 = vunpack.c.h.bf16 %v3045_v12  ;;  %v3080_v41 = vunpack.c.l.bf16 %v3046_v15  ;;  %v8105_v13 = vld [vmem:[#allocation79_spill] sm:$0xff]  ;;  %v8106_v12 = vld [vmem:[#allocation82_spill] sm:$0xff] }
 0x6ee   : > { %v6831_v28 = vadd.f32 %v3022_v10, %v3021_v4  ;;  %v3081_v58 = vunpack.c.h.bf16 %v3046_v15  ;;  %v3082_v62 = vunpack.c.l.bf16 %v3047_v61  ;;  %v3083_v35 = vunpack.c.h.bf16 %v3047_v61  ;;  %v8107_v61 = vld [vmem:[#allocation84_spill] sm:$0xff] }
 0x6ef   : > { %v8101_v30 = vunpack.c.l.bf16 %v8100_v56  ;;  %v8103_v38 = vunpack.c.h.bf16 %v8100_v56  ;;  %v3087_v4 = vmul.f32 %v3051_v21, %v8030_v17  ;;  %v3088_v32 = vmul.f32 %v3052_v2, %v8033_v8 }
 0x6f0   : > { %v3089_v11 = vmul.f32 %v3053_v53, %v8104_v51  ;;  %v3090_v10 = vmul.f32 %v3054_v6, %v8105_v13  ;;  %v3091_v15 = vmul.f32 %v3055_v49, %v8106_v12  ;;  %v3092_v27 = vmul.f32 %v3056_v7, %v8107_v61  ;;  %v8131_v12 = vld [vmem:[#allocation64_spill] sm:$0xff] }
 0x6f1   : > { %v3085_v33 = vmul.f32 %v8101_v30, %v8099_v46  ;;  %v3086_v18 = vmul.f32 %v8103_v38, %v8102_v47  ;;  %v8109_v30 = vld [vmem:[#allocation45_spill] sm:$0xff]  ;;  %v3096_v21 = vmul.f32 %v3060_v45, %v8113_v54  ;;  %v3097_v2 = vmul.f32 %v3061_v26, %v8114_v22  ;;  %v8125_v54 = vld [vmem:[#allocation74_spill] sm:$0xff] }
 0x6f2   : > { %v8110_v63 = vunpack.c.l.bf16 %v8109_v30  ;;  %v8112_v56 = vunpack.c.h.bf16 %v8109_v30  ;;  %v3098_v53 = vmul.f32 %v3062_v55, %v8115_v20  ;;  %v3099_v6 = vmul.f32 %v3063_v60, %v8116_v52  ;;  %v8126_v22 = vld [vmem:[#allocation86_spill] sm:$0xff]  ;;  %v8127_v20 = vld [vmem:[#allocation11_spill] sm:$0xff]  ;;  %v8128_v52 = vld [vmem:[#allocation12_spill] sm:$0xff] }
 0x6f3   : > { %v3100_v49 = vmul.f32 %v3064_v3, %v8117_v50  ;;  %v3101_v7 = vmul.f32 %v3065_v57, %v8118_v16  ;;  %v8121_v61 = vunpack.c.l.bf16 %v8120_v59  ;;  %v8123_v30 = vunpack.c.h.bf16 %v8120_v59  ;;  %v8129_v50 = vld [vmem:[#allocation18_spill] sm:$0xff]  ;;  %v8130_v16 = vld [vmem:[#allocation56_spill] sm:$0xff] }
 0x6f4   : > { %v3094_v31 = vmul.f32 %v8110_v63, %v8108_v29  ;;  %v3095_v38 = vmul.f32 %v8112_v56, %v8111_v19  ;;  %v8122_v29 = vld [vmem:[#allocation57_spill] sm:$0xff]  ;;  %v8124_v19 = vld [vmem:[#allocation71_spill] sm:$0xff]  ;;  %v3106_v26 = vmul.f32 %v3070_v44, %v8125_v54  ;;  %v3107_v55 = vmul.f32 %v3071_v36, %v8126_v22  ;;  %v8138_v22 = vld [vmem:[#allocation88_spill] sm:$0xff] }
 0x6f5   : > { %v3103_v63 = vmul.f32 %v8121_v61, %v8119_v34  ;;  %v3104_v56 = vmul.f32 %v8123_v30, %v8122_v29  ;;  %v3105_v45 = vmul.f32 %v3069_v23, %v8124_v19  ;;  %v3108_v60 = vmul.f32 %v3072_v24, %v8127_v20  ;;  %v8133_v34 = vld [vmem:[#allocation58_spill] sm:$0xff]  ;;  %v8135_v29 = vld [vmem:[#allocation72_spill] sm:$0xff]  ;;  %v8136_v19 = vld [vmem:[#allocation75_spill] sm:$0xff] }
 0x6f6   : > { %v3109_v3 = vmul.f32 %v3073_v37, %v8128_v52  ;;  %v3110_v57 = vmul.f32 %v3074_v42, %v8129_v50  ;;  %v8132_v13 = vunpack.c.l.bf16 %v8131_v12  ;;  %v8134_v59 = vunpack.c.h.bf16 %v8131_v12  ;;  %v8137_v54 = vld [vmem:[#allocation87_spill] sm:$0xff]  ;;  %v8139_v20 = vld [vmem:[#allocation13_spill] sm:$0xff] }
 0x6f7   : > { %v3114_v23 = vmul.f32 %v3078_v9, %v8135_v29  ;;  %v3115_v44 = vmul.f32 %v3079_v25, %v8136_v19  ;;  %v3116_v36 = vmul.f32 %v3080_v41, %v8137_v54  ;;  %v3117_v24 = vmul.f32 %v3081_v58, %v8138_v22  ;;  %v8140_v52 = vld [vmem:[#allocation89_spill] sm:$0xff] }
 0x6f8   : > { %v3112_v61 = vmul.f32 %v8132_v13, %v8130_v16  ;;  %v3113_v30 = vmul.f32 %v8134_v59, %v8133_v34  ;;  %v3118_v37 = vmul.f32 %v3082_v62, %v8139_v20  ;;  %v3119_v42 = vmul.f32 %v3083_v35, %v8140_v52 }
 0x6f9   : > { %v3121_v50 = vadd.f32 %v3094_v31, %v3085_v33  ;;  %v3130_v51 = vadd.f32 %v3095_v38, %v3086_v18  ;;  %v3139_v8 = vadd.f32 %v3096_v21, %v3087_v4  ;;  %v3148_v13 = vadd.f32 %v3097_v2, %v3088_v32 }
 0x6fa   : > { %v3157_v16 = vadd.f32 %v3098_v53, %v3089_v11  ;;  %v3166_v17 = vadd.f32 %v3099_v6, %v3090_v10  ;;  %v3175_v12 = vadd.f32 %v3100_v49, %v3091_v15  ;;  %v3184_v59 = vadd.f32 %v3101_v7, %v3092_v27  ;;  %v3043_v53 = vld [vmem:[#allocation5 + $0x188] ss:$36 sps:$4 sm:$0xff]  }
 0x6fb   : > { %v3122_v34 = vadd.f32 %v3121_v50, %v3103_v63  ;;  %v3131_v9 = vadd.f32 %v3130_v51, %v3104_v56  ;;  %v3140_v29 = vadd.f32 %v3139_v8, %v3105_v45  ;;  %v3149_v25 = vadd.f32 %v3148_v13, %v3106_v26  ;;  %v3033_v50 = vld [vmem:[#allocation5 + $0x140] ss:$36 sps:$4 sm:$0xff]  }
 0x6fc   : > { %v3158_v19 = vadd.f32 %v3157_v16, %v3107_v55  ;;  %v3167_v41 = vadd.f32 %v3166_v17, %v3108_v60  ;;  %v3176_v54 = vadd.f32 %v3175_v12, %v3109_v3  ;;  %v3185_v58 = vadd.f32 %v3184_v59, %v3110_v57  ;;  %v8150_v13 = vld [vmem:[#allocation8_spill] sm:$0xff]  ;;  %v8151_v59 = vld [vmem:[#allocation9_spill] sm:$0xff] }
 0x6fd   : > { %v3123_v22 = vadd.f32 %v3122_v34, %v3112_v61  ;;  %v3132_v62 = vadd.f32 %v3131_v9, %v3113_v30  ;;  %v3141_v20 = vadd.f32 %v3140_v29, %v3114_v23  ;;  %v3150_v35 = vadd.f32 %v3149_v25, %v3115_v44 }
 0x6fe   : > { %v3159_v33 = vadd.f32 %v3158_v19, %v3116_v36  ;;  %v3168_v31 = vadd.f32 %v3167_v41, %v3117_v24  ;;  %v3177_v18 = vadd.f32 %v3176_v54, %v3118_v37  ;;  %v3186_v4 = vadd.f32 %v3185_v58, %v3119_v42 }
 0x6ff   : > { %v3124_v32 = vrot.slane %v3123_v22, 4  ;;  %v3133_v11 = vrot.slane %v3132_v62, 4  ;;  %v3142_v10 = vrot.slane %v3141_v20, 4  ;;  %v3151_v27 = vrot.slane %v3150_v35, 4 }
 0x700   : > { %v3160_v51 = vrot.slane %v3159_v33, 4  ;;  %v3169_v8 = vrot.slane %v3168_v31, 4  ;;  %v3178_v15 = vrot.slane %v3177_v18, 4  ;;  %v3187_v16 = vrot.slane %v3186_v4, 4 }
 0x701   : > { %v2990_v17 = vrot.slane %v6817_v43, 1  ;;  %v3125_v38 = vadd.f32 %v3124_v32, %v3123_v22  ;;  %v3134_v34 = vadd.f32 %v3133_v11, %v3132_v62  ;;  %v3143_v21 = vadd.f32 %v3142_v10, %v3141_v20 }
 0x702   : > { %v8141_v19 = vrot.slane %v6795_v0, 1  ;;  %v2999_v54 = vrot.slane %v6820_v1, 1  ;;  %v3008_v2 = vrot.slane %v6822_v48, 1  ;;  %v3152_v6 = vadd.f32 %v3151_v27, %v3150_v35 }
 0x703   : > { %v3017_v49 = vrot.slane %v6828_v40, 1  ;;  %v8143_v7 = vrot.slane %v6831_v28, 2  ;;  %v3057_v22 = vunpack.c.l.bf16 %v3033_v50  ;;  %v3066_v56 = vunpack.c.h.bf16 %v3033_v50  ;;  %v6935_v50 = vld [vmem:[#allocation5 + $0x1b0] sm:$0xff] }
 0x704   : > { %v6886_v29 = vadd.f32 %v8141_v19, %v6795_v0  ;;  %v3161_v20 = vadd.f32 %v3160_v51, %v3159_v33  ;;  %v3170_v45 = vadd.f32 %v3169_v8, %v3168_v31  ;;  %v3179_v26 = vadd.f32 %v3178_v15, %v3177_v18  ;;  %v3205_v15 = vld [vmem:[#allocation5 + $0x1c0] sm:$0xff] }
 0x705   : > { %v3025_v63 = vadd.f32 %v8143_v7, %v6831_v28  ;;  %v3188_v55 = vadd.f32 %v3187_v16, %v3186_v4  ;;  %v3075_v0 = vunpack.c.l.bf16 %v3043_v53  ;;  %v3126_v60 = vrot.slane %v3125_v38, 2 }
 0x706   : > { %8142 = vst [vmem:[#allocation26_spill] sm:$0xff] %v6886_v29  ;;  %v3135_v3 = vrot.slane %v3134_v34, 2  ;;  %v3144_v57 = vrot.slane %v3143_v21, 2  ;;  %v8144_v61 = vrot.slane %v6797_v14, 1  ;;  %v8146_v23 = vrot.slane %v6799_v39, 1  ;;  %v8164_v29 = vld [vmem:[#allocation53_spill] sm:$0xff] }
 0x707   : > { %v8148_v28 = vrot.slane %v6801_v5, 1  ;;  %v3153_v24 = vrot.slane %v3152_v6, 2  ;;  %v3026_v37 = vrot.slane %v3025_v63, 1  ;;  %v3084_v42 = vunpack.c.h.bf16 %v3043_v53 }
 0x708   : > { %v6897_v30 = vadd.f32 %v8144_v61, %v6797_v14  ;;  %v6902_v44 = vadd.f32 %v8146_v23, %v6799_v39  ;;  %v3093_v12 = vmul.f32 %v3057_v22, %v8150_v13  ;;  %v3102_v9 = vmul.f32 %v3066_v56, %v8151_v59  ;;  %v3213_v22 = vld [vmem:[#allocation5 + $0x1f8] sm:$0xff]  ;;  %v3215_v61 = vld [vmem:[#allocation5 + $0x208] sm:$0xff]  ;;  %v3216_v23 = vld [vmem:[#allocation5 + $0x210] sm:$0xff] }
 0x709   : > { %v6907_v36 = vadd.f32 %v8148_v28, %v6801_v5  ;;  %v3162_v25 = vrot.slane %v3161_v20, 2  ;;  %v3171_v14 = vrot.slane %v3170_v45, 2  ;;  %v3180_v41 = vrot.slane %v3179_v26, 2 }
 0x70a   : > { %8145 = vst [vmem:[#allocation25_spill] sm:$0xff] %v6897_v30  ;;  %8147 = vst [vmem:[#allocation27_spill] sm:$0xff] %v6902_v44  ;;  %v3189_v58 = vrot.slane %v3188_v55, 2  ;;  %v3111_v62 = vmul.f32 %v3075_v0, %v8150_v13  ;;  %v6912_v39 = vadd.f32 %v3126_v60, %v3125_v38  ;;  %v6914_v35 = vadd.f32 %v3135_v3, %v3134_v34  ;;  %v3206_v34 = vld [vmem:[#allocation5 + $0x1c8] sm:$0xff]  ;;  %v8162_v44 = vld [vmem:[#allocation84_spill] sm:$0xff] }
 0x70b   : > { %8149 = vst [vmem:[#allocation29_spill] sm:$0xff] %v6907_v36  ;;  %v6916_v33 = vadd.f32 %v3144_v57, %v3143_v21  ;;  %v6919_v5 = vadd.f32 %v2990_v17, %v6817_v43  ;;  %v6922_v31 = vadd.f32 %v2999_v54, %v6820_v1  ;;  %v6925_v18 = vadd.f32 %v3008_v2, %v6822_v48  ;;  %v6937_v43 = vld [vmem:[#allocation5 + $0x1b8] sm:$0xff]  ;;  %v3210_v2 = vld [vmem:[#allocation5 + $0x1e4] sm:$0xff]  ;;  %v8161_v36 = vld [vmem:[#allocation82_spill] sm:$0xff] }
 0x70c   : > { %v6927_v4 = vadd.f32 %v3153_v24, %v3152_v6  ;;  %v6930_v32 = vadd.f32 %v3017_v49, %v6828_v40  ;;  %v6932_v11 = vadd.f32 %v3026_v37, %v3025_v63  ;;  %v3120_v10 = vmul.f32 %v3084_v42, %v8151_v59  ;;  %v3208_v21 = vld [vmem:[#allocation5 + $0x1d4] sm:$0xff]  ;;  %v3209_v54 = vld [vmem:[#allocation5 + $0x1dc] sm:$0xff]  ;;  %v3211_v63 = vld [vmem:[#allocation5 + $0x1ec] sm:$0xff] }
 0x70d   : > { %8152 = vst [vmem:[#allocation33_spill] sm:$0xff] %v6919_v5  ;;  %8153 = vst [vmem:[#allocation31_spill] sm:$0xff] %v6922_v31  ;;  %v3193_v27 = vadd.f32 %v3102_v9, %v3093_v12  ;;  %v6939_v51 = vadd.f32 %v3162_v25, %v3161_v20  ;;  %v6941_v1 = vadd.f32 %v3171_v14, %v3170_v45  ;;  %v3223_v53 = vunpack.c.l.bf16 %v6935_v50  ;;  %v3218_v42 = vld [vmem:[#allocation5 + $0x21c] sm:$0xff]  ;;  %v3219_v12 = vld [vmem:[#allocation5 + $0x224] sm:$0xff] }
 0x70e   : > { %8154 = vst [vmem:[#allocation34_spill] sm:$0xff] %v6925_v18  ;;  %8155 = vst [vmem:[#allocation36_spill] sm:$0xff] %v6930_v32  ;;  %v6943_v48 = vadd.f32 %v3180_v41, %v3179_v26  ;;  %v6945_v8 = vadd.f32 %v3189_v58, %v3188_v55  ;;  %v3224_v6 = vunpack.c.h.bf16 %v6935_v50  ;;  %v3225_v49 = vunpack.c.l.bf16 %v6937_v43  ;;  %v3214_v26 = vld [vmem:[#allocation5 + $0x200] sm:$0xff]  ;;  %v8157_v32 = vld [vmem:[#allocation66_spill] sm:$0xff] }
 0x70f   : > { %8156 = vst [vmem:[#allocation38_spill] sm:$0xff] %v6932_v11  ;;  %v3194_v38 = vadd.f32 %v3193_v27, %v3111_v62  ;;  %v3226_v56 = vunpack.c.h.bf16 %v6937_v43  ;;  %v3227_v20 = vunpack.c.l.bf16 %v3205_v15  ;;  %v3228_v45 = vunpack.c.h.bf16 %v3205_v15  ;;  %v3220_v62 = vld [vmem:[#allocation5 + $0x22c] sm:$0xff]  ;;  %v8158_v18 = vld [vmem:[#allocation68_spill] sm:$0xff]  ;;  %v8160_v5 = vld [vmem:[#allocation79_spill] sm:$0xff] }
 0x710   : > { %v3229_v55 = vunpack.c.l.bf16 %v3206_v34  ;;  %v3230_v0 = vunpack.c.h.bf16 %v3206_v34  ;;  %v3232_v60 = vunpack.c.l.bf16 %v3208_v21  ;;  %v3233_v3 = vunpack.c.h.bf16 %v3208_v21  ;;  %v8159_v31 = vld [vmem:[#allocation78_spill] sm:$0xff]  ;;  %v8163_v30 = vld [vmem:[#allocation51_spill] sm:$0xff] }
 0x711   : > { %v3195_v7 = vadd.f32 %v3194_v38, %v3120_v10  ;;  %v3234_v28 = vunpack.c.l.bf16 %v3209_v54  ;;  %v3235_v24 = vunpack.c.h.bf16 %v3209_v54  ;;  %v3236_v37 = vunpack.c.l.bf16 %v3210_v2  ;;  %v3221_v10 = vld [vmem:[#allocation5 + $0x234] sm:$0xff] }
 0x712   : > { %v3237_v9 = vunpack.c.h.bf16 %v3210_v2  ;;  %v3238_v25 = vunpack.c.l.bf16 %v3211_v63  ;;  %v3239_v14 = vunpack.c.h.bf16 %v3211_v63  ;;  %v3241_v41 = vunpack.c.l.bf16 %v3213_v22  ;;  %v8165_v59 = vld [vmem:[#allocation67_spill] sm:$0xff] }
 0x713   : > { %v3196_v57 = vrot.slane %v3195_v7, 4  ;;  %v3242_v27 = vunpack.c.h.bf16 %v3213_v22  ;;  %v3243_v50 = vunpack.c.l.bf16 %v3214_v26  ;;  %v3244_v43 = vunpack.c.h.bf16 %v3214_v26 }
 0x714   : > { %v3245_v15 = vunpack.c.l.bf16 %v3215_v61  ;;  %v3246_v38 = vunpack.c.h.bf16 %v3215_v61  ;;  %v3247_v34 = vunpack.c.l.bf16 %v3216_v23  ;;  %v3248_v21 = vunpack.c.h.bf16 %v3216_v23 }
 0x715   : > { %v6955_v58 = vadd.f32 %v3196_v57, %v3195_v7  ;;  %v3250_v19 = vunpack.c.l.bf16 %v3218_v42  ;;  %v3251_v54 = vunpack.c.h.bf16 %v3218_v42  ;;  %v3252_v17 = vunpack.c.l.bf16 %v3219_v12 }
 0x716   : > { %v3253_v16 = vunpack.c.h.bf16 %v3219_v12  ;;  %v3254_v40 = vunpack.c.l.bf16 %v3220_v62  ;;  %v3255_v2 = vunpack.c.h.bf16 %v3220_v62  ;;  %v3256_v11 = vunpack.c.l.bf16 %v3221_v10 }
 0x717   : > { %v3257_v63 = vunpack.c.h.bf16 %v3221_v10  ;;  %v3259_v57 = vmul.f32 %v3223_v53, %v8099_v46  ;;  %v3260_v22 = vmul.f32 %v3224_v6, %v8102_v47  ;;  %v3261_v26 = vmul.f32 %v3225_v49, %v8157_v32  ;;  %v8166_v46 = vld [vmem:[#allocation70_spill] sm:$0xff]  ;;  %v8167_v47 = vld [vmem:[#allocation80_spill] sm:$0xff]  ;;  %v8168_v32 = vld [vmem:[#allocation81_spill] sm:$0xff] }
 0x718   : > { %v3262_v61 = vmul.f32 %v3226_v56, %v8158_v18  ;;  %v3263_v23 = vmul.f32 %v3227_v20, %v8159_v31  ;;  %v3264_v42 = vmul.f32 %v3228_v45, %v8160_v5  ;;  %v3265_v12 = vmul.f32 %v3229_v55, %v8161_v36  ;;  %v8169_v18 = vld [vmem:[#allocation83_spill] sm:$0xff]  ;;  %v8170_v31 = vld [vmem:[#allocation85_spill] sm:$0xff] }
 0x719   : > { %v3266_v62 = vmul.f32 %v3230_v0, %v8162_v44  ;;  %v3268_v10 = vmul.f32 %v3232_v60, %v8163_v30  ;;  %v3269_v7 = vmul.f32 %v3233_v3, %v8164_v29  ;;  %v3270_v53 = vmul.f32 %v3234_v28, %v8165_v59  ;;  %v8171_v5 = vld [vmem:[#allocation55_spill] sm:$0xff]  ;;  %v8172_v36 = vld [vmem:[#allocation57_spill] sm:$0xff]  ;;  %v8174_v30 = vld [vmem:[#allocation74_spill] sm:$0xff] }
 0x71a   : > { %v3271_v6 = vmul.f32 %v3235_v24, %v8166_v46  ;;  %v3272_v49 = vmul.f32 %v3236_v37, %v8167_v47  ;;  %v3273_v56 = vmul.f32 %v3237_v9, %v8168_v32  ;;  %v3274_v20 = vmul.f32 %v3238_v25, %v8169_v18  ;;  %v8173_v44 = vld [vmem:[#allocation71_spill] sm:$0xff]  ;;  %v8175_v29 = vld [vmem:[#allocation86_spill] sm:$0xff]  ;;  %v8177_v46 = vld [vmem:[#allocation12_spill] sm:$0xff] }
 0x71b   : > { %v3275_v45 = vmul.f32 %v3239_v14, %v8170_v31  ;;  %v3277_v55 = vmul.f32 %v3241_v41, %v8171_v5  ;;  %v3278_v0 = vmul.f32 %v3242_v27, %v8172_v36  ;;  %v3279_v60 = vmul.f32 %v3243_v50, %v8173_v44  ;;  %v8176_v59 = vld [vmem:[#allocation11_spill] sm:$0xff]  ;;  %v8178_v47 = vld [vmem:[#allocation18_spill] sm:$0xff]  ;;  %v8179_v32 = vld [vmem:[#allocation56_spill] sm:$0xff] }
 0x71c   : > { %v3280_v3 = vmul.f32 %v3244_v43, %v8174_v30  ;;  %v3281_v28 = vmul.f32 %v3245_v15, %v8175_v29  ;;  %v3282_v24 = vmul.f32 %v3246_v38, %v8176_v59  ;;  %v3283_v37 = vmul.f32 %v3247_v34, %v8177_v46  ;;  %v8180_v18 = vld [vmem:[#allocation58_spill] sm:$0xff]  ;;  %v8181_v31 = vld [vmem:[#allocation72_spill] sm:$0xff]  ;;  %v8182_v5 = vld [vmem:[#allocation75_spill] sm:$0xff] }
 0x71d   : > { %v3284_v9 = vmul.f32 %v3248_v21, %v8178_v47  ;;  %v3286_v25 = vmul.f32 %v3250_v19, %v8179_v32  ;;  %v3287_v14 = vmul.f32 %v3251_v54, %v8180_v18  ;;  %v3288_v41 = vmul.f32 %v3252_v17, %v8181_v31  ;;  %v8183_v36 = vld [vmem:[#allocation87_spill] sm:$0xff]  ;;  %v8184_v44 = vld [vmem:[#allocation88_spill] sm:$0xff]  ;;  %v8185_v30 = vld [vmem:[#allocation13_spill] sm:$0xff] }
 0x71e   : > { %v3289_v27 = vmul.f32 %v3253_v16, %v8182_v5  ;;  %v3290_v50 = vmul.f32 %v3254_v40, %v8183_v36  ;;  %v3291_v43 = vmul.f32 %v3255_v2, %v8184_v44  ;;  %v3292_v15 = vmul.f32 %v3256_v11, %v8185_v30 }
 0x71f   : > { %v3293_v38 = vmul.f32 %v3257_v63, %v8140_v52  ;;  %v3295_v59 = vadd.f32 %v3268_v10, %v3259_v57  ;;  %v3304_v34 = vadd.f32 %v3269_v7, %v3260_v22  ;;  %v3313_v46 = vadd.f32 %v3270_v53, %v3261_v26 }
 0x720   : > { %v3322_v21 = vadd.f32 %v3271_v6, %v3262_v61  ;;  %v3331_v47 = vadd.f32 %v3272_v49, %v3263_v23  ;;  %v3340_v19 = vadd.f32 %v3273_v56, %v3264_v42  ;;  %v3349_v32 = vadd.f32 %v3274_v20, %v3265_v12  ;;  %v3217_v6 = vld [vmem:[#allocation5 + $0x218] ss:$36 sps:$4 sm:$0xff]  }
 0x721   : > { %v3296_v54 = vadd.f32 %v3295_v59, %v3277_v55  ;;  %v3305_v18 = vadd.f32 %v3304_v34, %v3278_v0  ;;  %v3314_v17 = vadd.f32 %v3313_v46, %v3279_v60  ;;  %v3358_v31 = vadd.f32 %v3275_v45, %v3266_v62  ;;  %v3207_v59 = vld [vmem:[#allocation5 + $0x1d0] ss:$36 sps:$4 sm:$0xff]  }
 0x722   : > { %v3323_v16 = vadd.f32 %v3322_v21, %v3280_v3  ;;  %v3332_v5 = vadd.f32 %v3331_v47, %v3281_v28  ;;  %v3341_v40 = vadd.f32 %v3340_v19, %v3282_v24  ;;  %v3350_v36 = vadd.f32 %v3349_v32, %v3283_v37  ;;  %v8195_v21 = vld [vmem:[#allocation9_spill] sm:$0xff] }
 0x723   : > { %v3297_v2 = vadd.f32 %v3296_v54, %v3286_v25  ;;  %v3306_v44 = vadd.f32 %v3305_v18, %v3287_v14  ;;  %v3315_v11 = vadd.f32 %v3314_v17, %v3288_v41  ;;  %v3359_v30 = vadd.f32 %v3358_v31, %v3284_v9 }
 0x724   : > { %v3324_v63 = vadd.f32 %v3323_v16, %v3289_v27  ;;  %v3333_v57 = vadd.f32 %v3332_v5, %v3290_v50  ;;  %v3342_v7 = vadd.f32 %v3341_v40, %v3291_v43  ;;  %v3351_v22 = vadd.f32 %v3350_v36, %v3292_v15 }
 0x725   : > { %v3298_v26 = vrot.slane %v3297_v2, 4  ;;  %v3307_v61 = vrot.slane %v3306_v44, 4  ;;  %v3316_v23 = vrot.slane %v3315_v11, 4  ;;  %v3360_v42 = vadd.f32 %v3359_v30, %v3293_v38 }
 0x726   : > { %v3325_v12 = vrot.slane %v3324_v63, 4  ;;  %v3334_v46 = vrot.slane %v3333_v57, 4  ;;  %v3343_v62 = vrot.slane %v3342_v7, 4  ;;  %v3352_v10 = vrot.slane %v3351_v22, 4 }
 0x727   : > { %v3164_v47 = vrot.slane %v6939_v51, 1  ;;  %v3299_v32 = vadd.f32 %v3298_v26, %v3297_v2  ;;  %v3308_v53 = vadd.f32 %v3307_v61, %v3306_v44  ;;  %v3317_v18 = vadd.f32 %v3316_v23, %v3315_v11 }
 0x728   : > { %v3173_v31 = vrot.slane %v6941_v1, 1  ;;  %v3182_v5 = vrot.slane %v6943_v48, 1  ;;  %v3326_v36 = vadd.f32 %v3325_v12, %v3324_v63  ;;  %v3361_v49 = vrot.slane %v3360_v42, 4 }
 0x729   : > { %v8186_v30 = vrot.slane %v6912_v39, 1  ;;  %v3191_v20 = vrot.slane %v6945_v8, 1  ;;  %v3231_v45 = vunpack.c.l.bf16 %v3207_v59  ;;  %v3240_v55 = vunpack.c.h.bf16 %v3207_v59 }
 0x72a   : > { %v8188_v44 = vrot.slane %v6955_v58, 2  ;;  %v3335_v60 = vadd.f32 %v3334_v46, %v3333_v57  ;;  %v3344_v3 = vadd.f32 %v3343_v62, %v3342_v7  ;;  %v3353_v28 = vadd.f32 %v3352_v10, %v3351_v22  ;;  %v3378_v46 = vld [vmem:[#allocation5 + $0x248] sm:$0xff]  ;;  %v3379_v62 = vld [vmem:[#allocation5 + $0x250] sm:$0xff] }
 0x72b   : > { %v6996_v56 = vadd.f32 %v8186_v30, %v6912_v39  ;;  %v3249_v24 = vunpack.c.l.bf16 %v3217_v6  ;;  %v3300_v37 = vrot.slane %v3299_v32, 2  ;;  %v3309_v9 = vrot.slane %v3308_v53, 2  ;;  %v3384_v30 = vld [vmem:[#allocation5 + $0x274] sm:$0xff] }
 0x72c   : > { %v3199_v0 = vadd.f32 %v8188_v44, %v6955_v58  ;;  %v3318_v25 = vrot.slane %v3317_v18, 2  ;;  %v8189_v14 = vrot.slane %v6914_v35, 1  ;;  %v8191_v41 = vrot.slane %v6916_v33, 1 }
 0x72d   : > { %8187 = vst [vmem:[#allocation37_spill] sm:$0xff] %v6996_v56  ;;  %v3327_v50 = vrot.slane %v3326_v36, 2  ;;  %v3362_v43 = vadd.f32 %v3361_v49, %v3360_v42  ;;  %v8193_v58 = vrot.slane %v6927_v4, 1  ;;  %v3258_v38 = vunpack.c.h.bf16 %v3217_v6  ;;  %v7041_v42 = vld [vmem:[#allocation5 + $0x240] sm:$0xff]  ;;  %v8210_v56 = vld [vmem:[#allocation51_spill] sm:$0xff] }
 0x72e   : > { %v7005_v39 = vadd.f32 %v8189_v14, %v6914_v35  ;;  %v7010_v27 = vadd.f32 %v8191_v41, %v6916_v33  ;;  %v3267_v34 = vmul.f32 %v3231_v45, %v8150_v13  ;;  %v3276_v19 = vmul.f32 %v3240_v55, %v8195_v21  ;;  %v3390_v14 = vld [vmem:[#allocation5 + $0x2a0] sm:$0xff] }
 0x72f   : > { %v7015_v15 = vadd.f32 %v8193_v58, %v6927_v4  ;;  %v3200_v54 = vrot.slane %v3199_v0, 1  ;;  %v3336_v35 = vrot.slane %v3335_v60, 2  ;;  %v3345_v17 = vrot.slane %v3344_v3, 2  ;;  %v3392_v58 = vld [vmem:[#allocation5 + $0x2ac] sm:$0xff] }
 0x730   : > { %8190 = vst [vmem:[#allocation39_spill] sm:$0xff] %v7005_v39  ;;  %8192 = vst [vmem:[#allocation77_spill] sm:$0xff] %v7010_v27  ;;  %v3354_v16 = vrot.slane %v3353_v28, 2  ;;  %v3285_v40 = vmul.f32 %v3249_v24, %v8150_v13  ;;  %v7020_v33 = vadd.f32 %v3300_v37, %v3299_v32  ;;  %v7022_v2 = vadd.f32 %v3309_v9, %v3308_v53  ;;  %v3380_v32 = vld [vmem:[#allocation5 + $0x258] sm:$0xff]  ;;  %v3382_v53 = vld [vmem:[#allocation5 + $0x264] sm:$0xff] }
 0x731   : > { %8194 = vst [vmem:[#allocation73_spill] sm:$0xff] %v7015_v15  ;;  %v7024_v11 = vadd.f32 %v3318_v25, %v3317_v18  ;;  %v7027_v4 = vadd.f32 %v3164_v47, %v6939_v51  ;;  %v7030_v63 = vadd.f32 %v3173_v31, %v6941_v1  ;;  %v7032_v57 = vadd.f32 %v3327_v50, %v3326_v36  ;;  %v3389_v25 = vld [vmem:[#allocation5 + $0x298] sm:$0xff]  ;;  %v8208_v27 = vld [vmem:[#allocation82_spill] sm:$0xff]  ;;  %v8209_v39 = vld [vmem:[#allocation84_spill] sm:$0xff] }
 0x732   : > { %v3363_v7 = vrot.slane %v3362_v43, 2  ;;  %v7035_v22 = vadd.f32 %v3182_v5, %v6943_v48  ;;  %v7038_v26 = vadd.f32 %v3191_v20, %v6945_v8  ;;  %v3294_v61 = vmul.f32 %v3258_v38, %v8195_v21  ;;  %v3383_v5 = vld [vmem:[#allocation5 + $0x26c] sm:$0xff]  ;;  %v3385_v20 = vld [vmem:[#allocation5 + $0x27c] sm:$0xff]  ;;  %v3393_v38 = vld [vmem:[#allocation5 + $0x2b4] sm:$0xff] }
 0x733   : > { %8196 = vst [vmem:[#allocation10_spill] sm:$0xff] %v7027_v4  ;;  %8197 = vst [vmem:[#allocation14_spill] sm:$0xff] %v7030_v63  ;;  %v3367_v23 = vadd.f32 %v3276_v19, %v3267_v34  ;;  %v7043_v59 = vadd.f32 %v3200_v54, %v3199_v0  ;;  %v7045_v51 = vadd.f32 %v3336_v35, %v3335_v60  ;;  %v3397_v6 = vunpack.c.l.bf16 %v7041_v42  ;;  %v3387_v0 = vld [vmem:[#allocation5 + $0x288] sm:$0xff]  ;;  %v3388_v60 = vld [vmem:[#allocation5 + $0x290] sm:$0xff] }
 0x734   : > { %8198 = vst [vmem:[#allocation48_spill] sm:$0xff] %v7032_v57  ;;  %8199 = vst [vmem:[#allocation28_spill] sm:$0xff] %v7035_v22  ;;  %v7047_v1 = vadd.f32 %v3345_v17, %v3344_v3  ;;  %v7049_v12 = vadd.f32 %v3354_v16, %v3353_v28  ;;  %v7055_v31 = vadd.f32 %v3363_v7, %v3362_v43  ;;  %v3398_v36 = vunpack.c.h.bf16 %v7041_v42  ;;  %v3394_v16 = vld [vmem:[#allocation5 + $0x2bc] sm:$0xff]  ;;  %v8204_v22 = vld [vmem:[#allocation66_spill] sm:$0xff] }
 0x735   : > { %8200 = vst [vmem:[#allocation30_spill] sm:$0xff] %v7038_v26  ;;  %8201 = vst [vmem:[#allocation40_spill] sm:$0xff] %v7043_v59  ;;  %v3368_v47 = vadd.f32 %v3367_v23, %v3285_v40  ;;  %v3399_v45 = vunpack.c.l.bf16 %v3378_v46  ;;  %v3400_v55 = vunpack.c.h.bf16 %v3378_v46  ;;  %v3401_v44 = vunpack.c.l.bf16 %v3379_v62  ;;  %v3395_v40 = vld [vmem:[#allocation5 + $0x2c4] sm:$0xff]  ;;  %v8206_v4 = vld [vmem:[#allocation78_spill] sm:$0xff] }
 0x736   : > { %v3402_v3 = vunpack.c.h.bf16 %v3379_v62  ;;  %v3403_v28 = vunpack.c.l.bf16 %v3380_v32  ;;  %v3404_v24 = vunpack.c.h.bf16 %v3380_v32  ;;  %v3406_v37 = vunpack.c.l.bf16 %v3382_v53  ;;  %v8203_v26 = vld [vmem:[#allocation52_spill] sm:$0xff]  ;;  %v8207_v15 = vld [vmem:[#allocation79_spill] sm:$0xff] }
 0x737   : > { %v3369_v49 = vadd.f32 %v3368_v47, %v3294_v61  ;;  %v3407_v41 = vunpack.c.h.bf16 %v3382_v53  ;;  %v3408_v50 = vunpack.c.l.bf16 %v3383_v5  ;;  %v3409_v43 = vunpack.c.h.bf16 %v3383_v5  ;;  %v8205_v63 = vld [vmem:[#allocation68_spill] sm:$0xff]  ;;  %v8212_v21 = vld [vmem:[#allocation67_spill] sm:$0xff] }
 0x738   : > { %v3410_v34 = vunpack.c.l.bf16 %v3384_v30  ;;  %v3411_v19 = vunpack.c.h.bf16 %v3384_v30  ;;  %v3412_v54 = vunpack.c.l.bf16 %v3385_v20  ;;  %v3413_v35 = vunpack.c.h.bf16 %v3385_v20 }
 0x739   : > { %v3370_v9 = vrot.slane %v3369_v49, 4  ;;  %v3415_v7 = vunpack.c.l.bf16 %v3387_v0  ;;  %v3416_v61 = vunpack.c.h.bf16 %v3387_v0  ;;  %v3417_v23 = vunpack.c.l.bf16 %v3388_v60 }
 0x73a   : > { %v3418_v42 = vunpack.c.h.bf16 %v3388_v60  ;;  %v3419_v46 = vunpack.c.l.bf16 %v3389_v25  ;;  %v3420_v62 = vunpack.c.h.bf16 %v3389_v25  ;;  %v3421_v47 = vunpack.c.l.bf16 %v3390_v14 }
 0x73b   : > { %v7059_v17 = vadd.f32 %v3370_v9, %v3369_v49  ;;  %v3422_v32 = vunpack.c.h.bf16 %v3390_v14  ;;  %v3424_v53 = vunpack.c.l.bf16 %v3392_v58  ;;  %v3425_v5 = vunpack.c.h.bf16 %v3392_v58  ;;  %v8202_v9 = vld [vmem:[#allocation50_spill] sm:$0xff]  ;;  %v8211_v49 = vld [vmem:[#allocation53_spill] sm:$0xff] }
 0x73c   : > { %v3426_v18 = vunpack.c.l.bf16 %v3393_v38  ;;  %v3427_v10 = vunpack.c.h.bf16 %v3393_v38  ;;  %v3428_v8 = vunpack.c.l.bf16 %v3394_v16  ;;  %v3429_v30 = vunpack.c.h.bf16 %v3394_v16 }
 0x73d   : > { %v3430_v48 = vunpack.c.l.bf16 %v3395_v40  ;;  %v3431_v20 = vunpack.c.h.bf16 %v3395_v40  ;;  %v3433_v59 = vmul.f32 %v3397_v6, %v8202_v9  ;;  %v3434_v0 = vmul.f32 %v3398_v36, %v8203_v26  ;;  %v8213_v9 = vld [vmem:[#allocation70_spill] sm:$0xff]  ;;  %v8214_v26 = vld [vmem:[#allocation80_spill] sm:$0xff] }
 0x73e   : > { %v3435_v60 = vmul.f32 %v3399_v45, %v8204_v22  ;;  %v3436_v25 = vmul.f32 %v3400_v55, %v8205_v63  ;;  %v3437_v14 = vmul.f32 %v3401_v44, %v8206_v4  ;;  %v3438_v58 = vmul.f32 %v3402_v3, %v8207_v15  ;;  %v8215_v22 = vld [vmem:[#allocation81_spill] sm:$0xff]  ;;  %v8216_v63 = vld [vmem:[#allocation83_spill] sm:$0xff] }
 0x73f   : > { %v3439_v38 = vmul.f32 %v3403_v28, %v8208_v27  ;;  %v3440_v16 = vmul.f32 %v3404_v24, %v8209_v39  ;;  %v3442_v57 = vmul.f32 %v3406_v37, %v8210_v56  ;;  %v3443_v40 = vmul.f32 %v3407_v41, %v8211_v49  ;;  %v8217_v4 = vld [vmem:[#allocation85_spill] sm:$0xff]  ;;  %v8218_v15 = vld [vmem:[#allocation55_spill] sm:$0xff]  ;;  %v8221_v56 = vld [vmem:[#allocation74_spill] sm:$0xff] }
 0x740   : > { %v3444_v6 = vmul.f32 %v3408_v50, %v8212_v21  ;;  %v3445_v36 = vmul.f32 %v3409_v43, %v8213_v9  ;;  %v3446_v45 = vmul.f32 %v3410_v34, %v8214_v26  ;;  %v3447_v55 = vmul.f32 %v3411_v19, %v8215_v22  ;;  %v8219_v27 = vld [vmem:[#allocation57_spill] sm:$0xff]  ;;  %v8220_v39 = vld [vmem:[#allocation71_spill] sm:$0xff]  ;;  %v8223_v9 = vld [vmem:[#allocation12_spill] sm:$0xff] }
 0x741   : > { %v3448_v44 = vmul.f32 %v3412_v54, %v8216_v63  ;;  %v3449_v3 = vmul.f32 %v3413_v35, %v8217_v4  ;;  %v3451_v28 = vmul.f32 %v3415_v7, %v8218_v15  ;;  %v3452_v24 = vmul.f32 %v3416_v61, %v8219_v27  ;;  %v8222_v21 = vld [vmem:[#allocation11_spill] sm:$0xff]  ;;  %v8224_v26 = vld [vmem:[#allocation18_spill] sm:$0xff]  ;;  %v8225_v22 = vld [vmem:[#allocation56_spill] sm:$0xff] }
 0x742   : > { %v3453_v37 = vmul.f32 %v3417_v23, %v8220_v39  ;;  %v3454_v41 = vmul.f32 %v3418_v42, %v8221_v56  ;;  %v3455_v50 = vmul.f32 %v3419_v46, %v8175_v29  ;;  %v3456_v43 = vmul.f32 %v3420_v62, %v8222_v21  ;;  %v8226_v63 = vld [vmem:[#allocation58_spill] sm:$0xff]  ;;  %v8227_v4 = vld [vmem:[#allocation72_spill] sm:$0xff]  ;;  %v8228_v15 = vld [vmem:[#allocation75_spill] sm:$0xff] }
 0x743   : > { %v3457_v34 = vmul.f32 %v3421_v47, %v8223_v9  ;;  %v3458_v19 = vmul.f32 %v3422_v32, %v8224_v26  ;;  %v3460_v54 = vmul.f32 %v3424_v53, %v8225_v22  ;;  %v3461_v35 = vmul.f32 %v3425_v5, %v8226_v63  ;;  %v8229_v27 = vld [vmem:[#allocation87_spill] sm:$0xff]  ;;  %v8230_v39 = vld [vmem:[#allocation88_spill] sm:$0xff]  ;;  %v8231_v56 = vld [vmem:[#allocation13_spill] sm:$0xff] }
 0x744   : > { %v3462_v7 = vmul.f32 %v3426_v18, %v8227_v4  ;;  %v3463_v61 = vmul.f32 %v3427_v10, %v8228_v15  ;;  %v3464_v23 = vmul.f32 %v3428_v8, %v8229_v27  ;;  %v3465_v42 = vmul.f32 %v3429_v30, %v8230_v39 }
 0x745   : > { %v3466_v46 = vmul.f32 %v3430_v48, %v8231_v56  ;;  %v3467_v62 = vmul.f32 %v3431_v20, %v8140_v52  ;;  %v3469_v21 = vadd.f32 %v3442_v57, %v3433_v59  ;;  %v3478_v47 = vadd.f32 %v3443_v40, %v3434_v0 }
 0x746   : > { %v3487_v9 = vadd.f32 %v3444_v6, %v3435_v60  ;;  %v3496_v32 = vadd.f32 %v3445_v36, %v3436_v25  ;;  %v3505_v26 = vadd.f32 %v3446_v45, %v3437_v14  ;;  %v3514_v53 = vadd.f32 %v3447_v55, %v3438_v58 }
 0x747   : > { %v3470_v22 = vadd.f32 %v3469_v21, %v3451_v28  ;;  %v3479_v5 = vadd.f32 %v3478_v47, %v3452_v24  ;;  %v3523_v63 = vadd.f32 %v3448_v44, %v3439_v38  ;;  %v3532_v18 = vadd.f32 %v3449_v3, %v3440_v16  ;;  %v3381_v21 = vld [vmem:[#allocation5 + $0x260] ss:$36 sps:$4 sm:$0xff]  }
 0x748   : > { %v3488_v4 = vadd.f32 %v3487_v9, %v3453_v37  ;;  %v3497_v10 = vadd.f32 %v3496_v32, %v3454_v41  ;;  %v3506_v15 = vadd.f32 %v3505_v26, %v3455_v50  ;;  %v3515_v8 = vadd.f32 %v3514_v53, %v3456_v43  ;;  %v8240_v47 = vld [vmem:[#allocation48_spill] sm:$0xff] }
 0x749   : > { %v3471_v27 = vadd.f32 %v3470_v22, %v3460_v54  ;;  %v3480_v30 = vadd.f32 %v3479_v5, %v3461_v35  ;;  %v3524_v39 = vadd.f32 %v3523_v63, %v3457_v34  ;;  %v3533_v48 = vadd.f32 %v3532_v18, %v3458_v19 }
 0x74a   : > { %v3489_v56 = vadd.f32 %v3488_v4, %v3462_v7  ;;  %v3498_v20 = vadd.f32 %v3497_v10, %v3463_v61  ;;  %v3507_v57 = vadd.f32 %v3506_v15, %v3464_v23  ;;  %v3516_v59 = vadd.f32 %v3515_v8, %v3465_v42  ;;  %v3391_v4 = vld [vmem:[#allocation5 + $0x2a8] ss:$36 sps:$4 sm:$0xff]  }
 0x74b   : > { %v3472_v0 = vrot.slane %v3471_v27, 4  ;;  %v3481_v60 = vrot.slane %v3480_v30, 4  ;;  %v3525_v25 = vadd.f32 %v3524_v39, %v3466_v46  ;;  %v3534_v14 = vadd.f32 %v3533_v48, %v3467_v62 }
 0x74c   : > { %v3490_v58 = vrot.slane %v3489_v56, 4  ;;  %v3499_v38 = vrot.slane %v3498_v20, 4  ;;  %v3508_v16 = vrot.slane %v3507_v57, 4  ;;  %v3517_v9 = vrot.slane %v3516_v59, 4 }
 0x74d   : > { %v3338_v26 = vrot.slane %v7045_v51, 1  ;;  %v3473_v40 = vadd.f32 %v3472_v0, %v3471_v27  ;;  %v3482_v22 = vadd.f32 %v3481_v60, %v3480_v30  ;;  %v3526_v6 = vrot.slane %v3525_v25, 4 }
 0x74e   : > { %v3347_v63 = vrot.slane %v7047_v1, 1  ;;  %v3491_v36 = vadd.f32 %v3490_v58, %v3489_v56  ;;  %v3500_v15 = vadd.f32 %v3499_v38, %v3498_v20  ;;  %v3535_v45 = vrot.slane %v3534_v14, 4  ;;  %v7142_v58 = vld [vmem:[#allocation5 + $0x2d0] sm:$0xff] }
 0x74f   : > { %v8232_v39 = vrot.slane %v7020_v33, 1  ;;  %v3356_v44 = vrot.slane %v7049_v12, 1  ;;  %v3405_v3 = vunpack.c.l.bf16 %v3381_v21  ;;  %v3414_v28 = vunpack.c.h.bf16 %v3381_v21 }
 0x750   : > { %v8234_v27 = vrot.slane %v7022_v2, 1  ;;  %v8236_v37 = vrot.slane %v7059_v17, 2  ;;  %v3509_v41 = vadd.f32 %v3508_v16, %v3507_v57  ;;  %v3518_v50 = vadd.f32 %v3517_v9, %v3516_v59 }
 0x751   : > { %v7099_v55 = vadd.f32 %v8232_v39, %v7020_v33  ;;  %v3423_v43 = vunpack.c.l.bf16 %v3391_v4  ;;  %v3474_v34 = vrot.slane %v3473_v40, 2  ;;  %v3483_v19 = vrot.slane %v3482_v22, 2 }
 0x752   : > { %v7105_v24 = vadd.f32 %v8234_v27, %v7022_v2  ;;  %v3373_v56 = vadd.f32 %v8236_v37, %v7059_v17  ;;  %v3527_v33 = vadd.f32 %v3526_v6, %v3525_v25  ;;  %v8237_v54 = vrot.slane %v7024_v11, 1  ;;  %v8239_v17 = vld [vmem:[#allocation9_spill] sm:$0xff]  ;;  %v3553_v6 = vld [vmem:[#allocation5 + $0x2e0] sm:$0xff] }
 0x753   : > { %8233 = vst [vmem:[#allocation42_spill] sm:$0xff] %v7099_v55  ;;  %v3492_v7 = vrot.slane %v3491_v36, 2  ;;  %v3501_v61 = vrot.slane %v3500_v15, 2  ;;  %v3536_v23 = vadd.f32 %v3535_v45, %v3534_v14  ;;  %v3365_v2 = vrot.slane %v7055_v31, 1  ;;  %v3557_v45 = vld [vmem:[#allocation5 + $0x2fc] sm:$0xff] }
 0x754   : > { %8235 = vst [vmem:[#allocation41_spill] sm:$0xff] %v7105_v24  ;;  %v7113_v35 = vadd.f32 %v8237_v54, %v7024_v11  ;;  %v3432_v42 = vunpack.c.h.bf16 %v3391_v4  ;;  %v3441_v46 = vmul.f32 %v3405_v3, %v8150_v13  ;;  %v3450_v62 = vmul.f32 %v3414_v28, %v8239_v17  ;;  %v3558_v3 = vld [vmem:[#allocation5 + $0x304] sm:$0xff]  ;;  %v3559_v28 = vld [vmem:[#allocation5 + $0x30c] sm:$0xff] }
 0x755   : > { %v8241_v32 = vrot.slane %v8240_v47, 1  ;;  %v3374_v5 = vrot.slane %v3373_v56, 1  ;;  %v3510_v18 = vrot.slane %v3509_v41, 2  ;;  %v3519_v10 = vrot.slane %v3518_v50, 2  ;;  %v3562_v54 = vld [vmem:[#allocation5 + $0x320] sm:$0xff]  ;;  %v8256_v24 = vld [vmem:[#allocation82_spill] sm:$0xff] }
 0x756   : > { %8238 = vst [vmem:[#allocation43_spill] sm:$0xff] %v7113_v35  ;;  %v3459_v11 = vmul.f32 %v3423_v43, %v8150_v13  ;;  %v7124_v8 = vadd.f32 %v3474_v34, %v3473_v40  ;;  %v7126_v30 = vadd.f32 %v3483_v19, %v3482_v22  ;;  %v3528_v48 = vrot.slane %v3527_v33, 2  ;;  %v8255_v35 = vld [vmem:[#allocation79_spill] sm:$0xff]  ;;  %v8257_v55 = vld [vmem:[#allocation84_spill] sm:$0xff] }
 0x757   : > { %v7121_v53 = vadd.f32 %v8241_v32, %v8240_v47  ;;  %v7129_v20 = vadd.f32 %v3338_v26, %v7045_v51  ;;  %v7131_v57 = vadd.f32 %v3492_v7, %v3491_v36  ;;  %v7133_v59 = vadd.f32 %v3501_v61, %v3500_v15  ;;  %v3552_v26 = vld [vmem:[#allocation5 + $0x2d8] sm:$0xff]  ;;  %v3563_v7 = vld [vmem:[#allocation5 + $0x328] sm:$0xff] }
 0x758   : > { %v3537_v0 = vrot.slane %v3536_v23, 2  ;;  %v7136_v60 = vadd.f32 %v3347_v63, %v7047_v1  ;;  %v7139_v25 = vadd.f32 %v3356_v44, %v7049_v12  ;;  %v3468_v14 = vmul.f32 %v3432_v42, %v8239_v17  ;;  %v3554_v63 = vld [vmem:[#allocation5 + $0x2e8] sm:$0xff]  ;;  %v3556_v15 = vld [vmem:[#allocation5 + $0x2f4] sm:$0xff] }
 0x759   : > { %8242 = vst [vmem:[#allocation32_spill] sm:$0xff] %v7121_v53  ;;  %8243 = vst [vmem:[#allocation46_spill] sm:$0xff] %v7129_v20  ;;  %v3541_v21 = vadd.f32 %v3450_v62, %v3441_v46  ;;  %v7145_v38 = vadd.f32 %v3365_v2, %v7055_v31  ;;  %v7147_v51 = vadd.f32 %v3374_v5, %v3373_v56  ;;  %v3571_v39 = vunpack.c.l.bf16 %v7142_v58  ;;  %v3564_v42 = vld [vmem:[#allocation5 + $0x330] sm:$0xff]  ;;  %v3566_v46 = vld [vmem:[#allocation5 + $0x33c] sm:$0xff] }
 0x75a   : > { %8244 = vst [vmem:[#allocation49_spill] sm:$0xff] %v7131_v57  ;;  %8245 = vst [vmem:[#allocation15_spill] sm:$0xff] %v7133_v59  ;;  %v7149_v16 = vadd.f32 %v3510_v18, %v3509_v41  ;;  %v7151_v9 = vadd.f32 %v3519_v10, %v3518_v50  ;;  %v7155_v40 = vadd.f32 %v3528_v48, %v3527_v33  ;;  %v3572_v27 = vunpack.c.h.bf16 %v7142_v58  ;;  %v3561_v41 = vld [vmem:[#allocation5 + $0x318] sm:$0xff]  ;;  %v3567_v10 = vld [vmem:[#allocation5 + $0x344] sm:$0xff] }
 0x75b   : > { %8246 = vst [vmem:[#allocation35_spill] sm:$0xff] %v7136_v60  ;;  %8247 = vst [vmem:[#allocation47_spill] sm:$0xff] %v7139_v25  ;;  %v3542_v22 = vadd.f32 %v3541_v21, %v3459_v11  ;;  %v7159_v36 = vadd.f32 %v3537_v0, %v3536_v23  ;;  %v3573_v37 = vunpack.c.l.bf16 %v3552_v26  ;;  %v3574_v56 = vunpack.c.h.bf16 %v3552_v26  ;;  %v3568_v11 = vld [vmem:[#allocation5 + $0x34c] sm:$0xff]  ;;  %v3569_v21 = vld [vmem:[#allocation5 + $0x354] sm:$0xff] }
 0x75c   : > { %8248 = vst [vmem:[#allocation54_spill] sm:$0xff] %v7145_v38  ;;  %8249 = vst [vmem:[#allocation65_spill] sm:$0xff] %v7147_v51  ;;  %v3575_v50 = vunpack.c.l.bf16 %v3553_v6  ;;  %v3576_v43 = vunpack.c.h.bf16 %v3553_v6  ;;  %v3577_v34 = vunpack.c.l.bf16 %v3554_v63  ;;  %v3578_v19 = vunpack.c.h.bf16 %v3554_v63  ;;  %v8252_v60 = vld [vmem:[#allocation66_spill] sm:$0xff]  ;;  %v8253_v20 = vld [vmem:[#allocation68_spill] sm:$0xff] }
 0x75d   : > { %v3543_v44 = vadd.f32 %v3542_v22, %v3468_v14  ;;  %v3580_v61 = vunpack.c.l.bf16 %v3556_v15  ;;  %v3581_v23 = vunpack.c.h.bf16 %v3556_v15  ;;  %v3582_v2 = vunpack.c.l.bf16 %v3557_v45  ;;  %v8254_v53 = vld [vmem:[#allocation78_spill] sm:$0xff]  ;;  %v8258_v59 = vld [vmem:[#allocation51_spill] sm:$0xff] }
 0x75e   : > { %v3583_v62 = vunpack.c.h.bf16 %v3557_v45  ;;  %v3584_v47 = vunpack.c.l.bf16 %v3558_v3  ;;  %v3585_v32 = vunpack.c.h.bf16 %v3558_v3  ;;  %v3586_v5 = vunpack.c.l.bf16 %v3559_v28  ;;  %v8259_v57 = vld [vmem:[#allocation67_spill] sm:$0xff] }
 0x75f   : > { %v3544_v33 = vrot.slane %v3543_v44, 4  ;;  %v3587_v48 = vunpack.c.h.bf16 %v3559_v28  ;;  %v3589_v0 = vunpack.c.l.bf16 %v3561_v41  ;;  %v3590_v14 = vunpack.c.h.bf16 %v3561_v41  ;;  %v8250_v28 = vld [vmem:[#allocation50_spill] sm:$0xff]  ;;  %v8251_v41 = vld [vmem:[#allocation52_spill] sm:$0xff] }
 0x760   : > { %v3591_v58 = vunpack.c.l.bf16 %v3562_v54  ;;  %v3592_v26 = vunpack.c.h.bf16 %v3562_v54  ;;  %v3593_v22 = vunpack.c.l.bf16 %v3563_v7  ;;  %v3594_v6 = vunpack.c.h.bf16 %v3563_v7 }
 0x761   : > { %v7163_v18 = vadd.f32 %v3544_v33, %v3543_v44  ;;  %v3595_v63 = vunpack.c.l.bf16 %v3564_v42  ;;  %v3596_v15 = vunpack.c.h.bf16 %v3564_v42  ;;  %v3598_v31 = vunpack.c.l.bf16 %v3566_v46 }
 0x762   : > { %v3599_v4 = vunpack.c.h.bf16 %v3566_v46  ;;  %v3600_v45 = vunpack.c.l.bf16 %v3567_v10  ;;  %v3601_v12 = vunpack.c.h.bf16 %v3567_v10  ;;  %v3602_v3 = vunpack.c.l.bf16 %v3568_v11 }
 0x763   : > { %v3603_v1 = vunpack.c.h.bf16 %v3568_v11  ;;  %v3604_v33 = vunpack.c.l.bf16 %v3569_v21  ;;  %v3605_v51 = vunpack.c.h.bf16 %v3569_v21  ;;  %v3607_v38 = vmul.f32 %v3571_v39, %v8250_v28  ;;  %v8260_v28 = vld [vmem:[#allocation70_spill] sm:$0xff] }
 0x764   : > { %v3608_v25 = vmul.f32 %v3572_v27, %v8251_v41  ;;  %v3609_v54 = vmul.f32 %v3573_v37, %v8252_v60  ;;  %v3610_v7 = vmul.f32 %v3574_v56, %v8253_v20  ;;  %v3611_v42 = vmul.f32 %v3575_v50, %v8254_v53  ;;  %v8261_v41 = vld [vmem:[#allocation80_spill] sm:$0xff]  ;;  %v8262_v60 = vld [vmem:[#allocation81_spill] sm:$0xff]  ;;  %v8263_v20 = vld [vmem:[#allocation83_spill] sm:$0xff] }
 0x765   : > { %v3612_v46 = vmul.f32 %v3576_v43, %v8255_v35  ;;  %v3613_v10 = vmul.f32 %v3577_v34, %v8256_v24  ;;  %v3614_v11 = vmul.f32 %v3578_v19, %v8257_v55  ;;  %v3616_v44 = vmul.f32 %v3580_v61, %v8258_v59  ;;  %v8264_v53 = vld [vmem:[#allocation85_spill] sm:$0xff]  ;;  %v8265_v35 = vld [vmem:[#allocation55_spill] sm:$0xff]  ;;  %v8268_v59 = vld [vmem:[#allocation74_spill] sm:$0xff] }
 0x766   : > { %v3617_v21 = vmul.f32 %v3581_v23, %v8211_v49  ;;  %v3618_v39 = vmul.f32 %v3582_v2, %v8259_v57  ;;  %v3619_v27 = vmul.f32 %v3583_v62, %v8260_v28  ;;  %v3620_v37 = vmul.f32 %v3584_v47, %v8261_v41  ;;  %v8266_v24 = vld [vmem:[#allocation57_spill] sm:$0xff]  ;;  %v8267_v55 = vld [vmem:[#allocation71_spill] sm:$0xff]  ;;  %v8270_v28 = vld [vmem:[#allocation12_spill] sm:$0xff] }
 0x767   : > { %v3621_v56 = vmul.f32 %v3585_v32, %v8262_v60  ;;  %v3622_v50 = vmul.f32 %v3586_v5, %v8263_v20  ;;  %v3623_v43 = vmul.f32 %v3587_v48, %v8264_v53  ;;  %v3625_v34 = vmul.f32 %v3589_v0, %v8265_v35  ;;  %v8269_v57 = vld [vmem:[#allocation11_spill] sm:$0xff]  ;;  %v8271_v41 = vld [vmem:[#allocation18_spill] sm:$0xff]  ;;  %v8272_v60 = vld [vmem:[#allocation56_spill] sm:$0xff] }
 0x768   : > { %v3626_v19 = vmul.f32 %v3590_v14, %v8266_v24  ;;  %v3627_v61 = vmul.f32 %v3591_v58, %v8267_v55  ;;  %v3628_v23 = vmul.f32 %v3592_v26, %v8268_v59  ;;  %v3629_v2 = vmul.f32 %v3593_v22, %v8175_v29  ;;  %v8273_v20 = vld [vmem:[#allocation58_spill] sm:$0xff]  ;;  %v8274_v53 = vld [vmem:[#allocation72_spill] sm:$0xff]  ;;  %v8275_v35 = vld [vmem:[#allocation75_spill] sm:$0xff] }
 0x769   : > { %v3630_v62 = vmul.f32 %v3594_v6, %v8269_v57  ;;  %v3631_v47 = vmul.f32 %v3595_v63, %v8270_v28  ;;  %v3632_v32 = vmul.f32 %v3596_v15, %v8271_v41  ;;  %v3634_v5 = vmul.f32 %v3598_v31, %v8272_v60  ;;  %v8276_v24 = vld [vmem:[#allocation87_spill] sm:$0xff]  ;;  %v8277_v55 = vld [vmem:[#allocation88_spill] sm:$0xff]  ;;  %v8278_v59 = vld [vmem:[#allocation13_spill] sm:$0xff] }
 0x76a   : > { %v3635_v48 = vmul.f32 %v3599_v4, %v8273_v20  ;;  %v3636_v0 = vmul.f32 %v3600_v45, %v8274_v53  ;;  %v3637_v14 = vmul.f32 %v3601_v12, %v8275_v35  ;;  %v3638_v58 = vmul.f32 %v3602_v3, %v8276_v24 }
 0x76b   : > { %v3639_v26 = vmul.f32 %v3603_v1, %v8277_v55  ;;  %v3640_v22 = vmul.f32 %v3604_v33, %v8278_v59  ;;  %v3641_v6 = vmul.f32 %v3605_v51, %v8140_v52  ;;  %v3643_v57 = vadd.f32 %v3616_v44, %v3607_v38 }
 0x76c   : > { %v3652_v63 = vadd.f32 %v3617_v21, %v3608_v25  ;;  %v3661_v28 = vadd.f32 %v3618_v39, %v3609_v54  ;;  %v3670_v15 = vadd.f32 %v3619_v27, %v3610_v7  ;;  %v3679_v41 = vadd.f32 %v3620_v37, %v3611_v42  ;;  %v3565_v39 = vld [vmem:[#allocation5 + $0x338] ss:$36 sps:$4 sm:$0xff]  }
 0x76d   : > { %v3644_v31 = vadd.f32 %v3643_v57, %v3625_v34  ;;  %v3688_v60 = vadd.f32 %v3621_v56, %v3612_v46  ;;  %v3697_v4 = vadd.f32 %v3622_v50, %v3613_v10  ;;  %v3706_v20 = vadd.f32 %v3623_v43, %v3614_v11  ;;  %v3555_v57 = vld [vmem:[#allocation5 + $0x2f0] ss:$36 sps:$4 sm:$0xff]  }
 0x76e   : > { %v3653_v45 = vadd.f32 %v3652_v63, %v3626_v19  ;;  %v3662_v53 = vadd.f32 %v3661_v28, %v3627_v61  ;;  %v3671_v12 = vadd.f32 %v3670_v15, %v3628_v23  ;;  %v3680_v35 = vadd.f32 %v3679_v41, %v3629_v2  ;;  %v8287_v63 = vld [vmem:[#allocation15_spill] sm:$0xff] }
 0x76f   : > { %v3645_v3 = vadd.f32 %v3644_v31, %v3634_v5  ;;  %v3689_v24 = vadd.f32 %v3688_v60, %v3630_v62  ;;  %v3698_v1 = vadd.f32 %v3697_v4, %v3631_v47  ;;  %v3707_v55 = vadd.f32 %v3706_v20, %v3632_v32 }
 0x770   : > { %v3654_v33 = vadd.f32 %v3653_v45, %v3635_v48  ;;  %v3663_v59 = vadd.f32 %v3662_v53, %v3636_v0  ;;  %v3672_v51 = vadd.f32 %v3671_v12, %v3637_v14  ;;  %v3681_v38 = vadd.f32 %v3680_v35, %v3638_v58 }
 0x771   : > { %v3646_v25 = vrot.slane %v3645_v3, 4  ;;  %v3690_v44 = vadd.f32 %v3689_v24, %v3639_v26  ;;  %v3699_v54 = vadd.f32 %v3698_v1, %v3640_v22  ;;  %v3708_v7 = vadd.f32 %v3707_v55, %v3641_v6  ;;  %v8284_v22 = vld [vmem:[#allocation49_spill] sm:$0xff] }
 0x772   : > { %v3655_v42 = vrot.slane %v3654_v33, 4  ;;  %v3664_v46 = vrot.slane %v3663_v59, 4  ;;  %v3673_v10 = vrot.slane %v3672_v51, 4  ;;  %v3682_v11 = vrot.slane %v3681_v38, 4 }
 0x773   : > { %v3512_v28 = vrot.slane %v7149_v16, 1  ;;  %v3647_v41 = vadd.f32 %v3646_v25, %v3645_v3  ;;  %v3691_v21 = vrot.slane %v3690_v44, 4  ;;  %v3700_v60 = vrot.slane %v3699_v54, 4 }
 0x774   : > { %v3656_v20 = vadd.f32 %v3655_v42, %v3654_v33  ;;  %v3665_v27 = vadd.f32 %v3664_v46, %v3663_v59  ;;  %v3674_v53 = vadd.f32 %v3673_v10, %v3672_v51  ;;  %v3709_v37 = vrot.slane %v3708_v7, 4 }
 0x775   : > { %v8279_v24 = vrot.slane %v7124_v8, 1  ;;  %v3521_v55 = vrot.slane %v7151_v9, 1  ;;  %v3579_v56 = vunpack.c.l.bf16 %v3555_v57  ;;  %v3588_v50 = vunpack.c.h.bf16 %v3555_v57 }
 0x776   : > { %v8281_v43 = vrot.slane %v7126_v30, 1  ;;  %v3530_v19 = vrot.slane %v7155_v40, 1  ;;  %v8283_v59 = vrot.slane %v7163_v18, 2  ;;  %v3683_v23 = vadd.f32 %v3682_v11, %v3681_v38 }
 0x777   : > { %v7202_v35 = vadd.f32 %v8279_v24, %v7124_v8  ;;  %v3597_v2 = vunpack.c.l.bf16 %v3565_v39  ;;  %v3648_v62 = vrot.slane %v3647_v41, 2  ;;  %v3692_v8 = vadd.f32 %v3691_v21, %v3690_v44  ;;  %v3725_v21 = vld [vmem:[#allocation5 + $0x360] sm:$0xff] }
 0x778   : > { %v7208_v34 = vadd.f32 %v8281_v43, %v7126_v30  ;;  %v3547_v61 = vadd.f32 %v8283_v59, %v7163_v18  ;;  %v3701_v47 = vadd.f32 %v3700_v60, %v3699_v54  ;;  %v3657_v32 = vrot.slane %v3656_v20, 2  ;;  %v7253_v60 = vld [vmem:[#allocation5 + $0x368] sm:$0xff] }
 0x779   : > { %8280 = vst [vmem:[#allocation69_spill] sm:$0xff] %v7202_v35  ;;  %v3666_v5 = vrot.slane %v3665_v27, 2  ;;  %v3675_v48 = vrot.slane %v3674_v53, 2  ;;  %v3710_v0 = vadd.f32 %v3709_v37, %v3708_v7  ;;  %v3539_v14 = vrot.slane %v7159_v36, 1  ;;  %v3730_v24 = vld [vmem:[#allocation5 + $0x384] sm:$0xff] }
 0x77a   : > { %8282 = vst [vmem:[#allocation59_spill] sm:$0xff] %v7208_v34  ;;  %v3606_v58 = vunpack.c.h.bf16 %v3565_v39  ;;  %v3615_v30 = vmul.f32 %v3579_v56, %v8150_v13  ;;  %v3624_v26 = vmul.f32 %v3588_v50, %v8239_v17  ;;  %v8285_v6 = vrot.slane %v8284_v22, 1  ;;  %v3731_v56 = vld [vmem:[#allocation5 + $0x38c] sm:$0xff]  ;;  %v3732_v50 = vld [vmem:[#allocation5 + $0x394] sm:$0xff]  ;;  %v8302_v35 = vld [vmem:[#allocation84_spill] sm:$0xff] }
 0x77b   : > { %v8288_v15 = vrot.slane %v8287_v63, 1  ;;  %v3548_v4 = vrot.slane %v3547_v61, 1  ;;  %v3684_v45 = vrot.slane %v3683_v23, 2  ;;  %v3633_v12 = vmul.f32 %v3597_v2, %v8150_v13  ;;  %v8301_v34 = vld [vmem:[#allocation82_spill] sm:$0xff]  ;;  %v8304_v13 = vld [vmem:[#allocation67_spill] sm:$0xff] }
 0x77c   : > { %v7220_v18 = vadd.f32 %v8285_v6, %v8284_v22  ;;  %v7228_v3 = vadd.f32 %v3648_v62, %v3647_v41  ;;  %v3693_v1 = vrot.slane %v3692_v8, 2  ;;  %v3702_v33 = vrot.slane %v3701_v47, 2 }
 0x77d   : > { %v7225_v31 = vadd.f32 %v8288_v15, %v8287_v63  ;;  %v7230_v51 = vadd.f32 %v3657_v32, %v3656_v20  ;;  %v7232_v38 = vadd.f32 %v3666_v5, %v3665_v27  ;;  %v7234_v25 = vadd.f32 %v3675_v48, %v3674_v53  ;;  %v3727_v20 = vld [vmem:[#allocation5 + $0x370] sm:$0xff]  ;;  %v3737_v48 = vld [vmem:[#allocation5 + $0x3b8] sm:$0xff] }
 0x77e   : > { %8286 = vst [vmem:[#allocation61_spill] sm:$0xff] %v7220_v18  ;;  %v3711_v44 = vrot.slane %v3710_v0, 2  ;;  %v7237_v54 = vadd.f32 %v3512_v28, %v7149_v16  ;;  %v7240_v7 = vadd.f32 %v3521_v55, %v7151_v9  ;;  %v3642_v57 = vmul.f32 %v3606_v58, %v8239_v17  ;;  %v3736_v5 = vld [vmem:[#allocation5 + $0x3b0] sm:$0xff]  ;;  %v8300_v18 = vld [vmem:[#allocation79_spill] sm:$0xff] }
 0x77f   : > { %8289 = vst [vmem:[#allocation62_spill] sm:$0xff] %v7225_v31  ;;  %v3715_v42 = vadd.f32 %v3624_v26, %v3615_v30  ;;  %v7244_v46 = vadd.f32 %v3530_v19, %v7155_v40  ;;  %v7247_v10 = vadd.f32 %v3539_v14, %v7159_v36  ;;  %v7249_v11 = vadd.f32 %v3548_v4, %v3547_v61  ;;  %v3728_v40 = vld [vmem:[#allocation5 + $0x378] sm:$0xff]  ;;  %v3738_v30 = vld [vmem:[#allocation5 + $0x3c0] sm:$0xff]  ;;  %v3740_v26 = vld [vmem:[#allocation5 + $0x3cc] sm:$0xff] }
 0x780   : > { %8290 = vst [vmem:[#allocation63_spill] sm:$0xff] %v7237_v54  ;;  %8291 = vst [vmem:[#allocation44_spill] sm:$0xff] %v7240_v7  ;;  %v7251_v41 = vadd.f32 %v3684_v45, %v3683_v23  ;;  %v7256_v9 = vadd.f32 %v3693_v1, %v3692_v8  ;;  %v7258_v28 = vadd.f32 %v3702_v33, %v3701_v47  ;;  %v3745_v43 = vunpack.c.l.bf16 %v3725_v21  ;;  %v3733_v61 = vld [vmem:[#allocation5 + $0x39c] sm:$0xff]  ;;  %v3735_v23 = vld [vmem:[#allocation5 + $0x3a8] sm:$0xff] }
 0x781   : > { %8292 = vst [vmem:[#allocation45_spill] sm:$0xff] %v7244_v46  ;;  %8293 = vst [vmem:[#allocation60_spill] sm:$0xff] %v7247_v10  ;;  %v3716_v39 = vadd.f32 %v3715_v42, %v3633_v12  ;;  %v7263_v37 = vadd.f32 %v3711_v44, %v3710_v0  ;;  %v3746_v19 = vunpack.c.h.bf16 %v3725_v21  ;;  %v3747_v59 = vunpack.c.l.bf16 %v7253_v60  ;;  %v3741_v45 = vld [vmem:[#allocation5 + $0x3d4] sm:$0xff]  ;;  %v3742_v12 = vld [vmem:[#allocation5 + $0x3dc] sm:$0xff] }
 0x782   : > { %8294 = vst [vmem:[#allocation64_spill] sm:$0xff] %v7249_v11  ;;  %v3748_v2 = vunpack.c.h.bf16 %v7253_v60  ;;  %v3749_v62 = vunpack.c.l.bf16 %v3727_v20  ;;  %v3750_v8 = vunpack.c.h.bf16 %v3727_v20  ;;  %v3751_v47 = vunpack.c.l.bf16 %v3728_v40  ;;  %v8296_v46 = vld [vmem:[#allocation52_spill] sm:$0xff]  ;;  %v8297_v7 = vld [vmem:[#allocation66_spill] sm:$0xff] }
 0x783   : > { %v3717_v55 = vadd.f32 %v3716_v39, %v3642_v57  ;;  %v3752_v0 = vunpack.c.h.bf16 %v3728_v40  ;;  %v3754_v14 = vunpack.c.l.bf16 %v3730_v24  ;;  %v3755_v58 = vunpack.c.h.bf16 %v3730_v24  ;;  %v3743_v57 = vld [vmem:[#allocation5 + $0x3e4] sm:$0xff]  ;;  %v8299_v31 = vld [vmem:[#allocation78_spill] sm:$0xff] }
 0x784   : > { %v3756_v22 = vunpack.c.l.bf16 %v3731_v56  ;;  %v3757_v6 = vunpack.c.h.bf16 %v3731_v56  ;;  %v3758_v63 = vunpack.c.l.bf16 %v3732_v50  ;;  %v3759_v15 = vunpack.c.h.bf16 %v3732_v50  ;;  %v8298_v54 = vld [vmem:[#allocation68_spill] sm:$0xff] }
 0x785   : > { %v3718_v32 = vrot.slane %v3717_v55, 4  ;;  %v3760_v1 = vunpack.c.l.bf16 %v3733_v61  ;;  %v3761_v33 = vunpack.c.h.bf16 %v3733_v61  ;;  %v3763_v44 = vunpack.c.l.bf16 %v3735_v23  ;;  %v8295_v61 = vld [vmem:[#allocation50_spill] sm:$0xff] }
 0x786   : > { %v3764_v42 = vunpack.c.h.bf16 %v3735_v23  ;;  %v3765_v21 = vunpack.c.l.bf16 %v3736_v5  ;;  %v3766_v60 = vunpack.c.h.bf16 %v3736_v5  ;;  %v3767_v39 = vunpack.c.l.bf16 %v3737_v48 }
 0x787   : > { %v7267_v4 = vadd.f32 %v3718_v32, %v3717_v55  ;;  %v3768_v20 = vunpack.c.h.bf16 %v3737_v48  ;;  %v3769_v40 = vunpack.c.l.bf16 %v3738_v30  ;;  %v3770_v24 = vunpack.c.h.bf16 %v3738_v30  ;;  %v8303_v55 = vld [vmem:[#allocation51_spill] sm:$0xff] }
 0x788   : > { %v3772_v53 = vunpack.c.l.bf16 %v3740_v26  ;;  %v3773_v36 = vunpack.c.h.bf16 %v3740_v26  ;;  %v3774_v56 = vunpack.c.l.bf16 %v3741_v45  ;;  %v3775_v27 = vunpack.c.h.bf16 %v3741_v45 }
 0x789   : > { %v3776_v50 = vunpack.c.l.bf16 %v3742_v12  ;;  %v3777_v32 = vunpack.c.h.bf16 %v3742_v12  ;;  %v3778_v16 = vunpack.c.l.bf16 %v3743_v57  ;;  %v3779_v11 = vunpack.c.h.bf16 %v3743_v57 }
 0x78a   : > { %v3781_v10 = vmul.f32 %v3745_v43, %v8295_v61  ;;  %v3782_v23 = vmul.f32 %v3746_v19, %v8296_v46  ;;  %v3783_v5 = vmul.f32 %v3747_v59, %v8297_v7  ;;  %v3784_v48 = vmul.f32 %v3748_v2, %v8298_v54  ;;  %v8305_v61 = vld [vmem:[#allocation70_spill] sm:$0xff]  ;;  %v8306_v46 = vld [vmem:[#allocation80_spill] sm:$0xff]  ;;  %v8307_v7 = vld [vmem:[#allocation81_spill] sm:$0xff] }
 0x78b   : > { %v3785_v30 = vmul.f32 %v3749_v62, %v8299_v31  ;;  %v3786_v26 = vmul.f32 %v3750_v8, %v8300_v18  ;;  %v3787_v45 = vmul.f32 %v3751_v47, %v8301_v34  ;;  %v3788_v17 = vmul.f32 %v3752_v0, %v8302_v35  ;;  %v8308_v54 = vld [vmem:[#allocation83_spill] sm:$0xff]  ;;  %v8309_v31 = vld [vmem:[#allocation85_spill] sm:$0xff] }
 0x78c   : > { %v3790_v12 = vmul.f32 %v3754_v14, %v8303_v55  ;;  %v3791_v57 = vmul.f32 %v3755_v58, %v8211_v49  ;;  %v3792_v43 = vmul.f32 %v3756_v22, %v8304_v13  ;;  %v3793_v19 = vmul.f32 %v3757_v6, %v8305_v61  ;;  %v8310_v18 = vld [vmem:[#allocation55_spill] sm:$0xff]  ;;  %v8311_v34 = vld [vmem:[#allocation57_spill] sm:$0xff]  ;;  %v8313_v55 = vld [vmem:[#allocation74_spill] sm:$0xff] }
 0x78d   : > { %v3794_v59 = vmul.f32 %v3758_v63, %v8306_v46  ;;  %v3795_v2 = vmul.f32 %v3759_v15, %v8307_v7  ;;  %v3796_v62 = vmul.f32 %v3760_v1, %v8308_v54  ;;  %v3797_v8 = vmul.f32 %v3761_v33, %v8309_v31  ;;  %v8312_v35 = vld [vmem:[#allocation71_spill] sm:$0xff]  ;;  %v8315_v61 = vld [vmem:[#allocation12_spill] sm:$0xff]  ;;  %v8316_v46 = vld [vmem:[#allocation18_spill] sm:$0xff] }
 0x78e   : > { %v3799_v47 = vmul.f32 %v3763_v44, %v8310_v18  ;;  %v3800_v0 = vmul.f32 %v3764_v42, %v8311_v34  ;;  %v3801_v14 = vmul.f32 %v3765_v21, %v8312_v35  ;;  %v3802_v58 = vmul.f32 %v3766_v60, %v8313_v55  ;;  %v8314_v13 = vld [vmem:[#allocation11_spill] sm:$0xff]  ;;  %v8317_v7 = vld [vmem:[#allocation56_spill] sm:$0xff]  ;;  %v8318_v54 = vld [vmem:[#allocation58_spill] sm:$0xff] }
 0x78f   : > { %v3803_v22 = vmul.f32 %v3767_v39, %v8175_v29  ;;  %v3804_v6 = vmul.f32 %v3768_v20, %v8314_v13  ;;  %v3805_v63 = vmul.f32 %v3769_v40, %v8315_v61  ;;  %v3806_v15 = vmul.f32 %v3770_v24, %v8316_v46  ;;  %v8319_v31 = vld [vmem:[#allocation72_spill] sm:$0xff]  ;;  %v8320_v18 = vld [vmem:[#allocation75_spill] sm:$0xff]  ;;  %v8323_v55 = vld [vmem:[#allocation13_spill] sm:$0xff] }
 0x790   : > { %v3808_v1 = vmul.f32 %v3772_v53, %v8317_v7  ;;  %v3809_v33 = vmul.f32 %v3773_v36, %v8318_v54  ;;  %v3810_v44 = vmul.f32 %v3774_v56, %v8319_v31  ;;  %v3811_v42 = vmul.f32 %v3775_v27, %v8320_v18  ;;  %v8321_v34 = vld [vmem:[#allocation87_spill] sm:$0xff]  ;;  %v8322_v35 = vld [vmem:[#allocation88_spill] sm:$0xff] }
 0x791   : > { %v3812_v21 = vmul.f32 %v3776_v50, %v8321_v34  ;;  %v3813_v60 = vmul.f32 %v3777_v32, %v8322_v35  ;;  %v3814_v39 = vmul.f32 %v3778_v16, %v8323_v55  ;;  %v3815_v20 = vmul.f32 %v3779_v11, %v8140_v52 }
 0x792   : > { %v3817_v13 = vadd.f32 %v3790_v12, %v3781_v10  ;;  %v3826_v40 = vadd.f32 %v3791_v57, %v3782_v23  ;;  %v3835_v61 = vadd.f32 %v3792_v43, %v3783_v5  ;;  %v3844_v24 = vadd.f32 %v3793_v19, %v3784_v48 }
 0x793   : > { %v3853_v46 = vadd.f32 %v3794_v59, %v3785_v30  ;;  %v3862_v53 = vadd.f32 %v3795_v2, %v3786_v26  ;;  %v3871_v7 = vadd.f32 %v3796_v62, %v3787_v45  ;;  %v3880_v36 = vadd.f32 %v3797_v8, %v3788_v17  ;;  %v3739_v59 = vld [vmem:[#allocation5 + $0x3c8] ss:$36 sps:$4 sm:$0xff]  }
 0x794   : > { %v3818_v54 = vadd.f32 %v3817_v13, %v3799_v47  ;;  %v3827_v56 = vadd.f32 %v3826_v40, %v3800_v0  ;;  %v3836_v31 = vadd.f32 %v3835_v61, %v3801_v14  ;;  %v3845_v27 = vadd.f32 %v3844_v24, %v3802_v58  ;;  %v3729_v13 = vld [vmem:[#allocation5 + $0x380] ss:$36 sps:$4 sm:$0xff]  }
 0x795   : > { %v3854_v18 = vadd.f32 %v3853_v46, %v3803_v22  ;;  %v3863_v50 = vadd.f32 %v3862_v53, %v3804_v6  ;;  %v3872_v34 = vadd.f32 %v3871_v7, %v3805_v63  ;;  %v3881_v32 = vadd.f32 %v3880_v36, %v3806_v15  ;;  %v8333_v24 = vld [vmem:[#allocation8_spill] sm:$0xff]  ;;  %v8334_v36 = vld [vmem:[#allocation9_spill] sm:$0xff] }
 0x796   : > { %v3819_v35 = vadd.f32 %v3818_v54, %v3808_v1  ;;  %v3828_v16 = vadd.f32 %v3827_v56, %v3809_v33  ;;  %v3837_v55 = vadd.f32 %v3836_v31, %v3810_v44  ;;  %v3846_v11 = vadd.f32 %v3845_v27, %v3811_v42 }
 0x797   : > { %v3855_v10 = vadd.f32 %v3854_v18, %v3812_v21  ;;  %v3864_v23 = vadd.f32 %v3863_v50, %v3813_v60  ;;  %v3873_v5 = vadd.f32 %v3872_v34, %v3814_v39  ;;  %v3882_v48 = vadd.f32 %v3881_v32, %v3815_v20 }
 0x798   : > { %v3820_v30 = vrot.slane %v3819_v35, 4  ;;  %v3829_v26 = vrot.slane %v3828_v16, 4  ;;  %v3838_v45 = vrot.slane %v3837_v55, 4  ;;  %v3847_v17 = vrot.slane %v3846_v11, 4 }
 0x799   : > { %v3856_v12 = vrot.slane %v3855_v10, 4  ;;  %v3865_v61 = vrot.slane %v3864_v23, 4  ;;  %v3874_v57 = vrot.slane %v3873_v5, 4  ;;  %v3883_v46 = vrot.slane %v3882_v48, 4 }
 0x79a   : > { %v3686_v7 = vrot.slane %v7251_v41, 1  ;;  %v3821_v43 = vadd.f32 %v3820_v30, %v3819_v35  ;;  %v3830_v54 = vadd.f32 %v3829_v26, %v3828_v16  ;;  %v3839_v19 = vadd.f32 %v3838_v45, %v3837_v55 }
 0x79b   : > { %v8324_v18 = vrot.slane %v7228_v3, 1  ;;  %v3695_v34 = vrot.slane %v7256_v9, 1  ;;  %v3848_v2 = vadd.f32 %v3847_v17, %v3846_v11  ;;  %v3857_v62 = vadd.f32 %v3856_v12, %v3855_v10 }
 0x79c   : > { %v3704_v8 = vrot.slane %v7258_v28, 1  ;;  %v3713_v47 = vrot.slane %v7263_v37, 1  ;;  %v3753_v0 = vunpack.c.l.bf16 %v3729_v13  ;;  %v3762_v14 = vunpack.c.h.bf16 %v3729_v13  ;;  %v7355_v13 = vld [vmem:[#allocation5 + $0x3f0] sm:$0xff] }
 0x79d   : > { %v7306_v31 = vadd.f32 %v8324_v18, %v7228_v3  ;;  %v8326_v35 = vrot.slane %v7267_v4, 2  ;;  %v3866_v58 = vadd.f32 %v3865_v61, %v3864_v23  ;;  %v3875_v22 = vadd.f32 %v3874_v57, %v3873_v5  ;;  %v3900_v57 = vld [vmem:[#allocation5 + $0x3f8] sm:$0xff] }
 0x79e   : > { %v3884_v6 = vadd.f32 %v3883_v46, %v3882_v48  ;;  %v3771_v3 = vunpack.c.l.bf16 %v3739_v59  ;;  %v3822_v63 = vrot.slane %v3821_v43, 2  ;;  %v3831_v15 = vrot.slane %v3830_v54, 2  ;;  %v3901_v46 = vld [vmem:[#allocation5 + $0x400] sm:$0xff] }
 0x79f   : > { %8325 = vst [vmem:[#allocation89_spill] sm:$0xff] %v7306_v31  ;;  %v3721_v55 = vadd.f32 %v8326_v35, %v7267_v4  ;;  %v3840_v1 = vrot.slane %v3839_v19, 2  ;;  %v8327_v33 = vrot.slane %v7230_v51, 1  ;;  %v8329_v42 = vrot.slane %v7232_v38, 1  ;;  %v8347_v31 = vld [vmem:[#allocation84_spill] sm:$0xff] }
 0x7a0   : > { %v3849_v60 = vrot.slane %v3848_v2, 2  ;;  %v3858_v39 = vrot.slane %v3857_v62, 2  ;;  %v8331_v4 = vrot.slane %v7234_v25, 1  ;;  %v3780_v40 = vunpack.c.h.bf16 %v3739_v59  ;;  %v3905_v59 = vld [vmem:[#allocation5 + $0x41c] sm:$0xff] }
 0x7a1   : > { %v7317_v44 = vadd.f32 %v8327_v33, %v7230_v51  ;;  %v7322_v21 = vadd.f32 %v8329_v42, %v7232_v38  ;;  %v3789_v53 = vmul.f32 %v3753_v0, %v8333_v24  ;;  %v3798_v56 = vmul.f32 %v3762_v14, %v8334_v36  ;;  %v3907_v0 = vld [vmem:[#allocation5 + $0x42c] sm:$0xff] }
 0x7a2   : > { %v7327_v20 = vadd.f32 %v8331_v4, %v7234_v25  ;;  %v3722_v27 = vrot.slane %v3721_v55, 1  ;;  %v3867_v51 = vrot.slane %v3866_v58, 2  ;;  %v3876_v50 = vrot.slane %v3875_v22, 2  ;;  %v3911_v33 = vld [vmem:[#allocation5 + $0x448] sm:$0xff]  ;;  %v3912_v42 = vld [vmem:[#allocation5 + $0x450] sm:$0xff] }
 0x7a3   : > { %8328 = vst [vmem:[#allocation86_spill] sm:$0xff] %v7317_v44  ;;  %8330 = vst [vmem:[#allocation53_spill] sm:$0xff] %v7322_v21  ;;  %v3885_v32 = vrot.slane %v3884_v6, 2  ;;  %v3807_v16 = vmul.f32 %v3771_v3, %v8333_v24  ;;  %v7332_v38 = vadd.f32 %v3822_v63, %v3821_v43  ;;  %v7334_v11 = vadd.f32 %v3831_v15, %v3830_v54  ;;  %v3902_v54 = vld [vmem:[#allocation5 + $0x408] sm:$0xff]  ;;  %v8344_v21 = vld [vmem:[#allocation78_spill] sm:$0xff] }
 0x7a4   : > { %8332 = vst [vmem:[#allocation48_spill] sm:$0xff] %v7327_v20  ;;  %v7336_v10 = vadd.f32 %v3840_v1, %v3839_v19  ;;  %v7339_v25 = vadd.f32 %v3686_v7, %v7251_v41  ;;  %v7342_v23 = vadd.f32 %v3695_v34, %v7256_v9  ;;  %v7344_v5 = vadd.f32 %v3849_v60, %v3848_v2  ;;  %v3904_v19 = vld [vmem:[#allocation5 + $0x414] sm:$0xff]  ;;  %v8343_v20 = vld [vmem:[#allocation68_spill] sm:$0xff] }
 0x7a5   : > { %v7346_v48 = vadd.f32 %v3858_v39, %v3857_v62  ;;  %v7349_v30 = vadd.f32 %v3704_v8, %v7258_v28  ;;  %v7352_v26 = vadd.f32 %v3713_v47, %v7263_v37  ;;  %v3816_v45 = vmul.f32 %v3780_v40, %v8334_v36  ;;  %v3906_v47 = vld [vmem:[#allocation5 + $0x424] sm:$0xff]  ;;  %v3914_v40 = vld [vmem:[#allocation5 + $0x45c] sm:$0xff]  ;;  %v8346_v44 = vld [vmem:[#allocation82_spill] sm:$0xff] }
 0x7a6   : > { %8335 = vst [vmem:[#allocation49_spill] sm:$0xff] %v7339_v25  ;;  %8336 = vst [vmem:[#allocation15_spill] sm:$0xff] %v7342_v23  ;;  %v3889_v17 = vadd.f32 %v3798_v56, %v3789_v53  ;;  %v7357_v41 = vadd.f32 %v3722_v27, %v3721_v55  ;;  %v7359_v12 = vadd.f32 %v3867_v51, %v3866_v58  ;;  %v3919_v2 = vunpack.c.l.bf16 %v7355_v13  ;;  %v3909_v58 = vld [vmem:[#allocation5 + $0x438] sm:$0xff]  ;;  %v3915_v53 = vld [vmem:[#allocation5 + $0x464] sm:$0xff] }
 0x7a7   : > { %8337 = vst [vmem:[#allocation90_spill] sm:$0xff] %v7349_v30  ;;  %8338 = vst [vmem:[#allocation91_spill] sm:$0xff] %v7352_v26  ;;  %v7361_v9 = vadd.f32 %v3876_v50, %v3875_v22  ;;  %v7363_v61 = vadd.f32 %v3885_v32, %v3884_v6  ;;  %v3920_v62 = vunpack.c.h.bf16 %v7355_v13  ;;  %v3921_v14 = vunpack.c.l.bf16 %v3900_v57  ;;  %v3910_v22 = vld [vmem:[#allocation5 + $0x440] sm:$0xff]  ;;  %v3916_v32 = vld [vmem:[#allocation5 + $0x46c] sm:$0xff] }
 0x7a8   : > { %8339 = vst [vmem:[#allocation92_spill] sm:$0xff] %v7357_v41  ;;  %v3890_v43 = vadd.f32 %v3889_v17, %v3807_v16  ;;  %v3922_v35 = vunpack.c.h.bf16 %v3900_v57  ;;  %v3923_v55 = vunpack.c.l.bf16 %v3901_v46  ;;  %v3924_v6 = vunpack.c.h.bf16 %v3901_v46  ;;  %v3917_v16 = vld [vmem:[#allocation5 + $0x474] sm:$0xff]  ;;  %v8341_v23 = vld [vmem:[#allocation52_spill] sm:$0xff] }
 0x7a9   : > { %v3925_v3 = vunpack.c.l.bf16 %v3902_v54  ;;  %v3926_v63 = vunpack.c.h.bf16 %v3902_v54  ;;  %v3928_v15 = vunpack.c.l.bf16 %v3904_v19  ;;  %v3929_v60 = vunpack.c.h.bf16 %v3904_v19  ;;  %v8340_v26 = vld [vmem:[#allocation50_spill] sm:$0xff]  ;;  %v8348_v36 = vld [vmem:[#allocation51_spill] sm:$0xff] }
 0x7aa   : > { %v3891_v8 = vadd.f32 %v3890_v43, %v3816_v45  ;;  %v3930_v39 = vunpack.c.l.bf16 %v3905_v59  ;;  %v3931_v4 = vunpack.c.h.bf16 %v3905_v59  ;;  %v3932_v56 = vunpack.c.l.bf16 %v3906_v47  ;;  %v8342_v25 = vld [vmem:[#allocation66_spill] sm:$0xff]  ;;  %v8349_v24 = vld [vmem:[#allocation67_spill] sm:$0xff] }
 0x7ab   : > { %v3933_v27 = vunpack.c.h.bf16 %v3906_v47  ;;  %v3934_v51 = vunpack.c.l.bf16 %v3907_v0  ;;  %v3935_v50 = vunpack.c.h.bf16 %v3907_v0  ;;  %v3937_v45 = vunpack.c.l.bf16 %v3909_v58 }
 0x7ac   : > { %v3892_v1 = vrot.slane %v3891_v8, 4  ;;  %v3938_v17 = vunpack.c.h.bf16 %v3909_v58  ;;  %v3939_v13 = vunpack.c.l.bf16 %v3910_v22  ;;  %v3940_v57 = vunpack.c.h.bf16 %v3910_v22 }
 0x7ad   : > { %v3941_v46 = vunpack.c.l.bf16 %v3911_v33  ;;  %v3942_v43 = vunpack.c.h.bf16 %v3911_v33  ;;  %v3943_v54 = vunpack.c.l.bf16 %v3912_v42  ;;  %v3944_v34 = vunpack.c.h.bf16 %v3912_v42 }
 0x7ae   : > { %v7372_v18 = vadd.f32 %v3892_v1, %v3891_v8  ;;  %v3946_v19 = vunpack.c.l.bf16 %v3914_v40  ;;  %v3947_v59 = vunpack.c.h.bf16 %v3914_v40  ;;  %v3948_v7 = vunpack.c.l.bf16 %v3915_v53  ;;  %v8345_v8 = vld [vmem:[#allocation79_spill] sm:$0xff] }
 0x7af   : > { %v3949_v37 = vunpack.c.h.bf16 %v3915_v53  ;;  %v3950_v28 = vunpack.c.l.bf16 %v3916_v32  ;;  %v3951_v47 = vunpack.c.h.bf16 %v3916_v32  ;;  %v3952_v41 = vunpack.c.l.bf16 %v3917_v16 }
 0x7b0   : > { %v3953_v0 = vunpack.c.h.bf16 %v3917_v16  ;;  %v3955_v30 = vmul.f32 %v3919_v2, %v8340_v26  ;;  %v3956_v58 = vmul.f32 %v3920_v62, %v8341_v23  ;;  %v3957_v22 = vmul.f32 %v3921_v14, %v8342_v25  ;;  %v8350_v2 = vld [vmem:[#allocation70_spill] sm:$0xff]  ;;  %v8351_v62 = vld [vmem:[#allocation80_spill] sm:$0xff]  ;;  %v8352_v14 = vld [vmem:[#allocation81_spill] sm:$0xff] }
 0x7b1   : > { %v3958_v33 = vmul.f32 %v3922_v35, %v8343_v20  ;;  %v3959_v42 = vmul.f32 %v3923_v55, %v8344_v21  ;;  %v3960_v1 = vmul.f32 %v3924_v6, %v8345_v8  ;;  %v3961_v40 = vmul.f32 %v3925_v3, %v8346_v44  ;;  %v8353_v35 = vld [vmem:[#allocation83_spill] sm:$0xff]  ;;  %v8354_v55 = vld [vmem:[#allocation85_spill] sm:$0xff] }
 0x7b2   : > { %v3962_v53 = vmul.f32 %v3926_v63, %v8347_v31  ;;  %v3964_v32 = vmul.f32 %v3928_v15, %v8348_v36  ;;  %v3965_v16 = vmul.f32 %v3929_v60, %v8211_v49  ;;  %v3966_v26 = vmul.f32 %v3930_v39, %v8349_v24  ;;  %v8355_v8 = vld [vmem:[#allocation55_spill] sm:$0xff]  ;;  %v8356_v3 = vld [vmem:[#allocation57_spill] sm:$0xff]  ;;  %v8358_v15 = vld [vmem:[#allocation74_spill] sm:$0xff] }
 0x7b3   : > { %v3967_v23 = vmul.f32 %v3931_v4, %v8350_v2  ;;  %v3968_v25 = vmul.f32 %v3932_v56, %v8351_v62  ;;  %v3969_v20 = vmul.f32 %v3933_v27, %v8352_v14  ;;  %v3970_v21 = vmul.f32 %v3934_v51, %v8353_v35  ;;  %v8357_v63 = vld [vmem:[#allocation71_spill] sm:$0xff]  ;;  %v8360_v4 = vld [vmem:[#allocation12_spill] sm:$0xff]  ;;  %v8361_v2 = vld [vmem:[#allocation18_spill] sm:$0xff] }
 0x7b4   : > { %v3971_v6 = vmul.f32 %v3935_v50, %v8354_v55  ;;  %v3973_v44 = vmul.f32 %v3937_v45, %v8355_v8  ;;  %v3974_v31 = vmul.f32 %v3938_v17, %v8356_v3  ;;  %v3975_v36 = vmul.f32 %v3939_v13, %v8357_v63  ;;  %v8359_v60 = vld [vmem:[#allocation11_spill] sm:$0xff]  ;;  %v8362_v62 = vld [vmem:[#allocation56_spill] sm:$0xff]  ;;  %v8363_v14 = vld [vmem:[#allocation58_spill] sm:$0xff] }
 0x7b5   : > { %v3976_v49 = vmul.f32 %v3940_v57, %v8358_v15  ;;  %v3977_v24 = vmul.f32 %v3941_v46, %v8175_v29  ;;  %v3978_v39 = vmul.f32 %v3942_v43, %v8359_v60  ;;  %v3979_v56 = vmul.f32 %v3943_v54, %v8360_v4  ;;  %v8364_v35 = vld [vmem:[#allocation72_spill] sm:$0xff]  ;;  %v8365_v55 = vld [vmem:[#allocation75_spill] sm:$0xff]  ;;  %v8368_v63 = vld [vmem:[#allocation13_spill] sm:$0xff] }
 0x7b6   : > { %v3980_v27 = vmul.f32 %v3944_v34, %v8361_v2  ;;  %v3982_v51 = vmul.f32 %v3946_v19, %v8362_v62  ;;  %v3983_v50 = vmul.f32 %v3947_v59, %v8363_v14  ;;  %v3984_v45 = vmul.f32 %v3948_v7, %v8364_v35  ;;  %v8366_v8 = vld [vmem:[#allocation87_spill] sm:$0xff]  ;;  %v8367_v3 = vld [vmem:[#allocation88_spill] sm:$0xff] }
 0x7b7   : > { %v3985_v17 = vmul.f32 %v3949_v37, %v8365_v55  ;;  %v3986_v13 = vmul.f32 %v3950_v28, %v8366_v8  ;;  %v3987_v57 = vmul.f32 %v3951_v47, %v8367_v3  ;;  %v3988_v29 = vmul.f32 %v3952_v41, %v8368_v63 }
 0x7b8   : > { %v3989_v46 = vmul.f32 %v3953_v0, %v8140_v52  ;;  %v3991_v43 = vadd.f32 %v3964_v32, %v3955_v30  ;;  %v4000_v54 = vadd.f32 %v3965_v16, %v3956_v58  ;;  %v4009_v15 = vadd.f32 %v3966_v26, %v3957_v22  ;;  %v3903_v32 = vld [vmem:[#allocation5 + $0x410] ss:$36 sps:$4 sm:$0xff]  }
 0x7b9   : > { %v4018_v34 = vadd.f32 %v3967_v23, %v3958_v33  ;;  %v4027_v60 = vadd.f32 %v3968_v25, %v3959_v42  ;;  %v4036_v19 = vadd.f32 %v3969_v20, %v3960_v1  ;;  %v4045_v4 = vadd.f32 %v3970_v21, %v3961_v40 }
 0x7ba   : > { %v3992_v59 = vadd.f32 %v3991_v43, %v3973_v44  ;;  %v4001_v2 = vadd.f32 %v4000_v54, %v3974_v31  ;;  %v4010_v7 = vadd.f32 %v4009_v15, %v3975_v36  ;;  %v4054_v62 = vadd.f32 %v3971_v6, %v3962_v53  ;;  %v3913_v36 = vld [vmem:[#allocation5 + $0x458] ss:$36 sps:$4 sm:$0xff]  }
 0x7bb   : > { %v4019_v37 = vadd.f32 %v4018_v34, %v3976_v49  ;;  %v4028_v14 = vadd.f32 %v4027_v60, %v3977_v24  ;;  %v4037_v28 = vadd.f32 %v4036_v19, %v3978_v39  ;;  %v4046_v35 = vadd.f32 %v4045_v4, %v3979_v56  ;;  %v8374_v19 = vld [vmem:[#allocation8_spill] sm:$0xff] }
 0x7bc   : > { %v3993_v47 = vadd.f32 %v3992_v59, %v3982_v51  ;;  %v4002_v55 = vadd.f32 %v4001_v2, %v3983_v50  ;;  %v4011_v41 = vadd.f32 %v4010_v7, %v3984_v45  ;;  %v4055_v8 = vadd.f32 %v4054_v62, %v3980_v27  ;;  %v8375_v59 = vld [vmem:[#allocation9_spill] sm:$0xff] }
 0x7bd   : > { %v4020_v52 = vadd.f32 %v4019_v37, %v3985_v17  ;;  %v4029_v30 = vadd.f32 %v4028_v14, %v3986_v13  ;;  %v4038_v0 = vadd.f32 %v4037_v28, %v3987_v57  ;;  %v4047_v58 = vadd.f32 %v4046_v35, %v3988_v29 }
 0x7be   : > { %v3994_v22 = vrot.slane %v3993_v47, 4  ;;  %v4003_v33 = vrot.slane %v4002_v55, 4  ;;  %v4012_v42 = vrot.slane %v4011_v41, 4  ;;  %v4056_v1 = vadd.f32 %v4055_v8, %v3989_v46 }
 0x7bf   : > { %v3869_v40 = vrot.slane %v7359_v12, 1  ;;  %v4021_v53 = vrot.slane %v4020_v52, 4  ;;  %v4030_v16 = vrot.slane %v4029_v30, 4  ;;  %v4039_v26 = vrot.slane %v4038_v0, 4 }
 0x7c0   : > { %v3878_v23 = vrot.slane %v7361_v9, 1  ;;  %v3887_v25 = vrot.slane %v7363_v61, 1  ;;  %v3995_v20 = vadd.f32 %v3994_v22, %v3993_v47  ;;  %v4048_v21 = vrot.slane %v4047_v58, 4  ;;  %v8378_v22 = vld [vmem:[#allocation25_spill] sm:$0xff] }
 0x7c1   : > { %v8369_v6 = vrot.slane %v7332_v38, 1  ;;  %v3894_v31 = vrot.slane %v7372_v18, 2  ;;  %v4004_v49 = vadd.f32 %v4003_v33, %v4002_v55  ;;  %v4013_v24 = vadd.f32 %v4012_v42, %v4011_v41 }
 0x7c2   : > { %v8370_v39 = vrot.slane %v7334_v11, 1  ;;  %v3927_v27 = vunpack.c.l.bf16 %v3903_v32  ;;  %v3936_v51 = vunpack.c.h.bf16 %v3903_v32  ;;  %v4057_v50 = vrot.slane %v4056_v1, 4  ;;  %v8380_v32 = vld [vmem:[#allocation27_spill] sm:$0xff] }
 0x7c3   : > { %v7412_v44 = vadd.f32 %v8369_v6, %v7332_v38  ;;  %v8371_v45 = vrot.slane %v7336_v10, 1  ;;  %v4022_v38 = vadd.f32 %v4021_v53, %v4020_v52  ;;  %v4031_v13 = vadd.f32 %v4030_v16, %v4029_v30  ;;  %v8376_v30 = vld [vmem:[#allocation26_spill] sm:$0xff]  ;;  %v8381_v53 = vld [vmem:[#allocation23_spill] sm:$0xff]  ;;  %v8383_v6 = vld [vmem:[#allocation16_spill] sm:$0xff] }
 0x7c4   : > { %v7418_v56 = vadd.f32 %v8370_v39, %v7334_v11  ;;  %v4040_v3 = vadd.f32 %v4039_v26, %v4038_v0  ;;  %v8372_v57 = vrot.slane %v7344_v5, 1  ;;  %v3945_v29 = vunpack.c.l.bf16 %v3913_v36  ;;  %v8377_v0 = vld [vmem:[#allocation19_spill] sm:$0xff] }
 0x7c5   : > { %v7423_v17 = vadd.f32 %v8371_v45, %v7336_v10  ;;  %v3996_v46 = vrot.slane %v3995_v20, 2  ;;  %v4049_v11 = vadd.f32 %v4048_v21, %v4047_v58  ;;  %v7431_v43 = vadd.f32 %v3894_v31, %v7372_v18  ;;  %v8382_v21 = vld [vmem:[#allocation29_spill] sm:$0xff]  ;;  %v8385_v39 = vld [vmem:[#allocation39_spill] sm:$0xff] }
 0x7c6   : > { %v7428_v63 = vadd.f32 %v8372_v57, %v7344_v5  ;;  %v3954_v54 = vunpack.c.h.bf16 %v3913_v36  ;;  %v4005_v15 = vrot.slane %v4004_v49, 2  ;;  %v4014_v34 = vrot.slane %v4013_v24, 2  ;;  %v8388_v57 = vld [vmem:[#allocation20_spill] sm:$0xff] }
 0x7c7   : > { %v8373_v10 = vrot.slane %v7346_v48, 1  ;;  %v3963_v4 = vmul.f32 %v3927_v27, %v8374_v19  ;;  %v3972_v2 = vmul.f32 %v3936_v51, %v8375_v59  ;;  %v4058_v5 = vadd.f32 %v4057_v50, %v4056_v1  ;;  %v8386_v51 = vld [vmem:[#allocation77_spill] sm:$0xff] }
 0x7c8   : > { %v7441_v7 = vadd.f32 %v3869_v40, %v7359_v12  ;;  %v4023_v62 = vrot.slane %v4022_v38, 2  ;;  %v4032_v37 = vrot.slane %v4031_v13, 2  ;;  %v4041_v18 = vrot.slane %v4040_v3, 2 }
 0x7c9   : > { %v7436_v60 = vadd.f32 %v8373_v10, %v7346_v48  ;;  %v7444_v14 = vadd.f32 %v3878_v23, %v7361_v9  ;;  %v3981_v28 = vmul.f32 %v3945_v29, %v8374_v19  ;;  %v3997_v35 = vadd.f32 %v3996_v46, %v3995_v20  ;;  %v8379_v9 = vld [vmem:[#allocation22_spill] sm:$0xff]  ;;  %v8389_v46 = vld [vmem:[#allocation31_spill] sm:$0xff] }
 0x7ca   : > { %v4050_v47 = vrot.slane %v4049_v11, 2  ;;  %v3896_v48 = vrot.slane %v7431_v43, 1  ;;  %v3990_v55 = vmul.f32 %v3954_v54, %v8375_v59  ;;  %v4006_v41 = vadd.f32 %v4005_v15, %v4004_v49  ;;  %v8384_v49 = vld [vmem:[#allocation37_spill] sm:$0xff]  ;;  %v8392_v19 = vld [vmem:[#allocation42_spill] sm:$0xff] }
 0x7cb   : > { %v7449_v8 = vadd.f32 %v4014_v34, %v4013_v24  ;;  %v4059_v52 = vrot.slane %v4058_v5, 2  ;;  %v4063_v12 = vadd.f32 %v3972_v2, %v3963_v4  ;;  %v4421_v58 = vsel %vm4420_vm4, %v8377_v0, %v8376_v30  ;;  %v8391_v15 = vld [vmem:[#allocation73_spill] sm:$0xff] }
 0x7cc   : > { %v4422_v33 = vsel %vm4420_vm4, %v8379_v9, %v8378_v22  ;;  %v4024_v42 = vadd.f32 %v4023_v62, %v4022_v38  ;;  %v7457_v1 = vadd.f32 %v4032_v37, %v4031_v13  ;;  %v7459_v40 = vadd.f32 %v4041_v18, %v4040_v3  ;;  %v8387_v3 = vld [vmem:[#allocation33_spill] sm:$0xff]  ;;  %v8398_v22 = vld [vmem:[#allocation32_spill] sm:$0xff] }
 0x7cd   : > { %v4423_v16 = vsel %vm4420_vm4, %v8381_v53, %v8380_v32  ;;  %v3998_v26 = vrot.slane %v3997_v35, 1  ;;  %v7464_v23 = vadd.f32 %v4050_v47, %v4049_v11  ;;  %v4064_v20 = vadd.f32 %v4063_v12, %v3981_v28  ;;  %v8390_v11 = vld [vmem:[#allocation17_spill] sm:$0xff]  ;;  %v8395_v28 = vld [vmem:[#allocation34_spill] sm:$0xff] }
 0x7ce   : > { %v4424_v31 = vsel %vm4420_vm4, %v8383_v6, %v8382_v21  ;;  %v4007_v36 = vrot.slane %v4006_v41, 1  ;;  %v4431_v24 = vsel %vm4430_vm5, %v4421_v58, %v8384_v49  ;;  %v4432_v27 = vsel %vm4430_vm5, %v4422_v33, %v8385_v39  ;;  %v8393_v59 = vld [vmem:[#allocation41_spill] sm:$0xff]  ;;  %v8399_v33 = vld [vmem:[#allocation14_spill] sm:$0xff]  ;;  %v8404_v49 = vld [vmem:[#allocation24_spill] sm:$0xff] }
 0x7cf   : > { %v4433_v50 = vsel %vm4430_vm5, %v4423_v16, %v8386_v51  ;;  %v4016_v45 = vrot.slane %v7449_v8, 1  ;;  %v7476_v38 = vadd.f32 %v4059_v52, %v4058_v5  ;;  %v4065_v13 = vadd.f32 %v4064_v20, %v3990_v55  ;;  %v8394_v5 = vld [vmem:[#allocation43_spill] sm:$0xff]  ;;  %v8396_v47 = vld [vmem:[#allocation21_spill] sm:$0xff]  ;;  %v8397_v52 = vld [vmem:[#allocation10_spill] sm:$0xff] }
 0x7d0   : > { %v4425_v29 = vsel %vm4420_vm4, %v8388_v57, %v8387_v3  ;;  %v4426_v54 = vsel %vm4420_vm4, %v8390_v11, %v8389_v46  ;;  %v4434_v34 = vsel %vm4430_vm5, %v4424_v31, %v8391_v15  ;;  %v4441_v4 = vsel %vm4440_vm6, %v4431_v24, %v8392_v19  ;;  %v8400_v53 = vld [vmem:[#allocation69_spill] sm:$0xff]  ;;  %v8401_v20 = vld [vmem:[#allocation59_spill] sm:$0xff]  ;;  %v8405_v39 = vld [vmem:[#allocation28_spill] sm:$0xff] }
 0x7d1   : > { %v4066_v10 = vrot.slane %v4065_v13, 4  ;;  %v4442_v2 = vsel %vm4440_vm6, %v4432_v27, %v8393_v59  ;;  %v4443_v62 = vsel %vm4440_vm6, %v4433_v50, %v8394_v5  ;;  %v4025_v37 = vrot.slane %v4024_v42, 1  ;;  %v8402_v6 = vld [vmem:[#allocation61_spill] sm:$0xff]  ;;  %v8406_v51 = vld [vmem:[#allocation46_spill] sm:$0xff]  ;;  %v8408_v57 = vld [vmem:[#allocation76_spill] sm:$0xff] }
 0x7d2   : > { %v4034_v18 = vrot.slane %v7457_v1, 1  ;;  %v4427_v55 = vsel %vm4420_vm4, %v8396_v47, %v8395_v28  ;;  %v4435_v12 = vsel %vm4430_vm5, %v4425_v29, %v8397_v52  ;;  %v3999_v30 = vadd.f32 %v3998_v26, %v3997_v35  ;;  %v8403_v26 = vld [vmem:[#allocation36_spill] sm:$0xff]  ;;  %v8407_v3 = vld [vmem:[#allocation38_spill] sm:$0xff]  ;;  %v8411_v15 = vld [vmem:[#allocation89_spill] sm:$0xff] }
 0x7d3   : > { %v4043_v0 = vrot.slane %v7459_v40, 1  ;;  %v4052_v58 = vrot.slane %v7464_v23, 1  ;;  %v4444_v9 = vsel %vm4440_vm6, %v4434_v34, %v8398_v22  ;;  %v4436_v32 = vsel %vm4430_vm5, %v4426_v54, %v8399_v33  ;;  %v8409_v46 = vld [vmem:[#allocation62_spill] sm:$0xff]  ;;  %v8415_v28 = vld [vmem:[#allocation47_spill] sm:$0xff]  ;;  %v8417_v22 = vld [vmem:[#allocation48_spill] sm:$0xff] }
 0x7d4   : > { %v4451_v16 = vsel %vm4450_vm7, %v4441_v4, %v8400_v53  ;;  %v4452_v21 = vsel %vm4450_vm7, %v4442_v2, %v8401_v20  ;;  %v4453_v31 = vsel %vm4450_vm7, %v4443_v62, %v8402_v6  ;;  %v4067_v35 = vadd.f32 %v4066_v10, %v4065_v13  ;;  %v8410_v13 = vld [vmem:[#allocation35_spill] sm:$0xff]  ;;  %v8412_v10 = vld [vmem:[#allocation86_spill] sm:$0xff]  ;;  %v8413_v4 = vld [vmem:[#allocation53_spill] sm:$0xff] }
 0x7d5   : > { %v4428_v24 = vsel %vm4420_vm4, %v8404_v49, %v8403_v26  ;;  %v4437_v27 = vsel %vm4430_vm5, %v4427_v55, %v8405_v39  ;;  %v4445_v50 = vsel %vm4440_vm6, %v4435_v12, %v8406_v51  ;;  %v4429_v29 = vsel %vm4420_vm4, %v8408_v57, %v8407_v3  ;;  %v8414_v5 = vld [vmem:[#allocation30_spill] sm:$0xff]  ;;  %v8416_v55 = vld [vmem:[#allocation63_spill] sm:$0xff] }
 0x7d6   : > { %v4454_v11 = vsel %vm4450_vm7, %v4444_v9, %v8409_v46  ;;  %v4446_v54 = vsel %vm4440_vm6, %v4436_v32, %v8410_v13  ;;  %v4461_v34 = vsel %vm4460_vm8, %v4451_v16, %v8411_v15  ;;  %v4462_v19 = vsel %vm4460_vm8, %v4452_v21, %v8412_v10  ;;  %v8418_v32 = vld [vmem:[#allocation40_spill] sm:$0xff] }
 0x7d7   : > { %v4463_v59 = vsel %vm4460_vm8, %v4453_v31, %v8413_v4  ;;  %v4008_v2 = vadd.f32 %v4007_v36, %v4006_v41  ;;  %v4438_v62 = vsel %vm4430_vm5, %v4428_v24, %v8414_v5  ;;  %v4447_v47 = vsel %vm4440_vm6, %v4437_v27, %v8415_v28  ;;  %v8419_v36 = vld [vmem:[#allocation44_spill] sm:$0xff]  ;;  %v8420_v31 = vld [vmem:[#allocation54_spill] sm:$0xff]  ;;  %v8422_v24 = vld [vmem:[#allocation45_spill] sm:$0xff] }
 0x7d8   : > { %v4455_v52 = vsel %vm4450_vm7, %v4445_v50, %v8416_v55  ;;  %v4068_v12 = vrot.slane %v4067_v35, 2  ;;  %v4464_v9 = vsel %vm4460_vm8, %v4454_v11, %v8417_v22  ;;  %v4471_v33 = vsel %vm4470_vm9, %v4461_v34, %v7412_v44  ;;  %v8421_v44 = vld [vmem:[#allocation49_spill] sm:$0xff]  ;;  %v8424_v50 = vld [vmem:[#allocation15_spill] sm:$0xff]  ;;  %v8426_v11 = vld [vmem:[#allocation90_spill] sm:$0xff] }
 0x7d9   : > { %v4439_v41 = vsel %vm4430_vm5, %v4429_v29, %v8418_v32  ;;  %v4456_v53 = vsel %vm4450_vm7, %v4446_v54, %v8419_v36  ;;  %v4472_v16 = vsel %vm4470_vm9, %v4462_v19, %v7418_v56  ;;  %v4473_v20 = vsel %vm4470_vm9, %v4463_v59, %v7423_v17  ;;  %v8425_v29 = vld [vmem:[#allocation60_spill] sm:$0xff]  ;;  %v8428_v5 = vld [vmem:[#allocation91_spill] sm:$0xff] }
 0x7da   : > { %v4017_v21 = vadd.f32 %v4016_v45, %v7449_v8  ;;  %v4026_v6 = vadd.f32 %v4025_v37, %v4024_v42  ;;  %v4448_v26 = vsel %vm4440_vm6, %v4438_v62, %v8420_v31  ;;  %v4465_v49 = vsel %vm4460_vm8, %v4455_v52, %v8421_v44  ;;  %v4529_v8 = vld [vmem:[%s7628_s10 + $0x8] sm:$0x3]  ;;  %v4527_v42 = vpop.xlane.xlu1 %4526  ;;  %v8423_v37 = vld [vmem:[#allocation65_spill] sm:$0xff] }
 0x7db   : > { %v4457_v39 = vsel %vm4450_vm7, %v4447_v47, %v8422_v24  ;;  %v4474_v27 = vsel %vm4470_vm9, %v4464_v9, %v7428_v63  ;;  %v4481_v56 = vsel %vm4480_vm10, %v4471_v33, %v3999_v30  ;;  %v4482_v17 = vsel %vm4480_vm10, %v4472_v16, %v4008_v2  ;;  %v8427_v10 = vld [vmem:[#allocation64_spill] sm:$0xff] }
 0x7dc   : > { %v4069_v45 = vadd.f32 %v4068_v12, %v4067_v35  ;;  %v4449_v51 = vsel %vm4440_vm6, %v4439_v41, %v8423_v37  ;;  %v4466_v3 = vsel %vm4460_vm8, %v4456_v53, %v8424_v50  ;;  %v4483_v57 = vsel %vm4480_vm10, %v4473_v20, %v4017_v21  ;;  %v4528_v41 = vld [vmem:[%s7628_s10] sm:$0xff] }
 0x7dd   : > { %v4458_v63 = vsel %vm4450_vm7, %v4448_v26, %v8425_v29  ;;  %v4475_v30 = vsel %vm4470_vm9, %v4465_v49, %v7436_v60  ;;  %v4499_v46 = vadd.f32 %v4482_v17, %v4481_v56  ;;  %v4035_v35 = vadd.f32 %v4034_v18, %v7457_v1 }
 0x7de   : > { %v4467_v13 = vsel %vm4460_vm8, %v4457_v39, %v8426_v11  ;;  %v4484_v54 = vsel %vm4480_vm10, %v4474_v27, %v4026_v6  ;;  %v4531_v15 = vadd.f32 %v4529_v8, %v4527_v42  ;;  %v4061_v34 = vrot.slane %v7476_v38, 1 }
 0x7df   : > { %v4459_v60 = vsel %vm4450_vm7, %v4449_v51, %v8427_v10  ;;  %v4476_v19 = vsel %vm4470_vm9, %v4466_v3, %v7441_v7  ;;  %v4500_v4 = vadd.f32 %v4499_v46, %v4483_v57  ;;  %v4044_v59 = vadd.f32 %v4043_v0, %v7459_v40  ;;  %v8429_v0 = vld [vmem:[#allocation92_spill] sm:$0xff] }
 0x7e0   : > { %v4070_v2 = vrot.slane %v4069_v45, 1  ;;  %v4468_v1 = vsel %vm4460_vm8, %v4458_v63, %v8428_v5  ;;  %v4485_v18 = vsel %vm4480_vm10, %v4475_v30, %v4035_v35  ;;  %4535 = vst.msk [vmem:[%s7575_s13 + $0x8] sm:$0x3] %vm4534_vm11, %v4531_v15  ;;  %v3888_v62 = vadd.f32 %v3887_v25, %v7363_v61 }
 0x7e1   : > { %v3897_v28 = vadd.f32 %v3896_v48, %v7431_v43  ;;  %v4477_v7 = vsel %vm4470_vm9, %v4467_v13, %v7444_v14  ;;  %v4501_v47 = vadd.f32 %v4500_v4, %v4484_v54  ;;  %v4053_v40 = vadd.f32 %v4052_v58, %v7464_v23 }
 0x7e2   : > { %v4469_v55 = vsel %vm4460_vm8, %v4459_v60, %v8429_v0  ;;  %v4486_v52 = vsel %vm4480_vm10, %v4476_v19, %v4044_v59  ;;  %v4478_v12 = vsel %vm4470_vm9, %v4468_v1, %v3888_v62  ;;  %v4062_v25 = vadd.f32 %v4061_v34, %v7476_v38 }
 0x7e3   : > { %v4502_v61 = vadd.f32 %v4501_v47, %v4485_v18  ;;  %v4071_v43 = vadd.f32 %v4070_v2, %v4069_v45  ;;  %v4487_v48 = vsel %vm4480_vm10, %v4477_v7, %v4053_v40  ;;  %v4479_v14 = vsel %vm4470_vm9, %v4469_v55, %v3897_v28 }
 0x7e4   : > { %v4488_v9 = vsel %vm4480_vm10, %v4478_v12, %v4062_v25 }
 0x7e5   : > { %v4503_v22 = vadd.f32 %v4502_v61, %v4486_v52  ;;  %v4489_v58 = vsel %vm4480_vm10, %v4479_v14, %v4071_v43 }
 0x7e7   : > { %v4504_v23 = vadd.f32 %v4503_v22, %v4487_v48 }
 0x7e9   : > { %v4505_v33 = vadd.f32 %v4504_v23, %v4488_v9 }
 0x7eb   : > { %v4506_v32 = vadd.f32 %v4505_v33, %v4489_v58 }
 0x7ed   : > { %4507 = vadd.xlane.f32.xlu0 %v4506_v32 }
 0x87a   : > { %v4508_v38 = vpop.xlane.xlu0 %4507 }
 0x87b   : > { %v4530_v36 = vadd.f32 %v4528_v41, %v4508_v38 }
 0x87d   : > { %4533 = vst.msk [vmem:[%s7575_s13] sm:$0xff] %vm4532_vm12, %v4530_v36 }
 0x87e PF: > { %s22_s17 = sadd.s32 1, %s4792_s17  }
 0x87f   : > { %p19_p3 = scmp.ge.s32.totalorder %s22_s17, 4  }
 0x881   :  { %21 = sbr.rel (!%p19_p3) target bundleno = 1 (0x1), region = 108 }
 0x888   :  { %4557 = vsyncpa [#allocation6], 1 }
 0x889   :  { %4559 = vsyncpa [#allocation6 + $0x1], 1 }

</bundles_post_ra>
